<compile_context>
chip_gen: v5e
topology: v5e:2x2
jax: 0.10.0
libtpu: 0.0.40
codegen_flags: <defaults>
</compile_context>

<pallas_src>
import functools

import jax
import jax.numpy as jnp
from jax.experimental import pallas as pl
from jax.experimental.pallas import tpu as pltpu


KH = KW = 4
STRIDE = 2
TILE_M = 512          # rows of the im2col matrix processed per grid step


def _round_up(x, m):
    return (x + m - 1) // m * m


# ----------------------------------------------------------------------------
# Pallas kernel: fused  out = tanh(x @ w + b)  (bf16 operands, f32 accumulate)
# ----------------------------------------------------------------------------
def _matmul_bias_tanh_kernel(x_ref, w_ref, b_ref, o_ref):
    acc = jnp.dot(x_ref[...], w_ref[...], preferred_element_type=jnp.float32)
    o_ref[...] = jnp.tanh(acc + b_ref[...]).astype(o_ref.dtype)


def matmul_bias_tanh(x, w, b2d, *, out_dtype=jnp.bfloat16, tile_m=TILE_M):
    """x: (M, K) bf16, w: (K, Np) bf16, b2d: (1, Np) f32 -> (M, Np) out_dtype.

    Tiled over M only; the (small) weight and bias stay resident across the
    grid.  Np must be a multiple of 128; K may be any value (full-extent
    block), so no K padding / extra HBM copies are ever needed.
    """
    M, K = x.shape
    K2, Np = w.shape
    assert K == K2 and b2d.shape == (1, Np) and Np % 128 == 0

    # Multiple of 16 keeps sublane tiling happy for both f32 and bf16 blocks.
    tm = min(tile_m, _round_up(max(M, 16), 16))
    grid = (pl.cdiv(M, tm),)

    return pl.pallas_call(
        _matmul_bias_tanh_kernel,
        out_shape=jax.ShapeDtypeStruct((M, Np), out_dtype),
        grid=grid,
        in_specs=[
            pl.BlockSpec((tm, K), lambda i: (i, 0)),   # activations: tiled over M
            pl.BlockSpec((K, Np), lambda i: (0, 0)),   # weights: resident
            pl.BlockSpec((1, Np), lambda i: (0, 0)),   # bias: resident
        ],
        out_specs=pl.BlockSpec((tm, Np), lambda i: (i, 0)),
        compiler_params=pltpu.CompilerParams(
            dimension_semantics=("parallel",),         # 2 TCs on v7x; no-op on v5e/v6e
            vmem_limit_bytes=32 * 1024 * 1024,         # explicit, safe on v5e/v6e/v7x
        ),
    )(x, w, b2d)


# ----------------------------------------------------------------------------
# im2col glue (data rearrangement only; all compute stays in the Pallas kernel)
# ----------------------------------------------------------------------------
def _im2col(x_nhwc, kh, kw, stride):
    # TODO(synk): fold this gather into the Pallas kernel (per-tap accumulation
    # or manual-DMA patch build) to remove the kh*kw/stride^2 HBM expansion.
    N, H, W, C = x_nhwc.shape
    Ho = (H - kh) // stride + 1
    Wo = (W - kw) // stride + 1
    patches = []
    for i in range(kh):
        for j in range(kw):
            patches.append(
                x_nhwc[:, i:i + Ho * stride:stride, j:j + Wo * stride:stride, :]
            )
    p = jnp.stack(patches, axis=3)              # (N, Ho, Wo, kh*kw, C)
    return p.reshape(N * Ho * Wo, kh * kw * C), (N, Ho, Wo)


def _conv_tanh(x_nhwc, w_mat, b_pad, *, out_dtype=jnp.bfloat16):
    """Conv2d(k=4, s=2, valid) + tanh.  x_nhwc may carry zero-padded channels
    from the previous layer; only the first w_mat.shape[0]//16 (= real Cin)
    channels are gathered, so the padding never reaches the matmul."""
    c_in = w_mat.shape[0] // (KH * KW)
    cols, (N, Ho, Wo) = _im2col(x_nhwc[..., :c_in], KH, KW, STRIDE)
    out = matmul_bias_tanh(cols, w_mat, b_pad, out_dtype=out_dtype)
    return out.reshape(N, Ho, Wo, -1)           # channels stay 128-padded (zeros)


# ----------------------------------------------------------------------------
# Parameter init (deterministic, xavier-normal-like, synthetic)
# ----------------------------------------------------------------------------
def _xavier_normal(key, shape, fan_in, fan_out):
    std = (2.0 / (fan_in + fan_out)) ** 0.5
    return std * jax.random.normal(key, shape, dtype=jnp.float32)


def init_conv_params(key, state_size, output_size):
    """state_size = (H, W, C)  (matches the PyTorch module's convention)."""
    h, w, c_in = state_size
    specs = [(c_in, 32), (32, 64), (64, 128), (128, 256)]
    keys = jax.random.split(key, 10)
    params = {}
    for idx, (ci, co) in enumerate(specs, start=1):
        kw_, kb_ = keys[2 * (idx - 1)], keys[2 * (idx - 1) + 1]
        fan_in, fan_out = ci * KH * KW, co * KH * KW
        params[f"conv{idx}_w"] = _xavier_normal(kw_, (co, ci, KH, KW), fan_in, fan_out)
        bound = 1.0 / (fan_in ** 0.5)
        params[f"conv{idx}_b"] = jax.random.uniform(
            kb_, (co,), minval=-bound, maxval=bound, dtype=jnp.float32
        )

    ho, wo = h, w
    for _ in range(4):
        ho = (ho - KH) // STRIDE + 1
        wo = (wo - KW) // STRIDE + 1
    flat = 256 * ho * wo

    params["linear1_w"] = _xavier_normal(keys[8], (output_size, flat), flat, output_size)
    bound = 1.0 / (flat ** 0.5)
    params["linear1_b"] = jax.random.uniform(
        keys[9], (output_size,), minval=-bound, maxval=bound, dtype=jnp.float32
    )
    return params


# ----------------------------------------------------------------------------
# One-time parameter packing (all layout work removed from the per-call path)
# ----------------------------------------------------------------------------
def prepare_params(params, state_size):
    """Conv weights -> (KH*KW*Cin, Np) bf16 matrices with N padded to 128;
    biases -> (1, Np) f32 (padding = 0 keeps padded lanes inert: tanh(0)=0);
    linear weight -> (flat, Np) bf16, rows permuted from torch's NCHW flatten
    order to our NHWC flatten order so no runtime transpose is needed."""
    h, w, _ = state_size
    prep = {}
    ho, wo = h, w
    for idx in range(1, 5):
        w_oihw = params[f"conv{idx}_w"].astype(jnp.float32)    # (Co, Ci, KH, KW)
        b = params[f"conv{idx}_b"].astype(jnp.float32)
        co, ci, kh, kw = w_oihw.shape
        np_ = _round_up(max(co, 128), 128)
        w_mat = jnp.transpose(w_oihw, (2, 3, 1, 0)).reshape(kh * kw * ci, co)
        prep[f"conv{idx}_w"] = jnp.pad(w_mat, ((0, 0), (0, np_ - co))).astype(jnp.bfloat16)
        prep[f"conv{idx}_b"] = jnp.pad(b, (0, np_ - co)).reshape(1, np_)
        ho = (ho - kh) // STRIDE + 1
        wo = (wo - kw) // STRIDE + 1

    lw = params["linear1_w"].astype(jnp.float32)               # (out, 256*ho*wo)
    lb = params["linear1_b"].astype(jnp.float32)
    out_size, flat = lw.shape
    assert flat == 256 * ho * wo
    np_ = _round_up(max(out_size, 128), 128)
    # torch flattens (C, H, W); our activation flattens (H, W, C) -> permute rows.
    lw = lw.reshape(out_size, 256, ho, wo)
    lw = jnp.transpose(lw, (2, 3, 1, 0)).reshape(flat, out_size)
    prep["linear1_w"] = jnp.pad(lw, ((0, 0), (0, np_ - out_size))).astype(jnp.bfloat16)
    prep["linear1_b"] = jnp.pad(lb, (0, np_ - out_size)).reshape(1, np_)
    return prep


# ----------------------------------------------------------------------------
# Forward pass (matches torch Conv.forward)
# ----------------------------------------------------------------------------
@functools.partial(jax.jit, static_argnames=("output_size",))
def conv_forward(prep, state, *, output_size):
    """state: (..., C, H, W) float32  ->  (..., output_size) float32."""
    out_dims = state.shape[:-3]
    c, h, w = state.shape[-3:]
    x = state.reshape((-1, c, h, w))                  # (N, C, H, W)
    x = jnp.transpose(x, (0, 2, 3, 1)).astype(jnp.bfloat16)   # NHWC, bf16 for MXU

    x = _conv_tanh(x, prep["conv1_w"], prep["conv1_b"])
    x = _conv_tanh(x, prep["conv2_w"], prep["conv2_b"])
    x = _conv_tanh(x, prep["conv3_w"], prep["conv3_b"])
    x = _conv_tanh(x, prep["conv4_w"], prep["conv4_b"])

    # conv4 has 256 output channels (already lane-aligned, no padding), and the
    # linear weight rows were pre-permuted for NHWC flatten -> plain reshape.
    n = x.shape[0]
    x = x.reshape(n, -1)
    y = matmul_bias_tanh(x, prep["linear1_w"], prep["linear1_b"],
                         out_dtype=jnp.float32)
    y = y[:, :output_size]
    return y.reshape(*out_dims, -1)


# ----------------------------------------------------------------------------
if __name__ == "__main__":
    key = jax.random.PRNGKey(0)
    k_param, k_input = jax.random.split(key)

    # (H, W, C); 48 is (near) the smallest spatial size that survives four
    # k=4, stride=2 convolutions.
    state_size = (48, 48, 4)
    output_size = 16
    batch = 2

    params = init_conv_params(k_param, state_size, output_size)
    prep = prepare_params(params, state_size)

    # Input in PyTorch NCHW order: (batch, C, H, W)
    x = jax.random.normal(
        k_input, (batch, state_size[2], state_size[0], state_size[1]),
        dtype=jnp.float32,
    )

    out = conv_forward(prep, x, output_size=output_size)
    out = jax.block_until_ready(out)
    assert out.shape == (batch, output_size), out.shape
    assert bool(jnp.all(jnp.isfinite(out)))
    print("KERNEL_OK")
</pallas_src>

<mosaic_0001>
module attributes {stable_mosaic.version = 11 : i64} {
  func.func @_matmul_bias_tanh_kernel(%arg0: i32, %arg1: memref<512x64xbf16, #tpu.memory_space<vmem>>, %arg2: memref<64x128xbf16, #tpu.memory_space<vmem>>, %arg3: memref<1x128xf32, #tpu.memory_space<vmem>>, %arg4: memref<512x128xbf16, #tpu.memory_space<vmem>>) attributes {dimension_semantics = [#tpu.dimension_semantics<parallel>], iteration_bounds = array<i64: 3>, scalar_prefetch = 0 : i64, scratch_operands = 0 : i64, tpu.core_type = #tpu.core_type<tc>, window_params = [{transform_indices = @transform_0, window_bounds = array<i64: 512, 64>}, {pipeline_mode = #tpu.pipeline_mode<synchronous>, transform_indices = @transform_1, window_bounds = array<i64: 64, 128>}, {pipeline_mode = #tpu.pipeline_mode<synchronous>, transform_indices = @transform_2, window_bounds = array<i64: 1, 128>}, {transform_indices = @transform_3, window_bounds = array<i64: 512, 128>}]} {
    %c0 = arith.constant 0 : index
    %c0_0 = arith.constant 0 : index
    %0 = vector.load %arg1[%c0, %c0_0] : memref<512x64xbf16, #tpu.memory_space<vmem>>, vector<512x64xbf16>
    %c0_1 = arith.constant 0 : index
    %c0_2 = arith.constant 0 : index
    %1 = vector.load %arg2[%c0_1, %c0_2] : memref<64x128xbf16, #tpu.memory_space<vmem>>, vector<64x128xbf16>
    %cst = arith.constant dense<0.000000e+00> : vector<512x128xf32>
    %2 = tpu.matmul %0, %1, %cst {dimension_numbers = #tpu.dot_dimension_numbers<[1], [0], [0], [1], [0, 0, 1, 1], [], []>} : vector<512x64xbf16>, vector<64x128xbf16>, vector<512x128xf32> -> vector<512x128xf32>
    %c0_3 = arith.constant 0 : index
    %c0_4 = arith.constant 0 : index
    %3 = vector.load %arg3[%c0_3, %c0_4] : memref<1x128xf32, #tpu.memory_space<vmem>>, vector<1x128xf32>
    %4 = vector.broadcast %3 : vector<1x128xf32> to vector<512x128xf32>
    %5 = arith.addf %2, %4 : vector<512x128xf32>
    %6 = math.tanh %5 : vector<512x128xf32>
    %7 = arith.truncf %6 : vector<512x128xf32> to vector<512x128xbf16>
    %c0_5 = arith.constant 0 : index
    %c0_6 = arith.constant 0 : index
    %8 = vector.load %arg4[%c0_5, %c0_6] : memref<512x128xbf16, #tpu.memory_space<vmem>>, vector<512x128xbf16>
    tpu.vector_store %arg4[%c0_5, %c0_6], %7 {strides = array<i32>} : memref<512x128xbf16, #tpu.memory_space<vmem>>, vector<512x128xbf16>,
    return
  }
  func.func @transform_0(%arg0: i32) -> (i32, i32) {
    %c0_i32 = arith.constant 0 : i32
    %c0_i32_0 = arith.constant 0 : i32
    return %arg0, %c0_i32 : i32, i32
  }
  func.func @transform_1(%arg0: i32) -> (i32, i32) {
    %c0_i32 = arith.constant 0 : i32
    %c0_i32_0 = arith.constant 0 : i32
    %c0_i32_1 = arith.constant 0 : i32
    return %c0_i32, %c0_i32_0 : i32, i32
  }
  func.func @transform_2(%arg0: i32) -> (i32, i32) {
    %c0_i32 = arith.constant 0 : i32
    %c0_i32_0 = arith.constant 0 : i32
    %c0_i32_1 = arith.constant 0 : i32
    return %c0_i32, %c0_i32_0 : i32, i32
  }
  func.func @transform_3(%arg0: i32) -> (i32, i32) {
    %c0_i32 = arith.constant 0 : i32
    %c0_i32_0 = arith.constant 0 : i32
    return %arg0, %c0_i32 : i32, i32
  }
}

module attributes {stable_mosaic.version = 11 : i64} {
  func.func @_matmul_bias_tanh_kernel(%arg0: i32, %arg1: memref<208x512xbf16, #tpu.memory_space<vmem>>, %arg2: memref<512x128xbf16, #tpu.memory_space<vmem>>, %arg3: memref<1x128xf32, #tpu.memory_space<vmem>>, %arg4: memref<208x128xbf16, #tpu.memory_space<vmem>>) attributes {dimension_semantics = [#tpu.dimension_semantics<parallel>], iteration_bounds = array<i64: 1>, scalar_prefetch = 0 : i64, scratch_operands = 0 : i64, tpu.core_type = #tpu.core_type<tc>, window_params = [{transform_indices = @transform_0, window_bounds = array<i64: 208, 512>}, {pipeline_mode = #tpu.pipeline_mode<synchronous>, transform_indices = @transform_1, window_bounds = array<i64: 512, 128>}, {pipeline_mode = #tpu.pipeline_mode<synchronous>, transform_indices = @transform_2, window_bounds = array<i64: 1, 128>}, {transform_indices = @transform_3, window_bounds = array<i64: 208, 128>}]} {
    %c0 = arith.constant 0 : index
    %c0_0 = arith.constant 0 : index
    %0 = vector.load %arg1[%c0, %c0_0] : memref<208x512xbf16, #tpu.memory_space<vmem>>, vector<208x512xbf16>
    %c0_1 = arith.constant 0 : index
    %c0_2 = arith.constant 0 : index
    %1 = vector.load %arg2[%c0_1, %c0_2] : memref<512x128xbf16, #tpu.memory_space<vmem>>, vector<512x128xbf16>
    %cst = arith.constant dense<0.000000e+00> : vector<208x128xf32>
    %2 = tpu.matmul %0, %1, %cst {dimension_numbers = #tpu.dot_dimension_numbers<[1], [0], [0], [1], [0, 0, 1, 1], [], []>} : vector<208x512xbf16>, vector<512x128xbf16>, vector<208x128xf32> -> vector<208x128xf32>
    %c0_3 = arith.constant 0 : index
    %c0_4 = arith.constant 0 : index
    %3 = vector.load %arg3[%c0_3, %c0_4] : memref<1x128xf32, #tpu.memory_space<vmem>>, vector<1x128xf32>
    %4 = vector.broadcast %3 : vector<1x128xf32> to vector<208x128xf32>
    %5 = arith.addf %2, %4 : vector<208x128xf32>
    %6 = math.tanh %5 : vector<208x128xf32>
    %7 = arith.truncf %6 : vector<208x128xf32> to vector<208x128xbf16>
    %c0_5 = arith.constant 0 : index
    %c0_6 = arith.constant 0 : index
    %8 = vector.load %arg4[%c0_5, %c0_6] : memref<208x128xbf16, #tpu.memory_space<vmem>>, vector<208x128xbf16>
    tpu.vector_store %arg4[%c0_5, %c0_6], %7 {strides = array<i32>} : memref<208x128xbf16, #tpu.memory_space<vmem>>, vector<208x128xbf16>,
    return
  }
  func.func @transform_0(%arg0: i32) -> (i32, i32) {
    %c0_i32 = arith.constant 0 : i32
    %c0_i32_0 = arith.constant 0 : i32
    return %arg0, %c0_i32 : i32, i32
  }
  func.func @transform_1(%arg0: i32) -> (i32, i32) {
    %c0_i32 = arith.constant 0 : i32
    %c0_i32_0 = arith.constant 0 : i32
    %c0_i32_1 = arith.constant 0 : i32
    return %c0_i32, %c0_i32_0 : i32, i32
  }
  func.func @transform_2(%arg0: i32) -> (i32, i32) {
    %c0_i32 = arith.constant 0 : i32
    %c0_i32_0 = arith.constant 0 : i32
    %c0_i32_1 = arith.constant 0 : i32
    return %c0_i32, %c0_i32_0 : i32, i32
  }
  func.func @transform_3(%arg0: i32) -> (i32, i32) {
    %c0_i32 = arith.constant 0 : i32
    %c0_i32_0 = arith.constant 0 : i32
    return %arg0, %c0_i32 : i32, i32
  }
}

module attributes {stable_mosaic.version = 11 : i64} {
  func.func @_matmul_bias_tanh_kernel(%arg0: i32, %arg1: memref<32x1024xbf16, #tpu.memory_space<vmem>>, %arg2: memref<1024x128xbf16, #tpu.memory_space<vmem>>, %arg3: memref<1x128xf32, #tpu.memory_space<vmem>>, %arg4: memref<32x128xbf16, #tpu.memory_space<vmem>>) attributes {dimension_semantics = [#tpu.dimension_semantics<parallel>], iteration_bounds = array<i64: 1>, scalar_prefetch = 0 : i64, scratch_operands = 0 : i64, tpu.core_type = #tpu.core_type<tc>, window_params = [{transform_indices = @transform_0, window_bounds = array<i64: 32, 1024>}, {pipeline_mode = #tpu.pipeline_mode<synchronous>, transform_indices = @transform_1, window_bounds = array<i64: 1024, 128>}, {pipeline_mode = #tpu.pipeline_mode<synchronous>, transform_indices = @transform_2, window_bounds = array<i64: 1, 128>}, {transform_indices = @transform_3, window_bounds = array<i64: 32, 128>}]} {
    %c0 = arith.constant 0 : index
    %c0_0 = arith.constant 0 : index
    %0 = vector.load %arg1[%c0, %c0_0] : memref<32x1024xbf16, #tpu.memory_space<vmem>>, vector<32x1024xbf16>
    %c0_1 = arith.constant 0 : index
    %c0_2 = arith.constant 0 : index
    %1 = vector.load %arg2[%c0_1, %c0_2] : memref<1024x128xbf16, #tpu.memory_space<vmem>>, vector<1024x128xbf16>
    %cst = arith.constant dense<0.000000e+00> : vector<32x128xf32>
    %2 = tpu.matmul %0, %1, %cst {dimension_numbers = #tpu.dot_dimension_numbers<[1], [0], [0], [1], [0, 0, 1, 1], [], []>} : vector<32x1024xbf16>, vector<1024x128xbf16>, vector<32x128xf32> -> vector<32x128xf32>
    %c0_3 = arith.constant 0 : index
    %c0_4 = arith.constant 0 : index
    %3 = vector.load %arg3[%c0_3, %c0_4] : memref<1x128xf32, #tpu.memory_space<vmem>>, vector<1x128xf32>
    %4 = vector.broadcast %3 : vector<1x128xf32> to vector<32x128xf32>
    %5 = arith.addf %2, %4 : vector<32x128xf32>
    %6 = math.tanh %5 : vector<32x128xf32>
    %7 = arith.truncf %6 : vector<32x128xf32> to vector<32x128xbf16>
    %c0_5 = arith.constant 0 : index
    %c0_6 = arith.constant 0 : index
    %8 = vector.load %arg4[%c0_5, %c0_6] : memref<32x128xbf16, #tpu.memory_space<vmem>>, vector<32x128xbf16>
    tpu.vector_store %arg4[%c0_5, %c0_6], %7 {strides = array<i32>} : memref<32x128xbf16, #tpu.memory_space<vmem>>, vector<32x128xbf16>,
    return
  }
  func.func @transform_0(%arg0: i32) -> (i32, i32) {
    %c0_i32 = arith.constant 0 : i32
    %c0_i32_0 = arith.constant 0 : i32
    return %arg0, %c0_i32 : i32, i32
  }
  func.func @transform_1(%arg0: i32) -> (i32, i32) {
    %c0_i32 = arith.constant 0 : i32
    %c0_i32_0 = arith.constant 0 : i32
    %c0_i32_1 = arith.constant 0 : i32
    return %c0_i32, %c0_i32_0 : i32, i32
  }
  func.func @transform_2(%arg0: i32) -> (i32, i32) {
    %c0_i32 = arith.constant 0 : i32
    %c0_i32_0 = arith.constant 0 : i32
    %c0_i32_1 = arith.constant 0 : i32
    return %c0_i32, %c0_i32_0 : i32, i32
  }
  func.func @transform_3(%arg0: i32) -> (i32, i32) {
    %c0_i32 = arith.constant 0 : i32
    %c0_i32_0 = arith.constant 0 : i32
    return %arg0, %c0_i32 : i32, i32
  }
}

module attributes {stable_mosaic.version = 11 : i64} {
  func.func @_matmul_bias_tanh_kernel(%arg0: i32, %arg1: memref<16x256xbf16, #tpu.memory_space<vmem>>, %arg2: memref<256x128xbf16, #tpu.memory_space<vmem>>, %arg3: memref<1x128xf32, #tpu.memory_space<vmem>>, %arg4: memref<16x128xf32, #tpu.memory_space<vmem>>) attributes {dimension_semantics = [#tpu.dimension_semantics<parallel>], iteration_bounds = array<i64: 1>, scalar_prefetch = 0 : i64, scratch_operands = 0 : i64, tpu.core_type = #tpu.core_type<tc>, window_params = [{transform_indices = @transform_0, window_bounds = array<i64: 16, 256>}, {pipeline_mode = #tpu.pipeline_mode<synchronous>, transform_indices = @transform_1, window_bounds = array<i64: 256, 128>}, {pipeline_mode = #tpu.pipeline_mode<synchronous>, transform_indices = @transform_2, window_bounds = array<i64: 1, 128>}, {transform_indices = @transform_3, window_bounds = array<i64: 16, 128>}]} {
    %c0 = arith.constant 0 : index
    %c0_0 = arith.constant 0 : index
    %0 = vector.load %arg1[%c0, %c0_0] : memref<16x256xbf16, #tpu.memory_space<vmem>>, vector<16x256xbf16>
    %c0_1 = arith.constant 0 : index
    %c0_2 = arith.constant 0 : index
    %1 = vector.load %arg2[%c0_1, %c0_2] : memref<256x128xbf16, #tpu.memory_space<vmem>>, vector<256x128xbf16>
    %cst = arith.constant dense<0.000000e+00> : vector<16x128xf32>
    %2 = tpu.matmul %0, %1, %cst {dimension_numbers = #tpu.dot_dimension_numbers<[1], [0], [0], [1], [0, 0, 1, 1], [], []>} : vector<16x256xbf16>, vector<256x128xbf16>, vector<16x128xf32> -> vector<16x128xf32>
    %c0_3 = arith.constant 0 : index
    %c0_4 = arith.constant 0 : index
    %3 = vector.load %arg3[%c0_3, %c0_4] : memref<1x128xf32, #tpu.memory_space<vmem>>, vector<1x128xf32>
    %4 = vector.broadcast %3 : vector<1x128xf32> to vector<16x128xf32>
    %5 = arith.addf %2, %4 : vector<16x128xf32>
    %6 = math.tanh %5 : vector<16x128xf32>
    %c0_5 = arith.constant 0 : index
    %c0_6 = arith.constant 0 : index
    %7 = vector.load %arg4[%c0_5, %c0_6] : memref<16x128xf32, #tpu.memory_space<vmem>>, vector<16x128xf32>
    tpu.vector_store %arg4[%c0_5, %c0_6], %6 {strides = array<i32>} : memref<16x128xf32, #tpu.memory_space<vmem>>, vector<16x128xf32>,
    return
  }
  func.func @transform_0(%arg0: i32) -> (i32, i32) {
    %c0_i32 = arith.constant 0 : i32
    %c0_i32_0 = arith.constant 0 : i32
    return %arg0, %c0_i32 : i32, i32
  }
  func.func @transform_1(%arg0: i32) -> (i32, i32) {
    %c0_i32 = arith.constant 0 : i32
    %c0_i32_0 = arith.constant 0 : i32
    %c0_i32_1 = arith.constant 0 : i32
    return %c0_i32, %c0_i32_0 : i32, i32
  }
  func.func @transform_2(%arg0: i32) -> (i32, i32) {
    %c0_i32 = arith.constant 0 : i32
    %c0_i32_0 = arith.constant 0 : i32
    %c0_i32_1 = arith.constant 0 : i32
    return %c0_i32, %c0_i32_0 : i32, i32
  }
  func.func @transform_3(%arg0: i32) -> (i32, i32) {
    %c0_i32 = arith.constant 0 : i32
    %c0_i32_0 = arith.constant 0 : i32
    return %arg0, %c0_i32 : i32, i32
  }
}

module attributes {stable_mosaic.version = 11 : i64} {
  func.func @_matmul_bias_tanh_kernel(%arg0: i32, %arg1: memref<16x2048xbf16, #tpu.memory_space<vmem>>, %arg2: memref<2048x256xbf16, #tpu.memory_space<vmem>>, %arg3: memref<1x256xf32, #tpu.memory_space<vmem>>, %arg4: memref<16x256xbf16, #tpu.memory_space<vmem>>) attributes {dimension_semantics = [#tpu.dimension_semantics<parallel>], iteration_bounds = array<i64: 1>, scalar_prefetch = 0 : i64, scratch_operands = 0 : i64, tpu.core_type = #tpu.core_type<tc>, window_params = [{transform_indices = @transform_0, window_bounds = array<i64: 16, 2048>}, {pipeline_mode = #tpu.pipeline_mode<synchronous>, transform_indices = @transform_1, window_bounds = array<i64: 2048, 256>}, {pipeline_mode = #tpu.pipeline_mode<synchronous>, transform_indices = @transform_2, window_bounds = array<i64: 1, 256>}, {transform_indices = @transform_3, window_bounds = array<i64: 16, 256>}]} {
    %c0 = arith.constant 0 : index
    %c0_0 = arith.constant 0 : index
    %0 = vector.load %arg1[%c0, %c0_0] : memref<16x2048xbf16, #tpu.memory_space<vmem>>, vector<16x2048xbf16>
    %c0_1 = arith.constant 0 : index
    %c0_2 = arith.constant 0 : index
    %1 = vector.load %arg2[%c0_1, %c0_2] : memref<2048x256xbf16, #tpu.memory_space<vmem>>, vector<2048x256xbf16>
    %cst = arith.constant dense<0.000000e+00> : vector<16x256xf32>
    %2 = tpu.matmul %0, %1, %cst {dimension_numbers = #tpu.dot_dimension_numbers<[1], [0], [0], [1], [0, 0, 1, 1], [], []>} : vector<16x2048xbf16>, vector<2048x256xbf16>, vector<16x256xf32> -> vector<16x256xf32>
    %c0_3 = arith.constant 0 : index
    %c0_4 = arith.constant 0 : index
    %3 = vector.load %arg3[%c0_3, %c0_4] : memref<1x256xf32, #tpu.memory_space<vmem>>, vector<1x256xf32>
    %4 = vector.broadcast %3 : vector<1x256xf32> to vector<16x256xf32>
    %5 = arith.addf %2, %4 : vector<16x256xf32>
    %6 = math.tanh %5 : vector<16x256xf32>
    %7 = arith.truncf %6 : vector<16x256xf32> to vector<16x256xbf16>
    %c0_5 = arith.constant 0 : index
    %c0_6 = arith.constant 0 : index
    %8 = vector.load %arg4[%c0_5, %c0_6] : memref<16x256xbf16, #tpu.memory_space<vmem>>, vector<16x256xbf16>
    tpu.vector_store %arg4[%c0_5, %c0_6], %7 {strides = array<i32>} : memref<16x256xbf16, #tpu.memory_space<vmem>>, vector<16x256xbf16>,
    return
  }
  func.func @transform_0(%arg0: i32) -> (i32, i32) {
    %c0_i32 = arith.constant 0 : i32
    %c0_i32_0 = arith.constant 0 : i32
    return %arg0, %c0_i32 : i32, i32
  }
  func.func @transform_1(%arg0: i32) -> (i32, i32) {
    %c0_i32 = arith.constant 0 : i32
    %c0_i32_0 = arith.constant 0 : i32
    %c0_i32_1 = arith.constant 0 : i32
    return %c0_i32, %c0_i32_0 : i32, i32
  }
  func.func @transform_2(%arg0: i32) -> (i32, i32) {
    %c0_i32 = arith.constant 0 : i32
    %c0_i32_0 = arith.constant 0 : i32
    %c0_i32_1 = arith.constant 0 : i32
    return %c0_i32, %c0_i32_0 : i32, i32
  }
  func.func @transform_3(%arg0: i32) -> (i32, i32) {
    %c0_i32 = arith.constant 0 : i32
    %c0_i32_0 = arith.constant 0 : i32
    return %arg0, %c0_i32 : i32, i32
  }
}

</mosaic_0001>

<bundles_post_ra>
// kernel: conv_forward.5
= control target key start
LH: loop header
LB: loop body
LE: loop exit
PB: predicated region body
PF: predicated region fallthrough
CT: control target
= control target key end

     0   :  { %s2018_s12 = smov 0   ;;  %s2020_s13 = smov 0   ;;  %s2379_s0 = inlined_call_operand.vmem [shape: bf16[1058,64], index: 0, kind: input, shape index: {}]   ;;  %s2380_s1 = inlined_call_operand.vmem [shape: bf16[64,128], index: 1, kind: input, shape index: {}]   ;;  %s2381_s2 = inlined_call_operand.vmem [shape: f32[1,128], index: 2, kind: input, shape index: {}]   ;;  %s2382_s3 = inlined_call_operand.vmem [shape: bf16[1058,128], index: 3, kind: output, shape index: {}]  }
   0x1   :  { %s2022_s14 = smov 0  }
   0x2 LB: > { %s2031_s15 = sadd.s32 4294967295, %s1964_s14   ;;  %s2033_s16 = sadd.s32 1, %s1964_s14   ;;  %s1964_s14 = sphi %s2022_s14, %s2391_s14   ;;  %s1960_s13 = sphi %s2020_s13, %s2390_s13   ;;  %s1956_s12 = sphi %s2018_s12, %s2389_s12  }
   0x3   : > { %s85_s17 = ssub.s32 %s1964_s14, %s2033_s16  ;;  %s88_s18 = sadd.s32 1, %s1960_s13 }
   0x4   : > { %p86_p0 = scmp.eq.s32.totalorder %s85_s17, 0  ;;  %p98_p1 = scmp.ne.s32.totalorder %s1960_s13, %s1956_s12 }
   0x5   : > { %p99_p2 = scmp.eq.s32.totalorder %s2031_s15, 2  ;;  %p1254_p3 = scmp.ge.s32.totalorder %s1964_s14, 1 }
   0x6   : > { %s2041_s19 = scalar_select %p86_p0, %s1960_s13, %s88_s18  }
   0x7   : > { %p2043_p4 = por %p99_p2, %p98_p1  ;;  %p146_p5 = scmp.lt.s32.totalorder %s1964_s14, 4 }
   0x9   : > { %p147_p6 = pnand %p1254_p3, %p146_p5 }
   0xa   : > { %s2051_s23 = sshll.u32 (!%p147_p6), %s2031_s15, 6  ;;  %s170_s10 = sand.u32 (!%p147_p6), 1, %s1956_s12  }
   0xb   : > { %150 = sbr.rel (%p147_p6) target bundleno = 362 (0x16a), region = 32  ;;  %p178_p7 = scmp.lt.s32.totalorder (!%p147_p6), %s2051_s23, 132 }
   0xc   : > { %s1255_s11 = sshll.u32 (!%p147_p6), %s170_s10, 8 }
   0xd   : > { %s2147_s12 = scalar_lea.vmem (!%p147_p6), [#allocation2], %s1255_s11  }
  0x10   : > { %v1486_v0 = vld [vmem:[%s2380_s1 + $0x18] sm:$0xff]  ;;  %v1485_v1 = vld [vmem:[%s2380_s1 + $0x10] sm:$0xff]  ;;  %s179_s26 = scalar_select %p178_p7, %s2051_s23, 132  ;;  %v1484_v2 = vld [vmem:[%s2380_s1 + $0x8] sm:$0xff]  ;;  %vm453_vm0 = vcmask 523264  }
  0x11   : > { %554 = vmatpush.bf16.msra.mxu0 %v1486_v0  ;;  %1681 = vmatpush.bf16.msra.mxu1 %v1486_v0  ;;  %v1483_v3 = vld [vmem:[%s2380_s1] sm:$0xff]  ;;  %s919_s14 = ssub.s32 (%p2043_p4), 133, %s2051_s23  ;;  %s1487_s17 = sshll.u32 (%p2043_p4), %s2031_s15, 8 }
  0x12   : > { %1682 = vmatpush.bf16.msra.mxu2 %v1486_v0  ;;  %1683 = vmatpush.bf16.msra.mxu3 %v1486_v0  ;;  %s1257_s29 = sshll.u32 %s179_s26, 2  ;;  %v2136_v38 = vld [vmem:[%s2381_s2] ss:$0 sm:$0xff]  ;;  %p920_p8 = scmp.lt.s32.totalorder (%p2043_p4), %s919_s14, 64 }
  0x13   : > { %s2067_s7 = scalar_lea.vmem %s2379_s0, %s1257_s29  ;;  %s2244_s22 = scalar_lea.vmem (%p2043_p4), %s2382_s3, %s1487_s17  }
  0x14   : > { %v1451_v4 = vld [vmem:[%s2067_s7] sm:$0xff]  ;;  %v1452_v8 = vld [vmem:[%s2067_s7 + $0x8] sm:$0xff]  ;;  %v1453_v12 = vld [vmem:[%s2067_s7 + $0x10] sm:$0xff] }
  0x15   : > { %555 = vmatpush.bf16.msra.mxu0 %v1485_v1  ;;  %1684 = vmatpush.bf16.msra.mxu1 %v1485_v1  ;;  %v1459_v5 = vld [vmem:[%s2067_s7 + $0x40] sm:$0xff]  ;;  %v1460_v9 = vld [vmem:[%s2067_s7 + $0x48] sm:$0xff]  ;;  %v1461_v13 = vld [vmem:[%s2067_s7 + $0x50] sm:$0xff] }
  0x16   : > { %1685 = vmatpush.bf16.msra.mxu2 %v1485_v1  ;;  %1686 = vmatpush.bf16.msra.mxu3 %v1485_v1  ;;  %v1467_v6 = vld [vmem:[%s2067_s7 + $0x80] sm:$0xff]  ;;  %v1468_v10 = vld [vmem:[%s2067_s7 + $0x88] sm:$0xff]  ;;  %v1469_v14 = vld [vmem:[%s2067_s7 + $0x90] sm:$0xff] }
  0x17   : > { %v1475_v7 = vld [vmem:[%s2067_s7 + $0xc0] sm:$0xff]  ;;  %v1476_v11 = vld [vmem:[%s2067_s7 + $0xc8] sm:$0xff]  ;;  %v1477_v15 = vld [vmem:[%s2067_s7 + $0xd0] sm:$0xff] }
  0x18   : > { %v1454_v16 = vld [vmem:[%s2067_s7 + $0x18] sm:$0xff]  ;;  %v1455_v20 = vld [vmem:[%s2067_s7 + $0x20] sm:$0xff]  ;;  %v1456_v24 = vld [vmem:[%s2067_s7 + $0x28] sm:$0xff] }
  0x19   : > { %556 = vmatpush.bf16.msra.mxu0 %v1484_v2  ;;  %1687 = vmatpush.bf16.msra.mxu1 %v1484_v2  ;;  %v1462_v17 = vld [vmem:[%s2067_s7 + $0x58] sm:$0xff]  ;;  %v1463_v21 = vld [vmem:[%s2067_s7 + $0x60] sm:$0xff]  ;;  %v1464_v25 = vld [vmem:[%s2067_s7 + $0x68] sm:$0xff] }
  0x1a   : > { %1688 = vmatpush.bf16.msra.mxu2 %v1484_v2  ;;  %1689 = vmatpush.bf16.msra.mxu3 %v1484_v2  ;;  %v1470_v18 = vld [vmem:[%s2067_s7 + $0x98] sm:$0xff]  ;;  %v1471_v22 = vld [vmem:[%s2067_s7 + $0xa0] sm:$0xff]  ;;  %v1472_v26 = vld [vmem:[%s2067_s7 + $0xa8] sm:$0xff] }
  0x1b   : > { %v1478_v19 = vld [vmem:[%s2067_s7 + $0xd8] sm:$0xff]  ;;  %v1479_v23 = vld [vmem:[%s2067_s7 + $0xe0] sm:$0xff]  ;;  %v1480_v27 = vld [vmem:[%s2067_s7 + $0xe8] sm:$0xff] }
  0x1c   : > { %v1457_v28 = vld [vmem:[%s2067_s7 + $0x30] sm:$0xff]  ;;  %v1458_v32 = vld [vmem:[%s2067_s7 + $0x38] sm:$0xff] }
  0x1d   : > { %557 = vmatpush.bf16.msra.mxu0 %v1483_v3  ;;  %1690 = vmatpush.bf16.msra.mxu1 %v1483_v3  ;;  %v1465_v29 = vld [vmem:[%s2067_s7 + $0x70] sm:$0xff]  ;;  %v1466_v33 = vld [vmem:[%s2067_s7 + $0x78] sm:$0xff] }
  0x1e   : > { %1691 = vmatpush.bf16.msra.mxu2 %v1483_v3  ;;  %1692 = vmatpush.bf16.msra.mxu3 %v1483_v3  ;;  %v1473_v30 = vld [vmem:[%s2067_s7 + $0xb0] sm:$0xff]  ;;  %v1474_v34 = vld [vmem:[%s2067_s7 + $0xb8] sm:$0xff] }
  0x1f   : > { %v1481_v31 = vld [vmem:[%s2067_s7 + $0xf0] sm:$0xff]  ;;  %v1482_v35 = vld [vmem:[%s2067_s7 + $0xf8] sm:$0xff] }
  0x20   : > { %1402 = vmatmul.msk.bf16.vlgmr.msra.gmra.mxu0 %vm453_vm0, %v1451_v4  ;;  %1410 = vmatmul.msk.bf16.vlgmr.msra.gmra.mxu1 %vm453_vm0, %v1459_v5 }
  0x21   : > { %1418 = vmatmul.msk.bf16.vlgmr.msra.gmra.mxu2 %vm453_vm0, %v1467_v6  ;;  %1426 = vmatmul.msk.bf16.vlgmr.msra.gmra.mxu3 %vm453_vm0, %v1475_v7 }
  0x30   : > { %1403 = vmatmul.msk.bf16.gmra.mxu0 %vm453_vm0, %v1452_v8  ;;  %1411 = vmatmul.msk.bf16.gmra.mxu1 %vm453_vm0, %v1460_v9 }
  0x31   : > { %1419 = vmatmul.msk.bf16.gmra.mxu2 %vm453_vm0, %v1468_v10  ;;  %1427 = vmatmul.msk.bf16.gmra.mxu3 %vm453_vm0, %v1476_v11 }
  0x40   : > { %1404 = vmatmul.msk.bf16.gmra.mxu0 %vm453_vm0, %v1453_v12  ;;  %1412 = vmatmul.msk.bf16.gmra.mxu1 %vm453_vm0, %v1461_v13 }
  0x41   : > { %1420 = vmatmul.msk.bf16.gmra.mxu2 %vm453_vm0, %v1469_v14  ;;  %1428 = vmatmul.msk.bf16.gmra.mxu3 %vm453_vm0, %v1477_v15 }
  0x50   : > { %1405 = vmatmul.msk.bf16.gmra.mxu0 %vm453_vm0, %v1454_v16  ;;  %1413 = vmatmul.msk.bf16.gmra.mxu1 %vm453_vm0, %v1462_v17 }
  0x51   : > { %1421 = vmatmul.msk.bf16.gmra.mxu2 %vm453_vm0, %v1470_v18  ;;  %1429 = vmatmul.msk.bf16.gmra.mxu3 %vm453_vm0, %v1478_v19 }
  0x60   : > { %1406 = vmatmul.msk.bf16.gmra.mxu0 %vm453_vm0, %v1455_v20  ;;  %1414 = vmatmul.msk.bf16.gmra.mxu1 %vm453_vm0, %v1463_v21 }
  0x61   : > { %1422 = vmatmul.msk.bf16.gmra.mxu2 %vm453_vm0, %v1471_v22  ;;  %1430 = vmatmul.msk.bf16.gmra.mxu3 %vm453_vm0, %v1479_v23 }
  0x70   : > { %1407 = vmatmul.msk.bf16.gmra.mxu0 %vm453_vm0, %v1456_v24  ;;  %1415 = vmatmul.msk.bf16.gmra.mxu1 %vm453_vm0, %v1464_v25 }
  0x71   : > { %1423 = vmatmul.msk.bf16.gmra.mxu2 %vm453_vm0, %v1472_v26  ;;  %1431 = vmatmul.msk.bf16.gmra.mxu3 %vm453_vm0, %v1480_v27 }
  0x80   : > { %1408 = vmatmul.msk.bf16.gmra.mxu0 %vm453_vm0, %v1457_v28  ;;  %1416 = vmatmul.msk.bf16.gmra.mxu1 %vm453_vm0, %v1465_v29 }
  0x81   : > { %1424 = vmatmul.msk.bf16.gmra.mxu2 %vm453_vm0, %v1473_v30  ;;  %1432 = vmatmul.msk.bf16.gmra.mxu3 %vm453_vm0, %v1481_v31 }
  0x90   : > { %1409 = vmatmul.msk.bf16.gmra.mxu0 %vm453_vm0, %v1458_v32  ;;  %1417 = vmatmul.msk.bf16.gmra.mxu1 %vm453_vm0, %v1466_v33 }
  0x91   : > { %1425 = vmatmul.msk.bf16.gmra.mxu2 %vm453_vm0, %v1474_v34  ;;  %1433 = vmatmul.msk.bf16.gmra.mxu3 %vm453_vm0, %v1482_v35 }
  0x9d   : > { %v559_v36 = vpop.f32.mrf.mxu0  ;;  %v599_v37 = vpop.f32.mrf.mxu1 }
  0x9e   : > { %v560_v39 = vadd.f32 %v2136_v38, %v559_v36  ;;  %v600_v40 = vadd.f32 %v2136_v38, %v599_v37 }
  0xa0   : > { %1782 = vtanh.f32 %v560_v39 }
  0xa1   : > { %1784 = vtanh.f32 %v600_v40 }
  0xa4   : > { %v639_v41 = vpop.f32.mrf.mxu2  ;;  %v679_v42 = vpop.f32.mrf.mxu3 }
  0xa5   : > { %v561_v43 = vpop.f32.mrf.mxu0  ;;  %v601_v44 = vpop.f32.mrf.mxu1  ;;  %v640_v47 = vadd.f32 %v2136_v38, %v639_v41  ;;  %v680_v48 = vadd.f32 %v2136_v38, %v679_v42 }
  0xa6   : > { %v562_v45 = vadd.f32 %v2136_v38, %v561_v43  ;;  %v602_v46 = vadd.f32 %v2136_v38, %v601_v44  ;;  %v1783_v51 = vpop.eup %1782 }
  0xa7   : > { %v1785_v56 = vpop.eup %1784 }
  0xa8   : > { %1786 = vtanh.f32 %v562_v45 }
  0xa9   : > { %1788 = vtanh.f32 %v602_v46 }
  0xaa   : > { %1790 = vtanh.f32 %v640_v47 }
  0xab   : > { %1792 = vtanh.f32 %v680_v48 }
  0xac   : > { %v641_v49 = vpop.f32.mrf.mxu2  ;;  %v681_v50 = vpop.f32.mrf.mxu3 }
  0xad   : > { %v642_v52 = vadd.f32 %v2136_v38, %v641_v49  ;;  %v682_v53 = vadd.f32 %v2136_v38, %v681_v50  ;;  %v564_v54 = vpop.f32.mrf.mxu0  ;;  %v604_v55 = vpop.f32.mrf.mxu1 }
  0xae   : > { %v1787_v57 = vpop.eup %1786  ;;  %v565_v62 = vadd.f32 %v2136_v38, %v564_v54  ;;  %v605_v0 = vadd.f32 %v2136_v38, %v604_v55 }
  0xaf   : > { %1794 = vtanh.f32 %v642_v52  ;;  %v1789_v58 = vpop.eup %1788  ;;  %v1493_v59 = vpack.c.bf16 %v1787_v57, %v1783_v51 }
  0xb0   : > { %1796 = vtanh.f32 %v682_v53  ;;  %v1533_v60 = vpack.c.bf16 %v1789_v58, %v1785_v56  ;;  %v1791_v61 = vpop.eup %1790 }
  0xb1   : > { %1494 = vst [vmem:[%s2147_s12] sm:$0xff] %v1493_v59   ;;  %v1793_v63 = vpop.eup %1792  ;;  %1798 = vtanh.f32 %v565_v62 }
  0xb2   : > { %1657 = vst [vmem:[%s2147_s12 + $0x40] sm:$0xff] %v1533_v60   ;;  %1800 = vtanh.f32 %v605_v0 }
  0xb4   : > { %v644_v1 = vpop.f32.mrf.mxu2  ;;  %v684_v2 = vpop.f32.mrf.mxu3 }
  0xb5   : > { %v1795_v3 = vpop.eup %1794  ;;  %v566_v4 = vpop.f32.mrf.mxu0  ;;  %v645_v11 = vadd.f32 %v2136_v38, %v644_v1  ;;  %v685_v12 = vadd.f32 %v2136_v38, %v684_v2 }
  0xb6   : > { %v606_v5 = vpop.f32.mrf.mxu1  ;;  %v1797_v6 = vpop.eup %1796  ;;  %v1573_v7 = vpack.c.bf16 %v1795_v3, %v1791_v61  ;;  %v567_v8 = vadd.f32 %v2136_v38, %v566_v4 }
  0xb7   : > { %v607_v9 = vadd.f32 %v2136_v38, %v606_v5  ;;  %v1613_v10 = vpack.c.bf16 %v1797_v6, %v1793_v63  ;;  %v1799_v15 = vpop.eup %1798 }
  0xb8   : > { %1665 = vst [vmem:[%s2147_s12 + $0x80] sm:$0xff] %v1573_v7   ;;  %1802 = vtanh.f32 %v567_v8  ;;  %v1801_v20 = vpop.eup %1800 }
  0xb9   : > { %1673 = vst [vmem:[%s2147_s12 + $0xc0] sm:$0xff] %v1613_v10   ;;  %1804 = vtanh.f32 %v607_v9 }
  0xba   : > { %1806 = vtanh.f32 %v645_v11 }
  0xbb   : > { %1808 = vtanh.f32 %v685_v12 }
  0xbc   : > { %v646_v13 = vpop.f32.mrf.mxu2  ;;  %v686_v14 = vpop.f32.mrf.mxu3 }
  0xbd   : > { %v647_v16 = vadd.f32 %v2136_v38, %v646_v13  ;;  %v687_v17 = vadd.f32 %v2136_v38, %v686_v14  ;;  %v569_v18 = vpop.f32.mrf.mxu0 }
  0xbe   : > { %v609_v19 = vpop.f32.mrf.mxu1  ;;  %v1803_v21 = vpop.eup %1802  ;;  %v570_v26 = vadd.f32 %v2136_v38, %v569_v18 }
  0xbf   : > { %1810 = vtanh.f32 %v647_v16  ;;  %v1805_v22 = vpop.eup %1804  ;;  %v1498_v23 = vpack.c.bf16 %v1803_v21, %v1799_v15  ;;  %v610_v28 = vadd.f32 %v2136_v38, %v609_v19 }
  0xc0   : > { %1812 = vtanh.f32 %v687_v17  ;;  %v1538_v24 = vpack.c.bf16 %v1805_v22, %v1801_v20  ;;  %v1807_v25 = vpop.eup %1806 }
  0xc1   : > { %1650 = vst [vmem:[%s2147_s12 + $0x8] sm:$0xff] %v1498_v23   ;;  %v1809_v27 = vpop.eup %1808  ;;  %1814 = vtanh.f32 %v570_v26 }
  0xc2   : > { %1658 = vst [vmem:[%s2147_s12 + $0x48] sm:$0xff] %v1538_v24   ;;  %1816 = vtanh.f32 %v610_v28 }
  0xc4   : > { %v649_v29 = vpop.f32.mrf.mxu2  ;;  %v689_v30 = vpop.f32.mrf.mxu3 }
  0xc5   : > { %v1811_v31 = vpop.eup %1810  ;;  %v571_v32 = vpop.f32.mrf.mxu0  ;;  %v650_v40 = vadd.f32 %v2136_v38, %v649_v29  ;;  %v690_v41 = vadd.f32 %v2136_v38, %v689_v30 }
  0xc6   : > { %v611_v33 = vpop.f32.mrf.mxu1  ;;  %v1813_v34 = vpop.eup %1812  ;;  %v1578_v35 = vpack.c.bf16 %v1811_v31, %v1807_v25  ;;  %v572_v36 = vadd.f32 %v2136_v38, %v571_v32 }
  0xc7   : > { %v612_v37 = vadd.f32 %v2136_v38, %v611_v33  ;;  %v1618_v39 = vpack.c.bf16 %v1813_v34, %v1809_v27  ;;  %v1815_v44 = vpop.eup %1814 }
  0xc8   : > { %1666 = vst [vmem:[%s2147_s12 + $0x88] sm:$0xff] %v1578_v35   ;;  %1818 = vtanh.f32 %v572_v36  ;;  %v1817_v49 = vpop.eup %1816 }
  0xc9   : > { %1674 = vst [vmem:[%s2147_s12 + $0xc8] sm:$0xff] %v1618_v39   ;;  %1820 = vtanh.f32 %v612_v37 }
  0xca   : > { %1822 = vtanh.f32 %v650_v40 }
  0xcb   : > { %1824 = vtanh.f32 %v690_v41 }
  0xcc   : > { %v651_v42 = vpop.f32.mrf.mxu2  ;;  %v691_v43 = vpop.f32.mrf.mxu3 }
  0xcd   : > { %v652_v45 = vadd.f32 %v2136_v38, %v651_v42  ;;  %v692_v46 = vadd.f32 %v2136_v38, %v691_v43  ;;  %v574_v47 = vpop.f32.mrf.mxu0 }
  0xce   : > { %v614_v48 = vpop.f32.mrf.mxu1  ;;  %v1819_v50 = vpop.eup %1818  ;;  %v575_v55 = vadd.f32 %v2136_v38, %v574_v47 }
  0xcf   : > { %1826 = vtanh.f32 %v652_v45  ;;  %v1821_v51 = vpop.eup %1820  ;;  %v1503_v52 = vpack.c.bf16 %v1819_v50, %v1815_v44  ;;  %v615_v57 = vadd.f32 %v2136_v38, %v614_v48 }
  0xd0   : > { %1828 = vtanh.f32 %v692_v46  ;;  %v1543_v53 = vpack.c.bf16 %v1821_v51, %v1817_v49  ;;  %v1823_v54 = vpop.eup %1822 }
  0xd1   : > { %1651 = vst [vmem:[%s2147_s12 + $0x10] sm:$0xff] %v1503_v52   ;;  %v1825_v56 = vpop.eup %1824  ;;  %1830 = vtanh.f32 %v575_v55 }
  0xd2   : > { %1659 = vst [vmem:[%s2147_s12 + $0x50] sm:$0xff] %v1543_v53   ;;  %1832 = vtanh.f32 %v615_v57 }
  0xd4   : > { %v654_v58 = vpop.f32.mrf.mxu2  ;;  %v694_v59 = vpop.f32.mrf.mxu3 }
  0xd5   : > { %v1827_v60 = vpop.eup %1826  ;;  %v576_v61 = vpop.f32.mrf.mxu0  ;;  %v655_v4 = vadd.f32 %v2136_v38, %v654_v58  ;;  %v695_v5 = vadd.f32 %v2136_v38, %v694_v59 }
  0xd6   : > { %v616_v62 = vpop.f32.mrf.mxu1  ;;  %v1829_v63 = vpop.eup %1828  ;;  %v1583_v0 = vpack.c.bf16 %v1827_v60, %v1823_v54  ;;  %v577_v1 = vadd.f32 %v2136_v38, %v576_v61 }
  0xd7   : > { %v617_v2 = vadd.f32 %v2136_v38, %v616_v62  ;;  %v1623_v3 = vpack.c.bf16 %v1829_v63, %v1825_v56  ;;  %v1831_v8 = vpop.eup %1830 }
  0xd8   : > { %1667 = vst [vmem:[%s2147_s12 + $0x90] sm:$0xff] %v1583_v0   ;;  %1834 = vtanh.f32 %v577_v1  ;;  %v1833_v13 = vpop.eup %1832 }
  0xd9   : > { %1675 = vst [vmem:[%s2147_s12 + $0xd0] sm:$0xff] %v1623_v3   ;;  %1836 = vtanh.f32 %v617_v2 }
  0xda   : > { %1838 = vtanh.f32 %v655_v4 }
  0xdb   : > { %1840 = vtanh.f32 %v695_v5 }
  0xdc   : > { %v656_v6 = vpop.f32.mrf.mxu2  ;;  %v696_v7 = vpop.f32.mrf.mxu3 }
  0xdd   : > { %v657_v9 = vadd.f32 %v2136_v38, %v656_v6  ;;  %v697_v10 = vadd.f32 %v2136_v38, %v696_v7  ;;  %v579_v11 = vpop.f32.mrf.mxu0 }
  0xde   : > { %v619_v12 = vpop.f32.mrf.mxu1  ;;  %v1835_v14 = vpop.eup %1834  ;;  %v580_v19 = vadd.f32 %v2136_v38, %v579_v11 }
  0xdf   : > { %1842 = vtanh.f32 %v657_v9  ;;  %v1837_v15 = vpop.eup %1836  ;;  %v1508_v16 = vpack.c.bf16 %v1835_v14, %v1831_v8  ;;  %v620_v21 = vadd.f32 %v2136_v38, %v619_v12 }
  0xe0   : > { %1844 = vtanh.f32 %v697_v10  ;;  %v1548_v17 = vpack.c.bf16 %v1837_v15, %v1833_v13  ;;  %v1839_v18 = vpop.eup %1838 }
  0xe1   : > { %1652 = vst [vmem:[%s2147_s12 + $0x18] sm:$0xff] %v1508_v16   ;;  %v1841_v20 = vpop.eup %1840  ;;  %1846 = vtanh.f32 %v580_v19 }
  0xe2   : > { %1660 = vst [vmem:[%s2147_s12 + $0x58] sm:$0xff] %v1548_v17   ;;  %1848 = vtanh.f32 %v620_v21 }
  0xe4   : > { %v659_v22 = vpop.f32.mrf.mxu2  ;;  %v699_v23 = vpop.f32.mrf.mxu3 }
  0xe5   : > { %v1843_v24 = vpop.eup %1842  ;;  %v581_v25 = vpop.f32.mrf.mxu0  ;;  %v660_v32 = vadd.f32 %v2136_v38, %v659_v22  ;;  %v700_v33 = vadd.f32 %v2136_v38, %v699_v23 }
  0xe6   : > { %v621_v26 = vpop.f32.mrf.mxu1  ;;  %v1845_v27 = vpop.eup %1844  ;;  %v1588_v28 = vpack.c.bf16 %v1843_v24, %v1839_v18  ;;  %v582_v29 = vadd.f32 %v2136_v38, %v581_v25 }
  0xe7   : > { %v622_v30 = vadd.f32 %v2136_v38, %v621_v26  ;;  %v1628_v31 = vpack.c.bf16 %v1845_v27, %v1841_v20  ;;  %v1847_v36 = vpop.eup %1846 }
  0xe8   : > { %1668 = vst [vmem:[%s2147_s12 + $0x98] sm:$0xff] %v1588_v28   ;;  %1850 = vtanh.f32 %v582_v29  ;;  %v1849_v42 = vpop.eup %1848 }
  0xe9   : > { %1676 = vst [vmem:[%s2147_s12 + $0xd8] sm:$0xff] %v1628_v31   ;;  %1852 = vtanh.f32 %v622_v30 }
  0xea   : > { %1854 = vtanh.f32 %v660_v32 }
  0xeb   : > { %1856 = vtanh.f32 %v700_v33 }
  0xec   : > { %v661_v34 = vpop.f32.mrf.mxu2  ;;  %v701_v35 = vpop.f32.mrf.mxu3 }
  0xed   : > { %v662_v37 = vadd.f32 %v2136_v38, %v661_v34  ;;  %v702_v39 = vadd.f32 %v2136_v38, %v701_v35  ;;  %v584_v40 = vpop.f32.mrf.mxu0 }
  0xee   : > { %v624_v41 = vpop.f32.mrf.mxu1  ;;  %v1851_v43 = vpop.eup %1850  ;;  %v585_v48 = vadd.f32 %v2136_v38, %v584_v40 }
  0xef   : > { %1858 = vtanh.f32 %v662_v37  ;;  %v1853_v44 = vpop.eup %1852  ;;  %v1513_v45 = vpack.c.bf16 %v1851_v43, %v1847_v36  ;;  %v625_v50 = vadd.f32 %v2136_v38, %v624_v41 }
  0xf0   : > { %1860 = vtanh.f32 %v702_v39  ;;  %v1553_v46 = vpack.c.bf16 %v1853_v44, %v1849_v42  ;;  %v1855_v47 = vpop.eup %1854 }
  0xf1   : > { %1653 = vst [vmem:[%s2147_s12 + $0x20] sm:$0xff] %v1513_v45   ;;  %v1857_v49 = vpop.eup %1856  ;;  %1862 = vtanh.f32 %v585_v48 }
  0xf2   : > { %1661 = vst [vmem:[%s2147_s12 + $0x60] sm:$0xff] %v1553_v46   ;;  %1864 = vtanh.f32 %v625_v50 }
  0xf4   : > { %v664_v51 = vpop.f32.mrf.mxu2  ;;  %v704_v52 = vpop.f32.mrf.mxu3 }
  0xf5   : > { %v1859_v53 = vpop.eup %1858  ;;  %v586_v54 = vpop.f32.mrf.mxu0  ;;  %v665_v61 = vadd.f32 %v2136_v38, %v664_v51  ;;  %v705_v62 = vadd.f32 %v2136_v38, %v704_v52 }
  0xf6   : > { %v626_v55 = vpop.f32.mrf.mxu1  ;;  %v1861_v56 = vpop.eup %1860  ;;  %v1593_v57 = vpack.c.bf16 %v1859_v53, %v1855_v47  ;;  %v587_v58 = vadd.f32 %v2136_v38, %v586_v54 }
  0xf7   : > { %v627_v59 = vadd.f32 %v2136_v38, %v626_v55  ;;  %v1633_v60 = vpack.c.bf16 %v1861_v56, %v1857_v49  ;;  %v1863_v1 = vpop.eup %1862 }
  0xf8   : > { %1669 = vst [vmem:[%s2147_s12 + $0xa0] sm:$0xff] %v1593_v57   ;;  %1866 = vtanh.f32 %v587_v58  ;;  %v1865_v6 = vpop.eup %1864 }
  0xf9   : > { %1677 = vst [vmem:[%s2147_s12 + $0xe0] sm:$0xff] %v1633_v60   ;;  %1868 = vtanh.f32 %v627_v59 }
  0xfa   : > { %1870 = vtanh.f32 %v665_v61 }
  0xfb   : > { %1872 = vtanh.f32 %v705_v62 }
  0xfc   : > { %v666_v63 = vpop.f32.mrf.mxu2  ;;  %v706_v0 = vpop.f32.mrf.mxu3 }
  0xfd   : > { %v667_v2 = vadd.f32 %v2136_v38, %v666_v63  ;;  %v707_v3 = vadd.f32 %v2136_v38, %v706_v0  ;;  %v589_v4 = vpop.f32.mrf.mxu0 }
  0xfe   : > { %v629_v5 = vpop.f32.mrf.mxu1  ;;  %v1867_v7 = vpop.eup %1866  ;;  %v590_v12 = vadd.f32 %v2136_v38, %v589_v4 }
  0xff   : > { %1874 = vtanh.f32 %v667_v2  ;;  %v1869_v8 = vpop.eup %1868  ;;  %v1518_v9 = vpack.c.bf16 %v1867_v7, %v1863_v1  ;;  %v630_v14 = vadd.f32 %v2136_v38, %v629_v5 }
 0x100   : > { %1876 = vtanh.f32 %v707_v3  ;;  %v1558_v10 = vpack.c.bf16 %v1869_v8, %v1865_v6  ;;  %v1871_v11 = vpop.eup %1870 }
 0x101   : > { %1654 = vst [vmem:[%s2147_s12 + $0x28] sm:$0xff] %v1518_v9   ;;  %v1873_v13 = vpop.eup %1872  ;;  %1878 = vtanh.f32 %v590_v12 }
 0x102   : > { %1662 = vst [vmem:[%s2147_s12 + $0x68] sm:$0xff] %v1558_v10   ;;  %1880 = vtanh.f32 %v630_v14 }
 0x104   : > { %v669_v15 = vpop.f32.mrf.mxu2  ;;  %v709_v16 = vpop.f32.mrf.mxu3 }
 0x105   : > { %v1875_v17 = vpop.eup %1874  ;;  %v591_v18 = vpop.f32.mrf.mxu0  ;;  %v670_v25 = vadd.f32 %v2136_v38, %v669_v15  ;;  %v710_v26 = vadd.f32 %v2136_v38, %v709_v16 }
 0x106   : > { %v631_v19 = vpop.f32.mrf.mxu1  ;;  %v1877_v20 = vpop.eup %1876  ;;  %v1598_v21 = vpack.c.bf16 %v1875_v17, %v1871_v11  ;;  %v592_v22 = vadd.f32 %v2136_v38, %v591_v18 }
 0x107   : > { %v632_v23 = vadd.f32 %v2136_v38, %v631_v19  ;;  %v1638_v24 = vpack.c.bf16 %v1877_v20, %v1873_v13  ;;  %v1879_v29 = vpop.eup %1878 }
 0x108   : > { %1670 = vst [vmem:[%s2147_s12 + $0xa8] sm:$0xff] %v1598_v21   ;;  %1882 = vtanh.f32 %v592_v22  ;;  %v1881_v34 = vpop.eup %1880 }
 0x109   : > { %1678 = vst [vmem:[%s2147_s12 + $0xe8] sm:$0xff] %v1638_v24   ;;  %1884 = vtanh.f32 %v632_v23 }
 0x10a   : > { %1886 = vtanh.f32 %v670_v25 }
 0x10b   : > { %1888 = vtanh.f32 %v710_v26 }
 0x10c   : > { %v671_v27 = vpop.f32.mrf.mxu2  ;;  %v711_v28 = vpop.f32.mrf.mxu3 }
 0x10d   : > { %v672_v30 = vadd.f32 %v2136_v38, %v671_v27  ;;  %v712_v31 = vadd.f32 %v2136_v38, %v711_v28  ;;  %v594_v32 = vpop.f32.mrf.mxu0 }
 0x10e   : > { %v634_v33 = vpop.f32.mrf.mxu1  ;;  %v1883_v35 = vpop.eup %1882  ;;  %v595_v41 = vadd.f32 %v2136_v38, %v594_v32 }
 0x10f   : > { %1890 = vtanh.f32 %v672_v30  ;;  %v1885_v36 = vpop.eup %1884  ;;  %v1523_v37 = vpack.c.bf16 %v1883_v35, %v1879_v29  ;;  %v635_v43 = vadd.f32 %v2136_v38, %v634_v33 }
 0x110   : > { %1892 = vtanh.f32 %v712_v31  ;;  %v1563_v39 = vpack.c.bf16 %v1885_v36, %v1881_v34  ;;  %v1887_v40 = vpop.eup %1886 }
 0x111   : > { %1655 = vst [vmem:[%s2147_s12 + $0x30] sm:$0xff] %v1523_v37   ;;  %v1889_v42 = vpop.eup %1888  ;;  %1894 = vtanh.f32 %v595_v41 }
 0x112   : > { %1663 = vst [vmem:[%s2147_s12 + $0x70] sm:$0xff] %v1563_v39   ;;  %1896 = vtanh.f32 %v635_v43 }
 0x114   : > { %v674_v44 = vpop.f32.mrf.mxu2  ;;  %v714_v45 = vpop.f32.mrf.mxu3 }
 0x115   : > { %v1891_v46 = vpop.eup %1890  ;;  %v596_v47 = vpop.f32.mrf.mxu0  ;;  %v675_v54 = vadd.f32 %v2136_v38, %v674_v44  ;;  %v715_v55 = vadd.f32 %v2136_v38, %v714_v45 }
 0x116   : > { %v636_v48 = vpop.f32.mrf.mxu1  ;;  %v1893_v49 = vpop.eup %1892  ;;  %v1603_v50 = vpack.c.bf16 %v1891_v46, %v1887_v40  ;;  %v597_v51 = vadd.f32 %v2136_v38, %v596_v47 }
 0x117   : > { %v637_v52 = vadd.f32 %v2136_v38, %v636_v48  ;;  %v1643_v53 = vpack.c.bf16 %v1893_v49, %v1889_v42  ;;  %v1895_v58 = vpop.eup %1894 }
 0x118   : > { %1671 = vst [vmem:[%s2147_s12 + $0xb0] sm:$0xff] %v1603_v50   ;;  %1898 = vtanh.f32 %v597_v51  ;;  %v1897_v61 = vpop.eup %1896 }
 0x119   : > { %1679 = vst [vmem:[%s2147_s12 + $0xf0] sm:$0xff] %v1643_v53   ;;  %1900 = vtanh.f32 %v637_v52 }
 0x11a   : > { %1902 = vtanh.f32 %v675_v54 }
 0x11b   : > { %1904 = vtanh.f32 %v715_v55 }
 0x11c   : > { %v676_v56 = vpop.f32.mrf.mxu2  ;;  %v716_v57 = vpop.f32.mrf.mxu3 }
 0x11d   : > { %v677_v59 = vadd.f32 %v2136_v38, %v676_v56  ;;  %v717_v60 = vadd.f32 %v2136_v38, %v716_v57 }
 0x11e   : > { %v1899_v62 = vpop.eup %1898 }
 0x11f   : > { %1906 = vtanh.f32 %v677_v59  ;;  %v1901_v63 = vpop.eup %1900  ;;  %v1528_v0 = vpack.c.bf16 %v1899_v62, %v1895_v58 }
 0x120   : > { %1908 = vtanh.f32 %v717_v60  ;;  %v1568_v1 = vpack.c.bf16 %v1901_v63, %v1897_v61  ;;  %v1903_v2 = vpop.eup %1902 }
 0x121   : > { %1656 = vst [vmem:[%s2147_s12 + $0x38] sm:$0xff] %v1528_v0   ;;  %v1905_v3 = vpop.eup %1904 }
 0x122   : > { %1664 = vst [vmem:[%s2147_s12 + $0x78] sm:$0xff] %v1568_v1  }
 0x125   : > { %v1907_v4 = vpop.eup %1906  ;;  %917 = sbr.rel (!%p2043_p4) target bundleno = 362 (0x16a), region = 36 }
 0x126   : > { %v1909_v5 = vpop.eup %1908  ;;  %v1608_v6 = vpack.c.bf16 %v1907_v4, %v1903_v2 }
 0x127   : > { %v1648_v7 = vpack.c.bf16 %v1909_v5, %v1905_v3 }
 0x128   : > { %1672 = vst [vmem:[%s2147_s12 + $0xb8] sm:$0xff] %v1608_v6  }
 0x129   : > { %1680 = vst [vmem:[%s2147_s12 + $0xf8] sm:$0xff] %v1648_v7  }
 0x12a   : > { %s2393_s14 = smov (!%p920_p8, %s919_s14), 64 }
 0x12b   : > { %s1436_s24 = sshll.u32 %s2393_s14, 2 }
 0x12c   : > { %p1439_p9 = scmp.eq.s32.totalorder %s1436_s24, 0 }
 0x12d   : > { %s2250_s25 = sshrl.u32 (!%p1439_p9), %s2393_s14, 5 }
 0x12e   : > { %928 = sbr.rel (%p1439_p9) target bundleno = 362 (0x16a), region = 40  ;;  %p1440_p10 = scmp.le.s32.totalorder (!%p1439_p9), %s2250_s25, 0 }
 0x133   : > { %1207 = sbr.rel (%p1440_p10) target bundleno = 345 (0x159), region = 112  ;;  %s2384_s15 = smov (!%p1440_p10), %s2244_s22 }
 0x134   : > { %s2385_s20 = smov (!%p1440_p10), %s2147_s12  ;;  %s2259_s23 = smov (!%p1440_p10), 0  }
 0x135   : > { %s2261_s26 = smov (!%p1440_p10), 0  }
 0x138 LB: >> { %v945_v38 = vld [vmem:[%s1972_s20] sm:$0xf]  ;;  %v947_v8 = vld [vmem:[%s1972_s20 + $0x4] sm:$0xf]  ;;  %v949_v9 = vld [vmem:[%s1972_s20 + $0x8] sm:$0xf]  ;;  %s1980_s26 = sphi %s2261_s26, %s939_s26   ;;  %s1976_s23 = sphi %s2259_s23, %s2388_s23   ;;  %s1972_s20 = sphi %s2385_s20, %s2387_s20   ;;  %s1968_s15 = sphi %s2384_s15, %s2386_s15  }
 0x139   : >> { %946 = vst [vmem:[%s1968_s15] sm:$0xf] %v945_v38  ;;  %v951_v10 = vld [vmem:[%s1972_s20 + $0xc] sm:$0xf]  ;;  %v953_v11 = vld [vmem:[%s1972_s20 + $0x10] sm:$0xf]  ;;  %s1009_s27 = sadd.s32 1, %s1976_s23 }
 0x13a   : >> { %948 = vst [vmem:[%s1968_s15 + $0x4] sm:$0xf] %v947_v8  ;;  %v955_v12 = vld [vmem:[%s1972_s20 + $0x14] sm:$0xf]  ;;  %v957_v13 = vld [vmem:[%s1972_s20 + $0x18] sm:$0xf]  ;;  %p1010_p11 = scmp.ge.s32.totalorder %s1009_s27, %s2250_s25 }
 0x13b   : >> { %950 = vst [vmem:[%s1968_s15 + $0x8] sm:$0xf] %v949_v9  ;;  %v959_v14 = vld [vmem:[%s1972_s20 + $0x1c] sm:$0xf]  ;;  %v961_v15 = vld [vmem:[%s1972_s20 + $0x20] sm:$0xf] }
 0x13c   : >> { %952 = vst [vmem:[%s1968_s15 + $0xc] sm:$0xf] %v951_v10  ;;  %v963_v16 = vld [vmem:[%s1972_s20 + $0x24] sm:$0xf]  ;;  %v965_v17 = vld [vmem:[%s1972_s20 + $0x28] sm:$0xf] }
 0x13d   : >> { %954 = vst [vmem:[%s1968_s15 + $0x10] sm:$0xf] %v953_v11  ;;  %v967_v18 = vld [vmem:[%s1972_s20 + $0x2c] sm:$0xf]  ;;  %v969_v19 = vld [vmem:[%s1972_s20 + $0x30] sm:$0xf] }
 0x13e   : >> { %956 = vst [vmem:[%s1968_s15 + $0x14] sm:$0xf] %v955_v12  ;;  %v971_v20 = vld [vmem:[%s1972_s20 + $0x34] sm:$0xf]  ;;  %v973_v21 = vld [vmem:[%s1972_s20 + $0x38] sm:$0xf] }
 0x13f   : >> { %958 = vst [vmem:[%s1968_s15 + $0x18] sm:$0xf] %v957_v13  ;;  %v975_v22 = vld [vmem:[%s1972_s20 + $0x3c] sm:$0xf]  ;;  %v977_v23 = vld [vmem:[%s1972_s20 + $0x40] sm:$0xf] }
 0x140   : >> { %960 = vst [vmem:[%s1968_s15 + $0x1c] sm:$0xf] %v959_v14  ;;  %v979_v24 = vld [vmem:[%s1972_s20 + $0x44] sm:$0xf]  ;;  %s2395_s27 = smov (%p1010_p11, %s1009_s27), 0  ;;  %s939_s26 = sadd.s32 1, %s1980_s26  }
 0x141   : >> { %962 = vst [vmem:[%s1968_s15 + $0x20] sm:$0xf] %v961_v15  ;;  %v981_v25 = vld [vmem:[%s1972_s20 + $0x48] sm:$0xf]  ;;  %v983_v26 = vld [vmem:[%s1972_s20 + $0x4c] sm:$0xf]  ;;  %p938_p12 = scmp.ge.s32.totalorder %s939_s26, %s2250_s25  ;;  %s2388_s23 = smov %s2395_s27 }
 0x142   : >> { %964 = vst [vmem:[%s1968_s15 + $0x24] sm:$0xf] %v963_v16  ;;  %s1441_s28 = sshll.u32 %s2395_s27, 7  ;;  %v985_v27 = vld [vmem:[%s1972_s20 + $0x50] sm:$0xf] }
 0x143   : >> { %966 = vst [vmem:[%s1968_s15 + $0x28] sm:$0xf] %v965_v17  ;;  %s2320_s29 = scalar_lea.vmem %s2147_s12, %s1441_s28 [#allocation2]   ;;  %s1015_s30 = scalar_lea.vmem %s2244_s22, %s1441_s28   ;;  %v987_v28 = vld [vmem:[%s1972_s20 + $0x54] sm:$0xf]  ;;  %v989_v29 = vld [vmem:[%s1972_s20 + $0x58] sm:$0xf] }
 0x144   : >> { %968 = vst [vmem:[%s1968_s15 + $0x2c] sm:$0xf] %v967_v18  ;;  %v991_v30 = vld [vmem:[%s1972_s20 + $0x5c] sm:$0xf]  ;;  %v993_v31 = vld [vmem:[%s1972_s20 + $0x60] sm:$0xf] }
 0x145   : >> { %970 = vst [vmem:[%s1968_s15 + $0x30] sm:$0xf] %v969_v19  ;;  %v995_v32 = vld [vmem:[%s1972_s20 + $0x64] sm:$0xf]  ;;  %v997_v33 = vld [vmem:[%s1972_s20 + $0x68] sm:$0xf] }
 0x146   : >> { %972 = vst [vmem:[%s1968_s15 + $0x34] sm:$0xf] %v971_v20  ;;  %v999_v34 = vld [vmem:[%s1972_s20 + $0x6c] sm:$0xf]  ;;  %v1001_v35 = vld [vmem:[%s1972_s20 + $0x70] sm:$0xf] }
 0x147   : >> { %974 = vst [vmem:[%s1968_s15 + $0x38] sm:$0xf] %v973_v21  ;;  %v1003_v36 = vld [vmem:[%s1972_s20 + $0x74] sm:$0xf]  ;;  %v1005_v37 = vld [vmem:[%s1972_s20 + $0x78] sm:$0xf] }
 0x148   : >> { %976 = vst [vmem:[%s1968_s15 + $0x3c] sm:$0xf] %v975_v22  ;;  %v1007_v39 = vld [vmem:[%s1972_s20 + $0x7c] sm:$0xf]  ;;  %s2387_s20 = smov %s2320_s29 }
 0x149   : >> { %978 = vst [vmem:[%s1968_s15 + $0x40] sm:$0xf] %v977_v23 }
 0x14a   : >> { %980 = vst [vmem:[%s1968_s15 + $0x44] sm:$0xf] %v979_v24 }
 0x14b   : >> { %982 = vst [vmem:[%s1968_s15 + $0x48] sm:$0xf] %v981_v25 }
 0x14c   : >> { %984 = vst [vmem:[%s1968_s15 + $0x4c] sm:$0xf] %v983_v26 }
 0x14d   : >> { %986 = vst [vmem:[%s1968_s15 + $0x50] sm:$0xf] %v985_v27 }
 0x14e   : >> { %988 = vst [vmem:[%s1968_s15 + $0x54] sm:$0xf] %v987_v28 }
 0x14f   : >> { %990 = vst [vmem:[%s1968_s15 + $0x58] sm:$0xf] %v989_v29 }
 0x150   : >> { %992 = vst [vmem:[%s1968_s15 + $0x5c] sm:$0xf] %v991_v30 }
 0x151   : >> { %994 = vst [vmem:[%s1968_s15 + $0x60] sm:$0xf] %v993_v31 }
 0x152   : >> { %996 = vst [vmem:[%s1968_s15 + $0x64] sm:$0xf] %v995_v32 }
 0x153   : >> { %998 = vst [vmem:[%s1968_s15 + $0x68] sm:$0xf] %v997_v33 }
 0x154   : >> { %1000 = vst [vmem:[%s1968_s15 + $0x6c] sm:$0xf] %v999_v34  ;;  %941 = sbr.rel (!%p938_p12) target bundleno = 312 (0x138), region = 118 }
 0x155   : >> { %1002 = vst [vmem:[%s1968_s15 + $0x70] sm:$0xf] %v1001_v35 }
 0x156   : >> { %1004 = vst [vmem:[%s1968_s15 + $0x74] sm:$0xf] %v1003_v36 }
 0x157   : >> { %1006 = vst [vmem:[%s1968_s15 + $0x78] sm:$0xf] %v1005_v37 }
 0x158   : >> { %1008 = vst [vmem:[%s1968_s15 + $0x7c] sm:$0xf] %v1007_v39  ;;  %s2386_s15 = smov %s1015_s30 }
 0x159 PF: > { %s2361_s4 = sand.u32 31, %s2393_s14   ;;  %s1488_s5 = sshll.u32 %s2250_s25, 7 }
 0x15a   : > { %s1020_s6 = scalar_lea.vmem %s2147_s12, %s1488_s5 [#allocation2]   ;;  %s1022_s7 = scalar_lea.vmem %s2244_s22, %s1488_s5  }
 0x15b   : > { %p1446_p13 = scmp.le.s32.totalorder %s2361_s4, 0 }
 0x15c   : > { %s1982_s8 = smov (!%p1446_p13), %s1022_s7   ;;  %s1986_s9 = smov (!%p1446_p13), %s1020_s6  }
 0x15d   : > { %1221 = sbr.rel (%p1446_p13) target bundleno = 362 (0x16a), region = 123  ;;  %s1990_s10 = smov (!%p1446_p13), 0  }
 0x15e   : > { %s1994_s11 = smov (!%p1446_p13), 0  }
 0x162 LB: >> { %v1032_v40 = vld [vmem:[%s1988_s9] sm:$0xf]  ;;  %s1034_s14 = sadd.s32 1, %s1992_s10  ;;  %s1026_s11 = sadd.s32 1, %s1996_s11   ;;  %s1996_s11 = sphi %s1994_s11, %s1026_s11   ;;  %s1992_s10 = sphi %s1990_s10, %s1991_s10   ;;  %s1988_s9 = sphi %s1986_s9, %s1039_s9   ;;  %s1984_s8 = sphi %s1982_s8, %s1040_s8  }
 0x163   : >> { %1033 = vst [vmem:[%s1984_s8] sm:$0xf] %v1032_v40  ;;  %p1035_p0 = scmp.ge.s32.totalorder %s1034_s14, %s2361_s4  ;;  %p1025_p1 = scmp.ge.s32.totalorder %s1026_s11, %s2361_s4 }
 0x165   : >> { %s2397_s14 = smov (%p1035_p0, %s1034_s14), 0  ;;  %1028 = sbr.rel (!%p1025_p1) target bundleno = 354 (0x162), region = 129 }
 0x166   : >> { %s1447_s12 = sshll.u32 %s2397_s14, 2  ;;  %s1991_s10 = smov %s2397_s14  }
 0x167   : >> { %s1039_s9 = scalar_lea.vmem %s1020_s6, %s1447_s12 [#allocation2]   ;;  %s1040_s8 = scalar_lea.vmem %s1022_s7, %s1447_s12  }
 0x16a PF: > { %p10_p2 = scmp.ge.s32.totalorder %s2033_s16, 5   ;;  %s2389_s12 = smov %s1960_s13 }
 0x16b   : > { %s2390_s13 = smov %s2041_s19  ;;  %s2391_s14 = smov %s2033_s16 }
 0x16c   :  { %12 = sbr.rel (!%p10_p2) target bundleno = 2 (0x2), region = 140 }

// kernel: conv_forward.6
= control target key start
LH: loop header
LB: loop body
LE: loop exit
PB: predicated region body
PF: predicated region fallthrough
CT: control target
= control target key end

     0   :  { %s2153_s0 = inlined_call_operand.vmem [shape: bf16[200,512], index: 0, kind: input, shape index: {}]   ;;  %s2154_s1 = inlined_call_operand.vmem [shape: bf16[512,128], index: 1, kind: input, shape index: {}]   ;;  %s2155_s2 = inlined_call_operand.vmem [shape: f32[1,128], index: 2, kind: input, shape index: {}]   ;;  %s2156_s3 = inlined_call_operand.vmem [shape: bf16[200,128], index: 3, kind: output, shape index: {}]  }
   0x1   :  { %v1500_v0 = vld [vmem:[%s2154_s1 + $0x38] sm:$0xff]  ;;  %v1499_v4 = vld [vmem:[%s2154_s1 + $0x30] sm:$0xff]  ;;  %v1498_v8 = vld [vmem:[%s2154_s1 + $0x28] sm:$0xff] }
   0x2   :  { %v1508_v1 = vld [vmem:[%s2154_s1 + $0x78] sm:$0xff]  ;;  %586 = vmatpush.bf16.msra.mxu0 %v1500_v0  ;;  %v1507_v5 = vld [vmem:[%s2154_s1 + $0x70] sm:$0xff]  ;;  %v1506_v9 = vld [vmem:[%s2154_s1 + $0x68] sm:$0xff] }
   0x3   :  { %v1516_v2 = vld [vmem:[%s2154_s1 + $0xb8] sm:$0xff]  ;;  %660 = vmatpush.bf16.msra.mxu1 %v1508_v1  ;;  %v1515_v6 = vld [vmem:[%s2154_s1 + $0xb0] sm:$0xff]  ;;  %v1514_v10 = vld [vmem:[%s2154_s1 + $0xa8] sm:$0xff] }
   0x4   :  { %v1524_v3 = vld [vmem:[%s2154_s1 + $0xf8] sm:$0xff]  ;;  %734 = vmatpush.bf16.msra.mxu2 %v1516_v2  ;;  %v1523_v7 = vld [vmem:[%s2154_s1 + $0xf0] sm:$0xff]  ;;  %v1522_v11 = vld [vmem:[%s2154_s1 + $0xe8] sm:$0xff] }
   0x5   :  { %808 = vmatpush.bf16.msra.mxu3 %v1524_v3  ;;  %v1497_v12 = vld [vmem:[%s2154_s1 + $0x20] sm:$0xff]  ;;  %v1496_v16 = vld [vmem:[%s2154_s1 + $0x18] sm:$0xff]  ;;  %v1495_v20 = vld [vmem:[%s2154_s1 + $0x10] sm:$0xff] }
   0x6   :  { %587 = vmatpush.bf16.msra.mxu0 %v1499_v4  ;;  %v1505_v13 = vld [vmem:[%s2154_s1 + $0x60] sm:$0xff]  ;;  %v1504_v17 = vld [vmem:[%s2154_s1 + $0x58] sm:$0xff]  ;;  %v1503_v21 = vld [vmem:[%s2154_s1 + $0x50] sm:$0xff] }
   0x7   :  { %661 = vmatpush.bf16.msra.mxu1 %v1507_v5  ;;  %v1513_v14 = vld [vmem:[%s2154_s1 + $0xa0] sm:$0xff]  ;;  %v1512_v18 = vld [vmem:[%s2154_s1 + $0x98] sm:$0xff]  ;;  %v1511_v22 = vld [vmem:[%s2154_s1 + $0x90] sm:$0xff] }
   0x8   :  { %735 = vmatpush.bf16.msra.mxu2 %v1515_v6  ;;  %v1521_v15 = vld [vmem:[%s2154_s1 + $0xe0] sm:$0xff]  ;;  %v1520_v19 = vld [vmem:[%s2154_s1 + $0xd8] sm:$0xff]  ;;  %v1519_v23 = vld [vmem:[%s2154_s1 + $0xd0] sm:$0xff] }
   0x9   :  { %809 = vmatpush.bf16.msra.mxu3 %v1523_v7  ;;  %v1494_v24 = vld [vmem:[%s2154_s1 + $0x8] sm:$0xff]  ;;  %v1493_v28 = vld [vmem:[%s2154_s1] sm:$0xff]  ;;  %v1443_v33 = vld [vmem:[%s2153_s0 + $0xc] sm:$0xf0] }
   0xa   :  { %588 = vmatpush.bf16.msra.mxu0 %v1498_v8  ;;  %v1502_v25 = vld [vmem:[%s2154_s1 + $0x48] sm:$0xff]  ;;  %v1501_v29 = vld [vmem:[%s2154_s1 + $0x40] sm:$0xff]  ;;  %v1109_v35 = vld [vmem:[%s2153_s0 + $0x10] sm:$0xf0] }
   0xb   :  { %662 = vmatpush.bf16.msra.mxu1 %v1506_v9  ;;  %v1510_v26 = vld [vmem:[%s2154_s1 + $0x88] sm:$0xff]  ;;  %v1509_v30 = vld [vmem:[%s2154_s1 + $0x80] sm:$0xff]  ;;  %v1444_v37 = vld [vmem:[%s2153_s0 + $0x14] sm:$0xf0] }
   0xc   :  { %736 = vmatpush.bf16.msra.mxu2 %v1514_v10  ;;  %v1518_v27 = vld [vmem:[%s2154_s1 + $0xc8] sm:$0xff]  ;;  %v1517_v31 = vld [vmem:[%s2154_s1 + $0xc0] sm:$0xff]  ;;  %v1117_v39 = vld [vmem:[%s2153_s0 + $0x18] sm:$0xf0] }
   0xd   :  { %810 = vmatpush.bf16.msra.mxu3 %v1522_v11  ;;  %v1107_v32 = vld [vmem:[%s2153_s0] sm:$0xf]  ;;  %v1441_v34 = vld [vmem:[%s2153_s0 + $0x4] sm:$0xf]  ;;  %v1115_v36 = vld [vmem:[%s2153_s0 + $0x8] sm:$0xf] }
   0xe   :  { %589 = vmatpush.bf16.msra.mxu0 %v1497_v12  ;;  %v1442_v38 = vld [vmem:[%s2153_s0 + $0xc] sm:$0xf]  ;;  %v1108_v40 = vor.u32 %v1443_v33, %v1107_v32  ;;  %v1112_v41 = vor.u32 %v1441_v34, %v1109_v35  ;;  %v1116_v42 = vor.u32 %v1444_v37, %v1115_v36  ;;  %v1123_v44 = vld [vmem:[%s2153_s0 + $0x20] sm:$0xf]  ;;  %v1447_v45 = vld [vmem:[%s2153_s0 + $0x2c] sm:$0xf0] }
   0xf   :  { %663 = vmatpush.bf16.msra.mxu1 %v1505_v13  ;;  %v1120_v43 = vor.u32 %v1442_v38, %v1117_v39  ;;  %v1445_v46 = vld [vmem:[%s2153_s0 + $0x24] sm:$0xf]  ;;  %v1125_v47 = vld [vmem:[%s2153_s0 + $0x30] sm:$0xf0]  ;;  %v1131_v48 = vld [vmem:[%s2153_s0 + $0x28] sm:$0xf]  ;;  %v1124_v52 = vor.u32 %v1447_v45, %v1123_v44 }
  0x10   :  { %737 = vmatpush.bf16.msra.mxu2 %v1513_v14  ;;  %v1448_v49 = vld [vmem:[%s2153_s0 + $0x34] sm:$0xf0]  ;;  %v1446_v50 = vld [vmem:[%s2153_s0 + $0x2c] sm:$0xf]  ;;  %v1133_v51 = vld [vmem:[%s2153_s0 + $0x38] sm:$0xf0]  ;;  %v1128_v53 = vor.u32 %v1445_v46, %v1125_v47 }
  0x11   :  { %811 = vmatpush.bf16.msra.mxu3 %v1521_v15  ;;  %v1132_v54 = vor.u32 %v1448_v49, %v1131_v48  ;;  %v1136_v55 = vor.u32 %v1446_v50, %v1133_v51  ;;  %v1139_v56 = vld [vmem:[%s2153_s0 + $0x40] sm:$0xf]  ;;  %v1451_v57 = vld [vmem:[%s2153_s0 + $0x4c] sm:$0xf0]  ;;  %v1449_v58 = vld [vmem:[%s2153_s0 + $0x44] sm:$0xf] }
  0x12   :  { %590 = vmatpush.bf16.msra.mxu0 %v1496_v16  ;;  %v1141_v59 = vld [vmem:[%s2153_s0 + $0x50] sm:$0xf0]  ;;  %v1147_v60 = vld [vmem:[%s2153_s0 + $0x48] sm:$0xf]  ;;  %v1452_v61 = vld [vmem:[%s2153_s0 + $0x54] sm:$0xf0]  ;;  %v1140_v0 = vor.u32 %v1451_v57, %v1139_v56 }
  0x13   :  { %664 = vmatpush.bf16.msra.mxu1 %v1504_v17  ;;  %v1450_v62 = vld [vmem:[%s2153_s0 + $0x4c] sm:$0xf]  ;;  %v1149_v63 = vld [vmem:[%s2153_s0 + $0x58] sm:$0xf0]  ;;  %v1144_v1 = vor.u32 %v1449_v58, %v1141_v59  ;;  %v1148_v2 = vor.u32 %v1452_v61, %v1147_v60  ;;  %v1155_v4 = vld [vmem:[%s2153_s0 + $0x60] sm:$0xf] }
  0x14   :  { %738 = vmatpush.bf16.msra.mxu2 %v1512_v18  ;;  %v1152_v3 = vor.u32 %v1450_v62, %v1149_v63  ;;  %v1455_v5 = vld [vmem:[%s2153_s0 + $0x6c] sm:$0xf0]  ;;  %v1453_v6 = vld [vmem:[%s2153_s0 + $0x64] sm:$0xf]  ;;  %v1157_v7 = vld [vmem:[%s2153_s0 + $0x70] sm:$0xf0] }
  0x15   :  { %812 = vmatpush.bf16.msra.mxu3 %v1520_v19  ;;  %v1163_v8 = vld [vmem:[%s2153_s0 + $0x68] sm:$0xf]  ;;  %v1456_v9 = vld [vmem:[%s2153_s0 + $0x74] sm:$0xf0]  ;;  %v1454_v10 = vld [vmem:[%s2153_s0 + $0x6c] sm:$0xf]  ;;  %v1156_v12 = vor.u32 %v1455_v5, %v1155_v4  ;;  %v1160_v13 = vor.u32 %v1453_v6, %v1157_v7 }
  0x16   :  { %591 = vmatpush.bf16.msra.mxu0 %v1495_v20  ;;  %v1165_v11 = vld [vmem:[%s2153_s0 + $0x78] sm:$0xf0]  ;;  %v1164_v14 = vor.u32 %v1456_v9, %v1163_v8  ;;  %v1171_v16 = vld [vmem:[%s2153_s0 + $0x80] sm:$0xf]  ;;  %v1459_v17 = vld [vmem:[%s2153_s0 + $0x8c] sm:$0xf0] }
  0x17   :  { %665 = vmatpush.bf16.msra.mxu1 %v1503_v21  ;;  %v1168_v15 = vor.u32 %v1454_v10, %v1165_v11  ;;  %v1457_v18 = vld [vmem:[%s2153_s0 + $0x84] sm:$0xf]  ;;  %v1173_v19 = vld [vmem:[%s2153_s0 + $0x90] sm:$0xf0]  ;;  %v1179_v20 = vld [vmem:[%s2153_s0 + $0x88] sm:$0xf] }
  0x18   :  { %739 = vmatpush.bf16.msra.mxu2 %v1511_v22  ;;  %v1460_v21 = vld [vmem:[%s2153_s0 + $0x94] sm:$0xf0]  ;;  %v1458_v22 = vld [vmem:[%s2153_s0 + $0x8c] sm:$0xf]  ;;  %v1195_v32 = vld [vmem:[%s2153_s0 + $0xa8] sm:$0xf] }
  0x19   :  { %813 = vmatpush.bf16.msra.mxu3 %v1519_v23  ;;  %v1181_v23 = vld [vmem:[%s2153_s0 + $0x98] sm:$0xf0]  ;;  %v1464_v33 = vld [vmem:[%s2153_s0 + $0xb4] sm:$0xf0]  ;;  %v1462_v34 = vld [vmem:[%s2153_s0 + $0xac] sm:$0xf] }
  0x1a   :  { %592 = vmatpush.bf16.msra.mxu0 %v1494_v24  ;;  %v1172_v24 = vor.u32 %v1459_v17, %v1171_v16  ;;  %v1197_v35 = vld [vmem:[%s2153_s0 + $0xb8] sm:$0xf0]  ;;  %v1196_v38 = vor.u32 %v1464_v33, %v1195_v32  ;;  %v1211_v44 = vld [vmem:[%s2153_s0 + $0xc8] sm:$0xf]  ;;  %v1468_v45 = vld [vmem:[%s2153_s0 + $0xd4] sm:$0xf0] }
  0x1b   :  { %666 = vmatpush.bf16.msra.mxu1 %v1502_v25  ;;  %v1176_v25 = vor.u32 %v1457_v18, %v1173_v19  ;;  %v1200_v39 = vor.u32 %v1462_v34, %v1197_v35  ;;  %v1466_v46 = vld [vmem:[%s2153_s0 + $0xcc] sm:$0xf]  ;;  %v1213_v47 = vld [vmem:[%s2153_s0 + $0xd8] sm:$0xf0]  ;;  %v1212_v50 = vor.u32 %v1468_v45, %v1211_v44  ;;  %v1227_v56 = vld [vmem:[%s2153_s0 + $0xe8] sm:$0xf] }
  0x1c   :  { %740 = vmatpush.bf16.msra.mxu2 %v1510_v26  ;;  %v1180_v26 = vor.u32 %v1460_v21, %v1179_v20  ;;  %v1216_v51 = vor.u32 %v1466_v46, %v1213_v47  ;;  %v1472_v57 = vld [vmem:[%s2153_s0 + $0xf4] sm:$0xf0]  ;;  %v1470_v58 = vld [vmem:[%s2153_s0 + $0xec] sm:$0xf]  ;;  %v1229_v59 = vld [vmem:[%s2153_s0 + $0xf8] sm:$0xf0] }
  0x1d   :  { %814 = vmatpush.bf16.msra.mxu3 %v1518_v27  ;;  %v1184_v27 = vor.u32 %v1458_v22, %v1181_v23  ;;  %v1228_v62 = vor.u32 %v1472_v57, %v1227_v56  ;;  %v1232_v63 = vor.u32 %v1470_v58, %v1229_v59  ;;  %v1243_v4 = vld [vmem:[%s2153_s0 + $0x108] sm:$0xf]  ;;  %v1476_v5 = vld [vmem:[%s2153_s0 + $0x114] sm:$0xf0]  ;;  %v1474_v6 = vld [vmem:[%s2153_s0 + $0x10c] sm:$0xf] }
  0x1e   :  { %593 = vmatpush.bf16.msra.mxu0 %v1493_v28  ;;  %v1187_v28 = vld [vmem:[%s2153_s0 + $0xa0] sm:$0xf]  ;;  %v1245_v7 = vld [vmem:[%s2153_s0 + $0x118] sm:$0xf0]  ;;  %v1481_v56 = vld [vmem:[%s2153_s0 + $0x144] sm:$0xf] }
  0x1f   :  { %667 = vmatpush.bf16.msra.mxu1 %v1501_v29  ;;  %v1463_v29 = vld [vmem:[%s2153_s0 + $0xac] sm:$0xf0]  ;;  %v1990_v8 = vld [vmem:[%s2155_s2] ss:$0 sm:$0xff]  ;;  %v1269_v57 = vld [vmem:[%s2153_s0 + $0x150] sm:$0xf0] }
  0x20   :  { %741 = vmatpush.bf16.msra.mxu2 %v1509_v30  ;;  %v1461_v30 = vld [vmem:[%s2153_s0 + $0xa4] sm:$0xf]  ;;  %v1188_v36 = vor.u32 %v1463_v29, %v1187_v28  ;;  %v1251_v23 = vld [vmem:[%s2153_s0 + $0x120] sm:$0xf]  ;;  %v1480_v28 = vld [vmem:[%s2153_s0 + $0x134] sm:$0xf0] }
  0x21   :  { %815 = vmatpush.bf16.msra.mxu3 %v1517_v31  ;;  %594 = vmatmul.bf16.vlgmr.msra.gmra.mxu0 %v1108_v40  ;;  %v1189_v31 = vld [vmem:[%s2153_s0 + $0xb0] sm:$0xf0]  ;;  %v1203_v40 = vld [vmem:[%s2153_s0 + $0xc0] sm:$0xf]  ;;  %v1478_v29 = vld [vmem:[%s2153_s0 + $0x12c] sm:$0xf] }
  0x22   :  { %668 = vmatmul.bf16.vlgmr.msra.gmra.mxu1 %v1112_v41  ;;  %v1192_v37 = vor.u32 %v1461_v30, %v1189_v31  ;;  %v1467_v41 = vld [vmem:[%s2153_s0 + $0xcc] sm:$0xf0]  ;;  %v1261_v30 = vld [vmem:[%s2153_s0 + $0x138] sm:$0xf0]  ;;  %v1275_v58 = vld [vmem:[%s2153_s0 + $0x148] sm:$0xf] }
  0x23   :  { %742 = vmatmul.bf16.vlgmr.msra.gmra.mxu2 %v1116_v42  ;;  %v1465_v42 = vld [vmem:[%s2153_s0 + $0xc4] sm:$0xf]  ;;  %v1204_v48 = vor.u32 %v1467_v41, %v1203_v40  ;;  %v1264_v41 = vor.u32 %v1478_v29, %v1261_v30  ;;  %v1484_v59 = vld [vmem:[%s2153_s0 + $0x154] sm:$0xf0]  ;;  %v1486_v29 = vld [vmem:[%s2153_s0 + $0x16c] sm:$0xf] }
  0x24   :  { %816 = vmatmul.bf16.vlgmr.msra.gmra.mxu3 %v1120_v43  ;;  %v1205_v43 = vld [vmem:[%s2153_s0 + $0xd0] sm:$0xf0]  ;;  %v1293_v30 = vld [vmem:[%s2153_s0 + $0x178] sm:$0xf0] }
  0x25   :  { %v1208_v49 = vor.u32 %v1465_v42, %v1205_v43 }
  0x31   :  { %599 = vmatmul.bf16.gmra.mxu0 %v1124_v52  ;;  %v1219_v52 = vld [vmem:[%s2153_s0 + $0xe0] sm:$0xf] }
  0x32   :  { %673 = vmatmul.bf16.gmra.mxu1 %v1128_v53  ;;  %v1471_v53 = vld [vmem:[%s2153_s0 + $0xec] sm:$0xf0] }
  0x33   :  { %747 = vmatmul.bf16.gmra.mxu2 %v1132_v54  ;;  %v1469_v54 = vld [vmem:[%s2153_s0 + $0xe4] sm:$0xf]  ;;  %v1220_v60 = vor.u32 %v1471_v53, %v1219_v52 }
  0x34   :  { %821 = vmatmul.bf16.gmra.mxu3 %v1136_v55  ;;  %v1221_v55 = vld [vmem:[%s2153_s0 + $0xf0] sm:$0xf0] }
  0x35   :  { %v1224_v61 = vor.u32 %v1469_v54, %v1221_v55  ;;  %v1267_v54 = vld [vmem:[%s2153_s0 + $0x140] sm:$0xf]  ;;  %v1483_v55 = vld [vmem:[%s2153_s0 + $0x14c] sm:$0xf0] }
  0x41   :  { %604 = vmatmul.bf16.gmra.mxu0 %v1140_v0  ;;  %v1235_v0 = vld [vmem:[%s2153_s0 + $0x100] sm:$0xf] }
  0x42   :  { %678 = vmatmul.bf16.gmra.mxu1 %v1144_v1  ;;  %v1475_v1 = vld [vmem:[%s2153_s0 + $0x10c] sm:$0xf0] }
  0x43   :  { %752 = vmatmul.bf16.gmra.mxu2 %v1148_v2  ;;  %v1473_v2 = vld [vmem:[%s2153_s0 + $0x104] sm:$0xf]  ;;  %v1236_v9 = vor.u32 %v1475_v1, %v1235_v0 }
  0x44   :  { %826 = vmatmul.bf16.gmra.mxu3 %v1152_v3  ;;  %v1237_v3 = vld [vmem:[%s2153_s0 + $0x110] sm:$0xf0] }
  0x45   :  { %v1240_v10 = vor.u32 %v1473_v2, %v1237_v3  ;;  %v1268_v2 = vor.u32 %v1483_v55, %v1267_v54  ;;  %v1272_v3 = vor.u32 %v1481_v56, %v1269_v57  ;;  %v1299_v55 = vld [vmem:[%s2153_s0 + $0x180] sm:$0xf]  ;;  %v1491_v56 = vld [vmem:[%s2153_s0 + $0x18c] sm:$0xf0]  ;;  %v1489_v57 = vld [vmem:[%s2153_s0 + $0x184] sm:$0xf] }
  0x51   :  { %609 = vmatmul.bf16.gmra.mxu0 %v1156_v12 }
  0x52   :  { %683 = vmatmul.bf16.gmra.mxu1 %v1160_v13  ;;  %v1244_v13 = vor.u32 %v1476_v5, %v1243_v4 }
  0x53   :  { %757 = vmatmul.bf16.gmra.mxu2 %v1164_v14  ;;  %v1248_v14 = vor.u32 %v1474_v6, %v1245_v7  ;;  %v1276_v7 = vor.u32 %v1484_v59, %v1275_v58  ;;  %v1301_v58 = vld [vmem:[%s2153_s0 + $0x190] sm:$0xf0]  ;;  %v1307_v59 = vld [vmem:[%s2153_s0 + $0x188] sm:$0xf] }
  0x54   :  { %831 = vmatmul.bf16.gmra.mxu3 %v1168_v15 }
  0x61   :  { %614 = vmatmul.bf16.gmra.mxu0 %v1172_v24  ;;  %v1479_v24 = vld [vmem:[%s2153_s0 + $0x12c] sm:$0xf0] }
  0x62   :  { %688 = vmatmul.bf16.gmra.mxu1 %v1176_v25  ;;  %v1477_v25 = vld [vmem:[%s2153_s0 + $0x124] sm:$0xf]  ;;  %v1252_v35 = vor.u32 %v1479_v24, %v1251_v23  ;;  %v1283_v23 = vld [vmem:[%s2153_s0 + $0x160] sm:$0xf]  ;;  %v1487_v24 = vld [vmem:[%s2153_s0 + $0x16c] sm:$0xf0] }
  0x63   :  { %762 = vmatmul.bf16.gmra.mxu2 %v1180_v26  ;;  %v1253_v26 = vld [vmem:[%s2153_s0 + $0x130] sm:$0xf0] }
  0x64   :  { %836 = vmatmul.bf16.gmra.mxu3 %v1184_v27  ;;  %v1259_v27 = vld [vmem:[%s2153_s0 + $0x128] sm:$0xf] }
  0x65   :  { %v1260_v40 = vor.u32 %v1480_v28, %v1259_v27  ;;  %v1291_v27 = vld [vmem:[%s2153_s0 + $0x168] sm:$0xf]  ;;  %v1488_v28 = vld [vmem:[%s2153_s0 + $0x174] sm:$0xf0] }
  0x71   :  { %619 = vmatmul.bf16.gmra.mxu0 %v1188_v36  ;;  %v1256_v36 = vor.u32 %v1477_v25, %v1253_v26  ;;  %v1485_v25 = vld [vmem:[%s2153_s0 + $0x164] sm:$0xf]  ;;  %v1285_v26 = vld [vmem:[%s2153_s0 + $0x170] sm:$0xf0] }
  0x72   :  { %693 = vmatmul.bf16.gmra.mxu1 %v1192_v37 }
  0x73   :  { %767 = vmatmul.bf16.gmra.mxu2 %v1196_v38 }
  0x74   :  { %841 = vmatmul.bf16.gmra.mxu3 %v1200_v39 }
  0x81   :  { %624 = vmatmul.bf16.gmra.mxu0 %v1204_v48 }
  0x82   :  { %698 = vmatmul.bf16.gmra.mxu1 %v1208_v49 }
  0x83   :  { %772 = vmatmul.bf16.gmra.mxu2 %v1212_v50 }
  0x84   :  { %846 = vmatmul.bf16.gmra.mxu3 %v1216_v51 }
  0x91   :  { %629 = vmatmul.bf16.gmra.mxu0 %v1220_v60  ;;  %v1482_v60 = vld [vmem:[%s2153_s0 + $0x14c] sm:$0xf] }
  0x92   :  { %703 = vmatmul.bf16.gmra.mxu1 %v1224_v61  ;;  %v1277_v61 = vld [vmem:[%s2153_s0 + $0x158] sm:$0xf0] }
  0x93   :  { %777 = vmatmul.bf16.gmra.mxu2 %v1228_v62 }
  0x94   :  { %851 = vmatmul.bf16.gmra.mxu3 %v1232_v63 }
  0x9e   :  { %v595_v11 = vpop.f32.mrf.mxu0 }
  0x9f   :  { %v669_v12 = vpop.f32.mrf.mxu1  ;;  %v596_v15 = vadd.f32 %v1990_v8, %v595_v11 }
  0xa1   :  { %634 = vmatmul.bf16.gmra.mxu0 %v1236_v9  ;;  %v670_v16 = vadd.f32 %v669_v12, %v596_v15  ;;  %v1280_v9 = vor.u32 %v1482_v60, %v1277_v61  ;;  %v1492_v60 = vld [vmem:[%s2153_s0 + $0x194] sm:$0xf0]  ;;  %v1490_v61 = vld [vmem:[%s2153_s0 + $0x18c] sm:$0xf] }
  0xa2   :  { %708 = vmatmul.bf16.gmra.mxu1 %v1240_v10 }
  0xa3   :  { %782 = vmatmul.bf16.gmra.mxu2 %v1244_v13 }
  0xa4   :  { %856 = vmatmul.bf16.gmra.mxu3 %v1248_v14 }
  0xa6   :  { %v743_v17 = vpop.f32.mrf.mxu2  ;;  %v597_v19 = vpop.f32.mrf.mxu0 }
  0xa7   :  { %v817_v18 = vpop.f32.mrf.mxu3  ;;  %v671_v20 = vpop.f32.mrf.mxu1  ;;  %v598_v21 = vadd.f32 %v1990_v8, %v597_v19  ;;  %v744_v22 = vadd.f32 %v743_v17, %v670_v16 }
  0xa9   :  { %v672_v31 = vadd.f32 %v671_v20, %v598_v21  ;;  %v818_v32 = vadd.f32 %v817_v18, %v744_v22 }
  0xab   :  { %1603 = vtanh.f32 %v818_v32 }
  0xae   :  { %v745_v33 = vpop.f32.mrf.mxu2  ;;  %v600_v38 = vpop.f32.mrf.mxu0 }
  0xaf   :  { %v819_v34 = vpop.f32.mrf.mxu3  ;;  %v746_v37 = vadd.f32 %v745_v33, %v672_v31  ;;  %v674_v39 = vpop.f32.mrf.mxu1  ;;  %v601_v43 = vadd.f32 %v1990_v8, %v600_v38 }
  0xb1   :  { %v820_v42 = vadd.f32 %v819_v34, %v746_v37  ;;  %639 = vmatmul.bf16.gmra.mxu0 %v1252_v35  ;;  %v675_v44 = vadd.f32 %v674_v39, %v601_v43  ;;  %v1604_v49 = vpop.eup %1603  ;;  %v1284_v35 = vor.u32 %v1487_v24, %v1283_v23 }
  0xb2   :  { %713 = vmatmul.bf16.gmra.mxu1 %v1256_v36  ;;  %v1288_v36 = vor.u32 %v1485_v25, %v1285_v26 }
  0xb3   :  { %1605 = vtanh.f32 %v820_v42  ;;  %787 = vmatmul.bf16.gmra.mxu2 %v1260_v40  ;;  %v1292_v40 = vor.u32 %v1488_v28, %v1291_v27 }
  0xb4   :  { %861 = vmatmul.bf16.gmra.mxu3 %v1264_v41  ;;  %v1296_v41 = vor.u32 %v1486_v29, %v1293_v30 }
  0xb6   :  { %v748_v45 = vpop.f32.mrf.mxu2  ;;  %v602_v47 = vpop.f32.mrf.mxu0 }
  0xb7   :  { %v822_v46 = vpop.f32.mrf.mxu3  ;;  %v676_v48 = vpop.f32.mrf.mxu1  ;;  %v603_v51 = vadd.f32 %v1990_v8, %v602_v47  ;;  %v749_v53 = vadd.f32 %v748_v45, %v675_v44 }
  0xb9   :  { %v1606_v50 = vpop.eup %1605  ;;  %v677_v62 = vadd.f32 %v676_v48, %v603_v51  ;;  %v823_v63 = vadd.f32 %v822_v46, %v749_v53 }
  0xba   :  { %v1528_v52 = vpack.c.bf16 %v1606_v50, %v1604_v49 }
  0xbb   :  { %1607 = vtanh.f32 %v823_v63 }
  0xbc   :  { %1529 = vst [vmem:[#allocation2] sm:$0xff] %v1528_v52  }
  0xbe   :  { %v750_v0 = vpop.f32.mrf.mxu2  ;;  %v605_v5 = vpop.f32.mrf.mxu0 }
  0xbf   :  { %v824_v1 = vpop.f32.mrf.mxu3  ;;  %v751_v4 = vadd.f32 %v750_v0, %v677_v62  ;;  %v679_v6 = vpop.f32.mrf.mxu1  ;;  %v606_v11 = vadd.f32 %v1990_v8, %v605_v5  ;;  %v1309_v62 = vld [vmem:[%s2153_s0 + $0x198] sm:$0xf0] }
  0xc1   :  { %v825_v10 = vadd.f32 %v824_v1, %v751_v4  ;;  %644 = vmatmul.bf16.gmra.mxu0 %v1268_v2  ;;  %v680_v13 = vadd.f32 %v679_v6, %v606_v11  ;;  %v1608_v18 = vpop.eup %1607  ;;  %v1304_v4 = vor.u32 %v1489_v57, %v1301_v58 }
  0xc2   :  { %718 = vmatmul.bf16.gmra.mxu1 %v1272_v3  ;;  %v1300_v3 = vor.u32 %v1491_v56, %v1299_v55 }
  0xc3   :  { %v978_v12 = vld [vmem:[#allocation2] sm:$0xff]   ;;  %1609 = vtanh.f32 %v825_v10  ;;  %792 = vmatmul.bf16.gmra.mxu2 %v1276_v7  ;;  %v1312_v10 = vor.u32 %v1490_v61, %v1309_v62 }
  0xc4   :  { %866 = vmatmul.bf16.gmra.mxu3 %v1280_v9  ;;  %979 = vst [vmem:[%s2156_s3] sm:$0xff] %v978_v12   ;;  %v1308_v9 = vor.u32 %v1492_v60, %v1307_v59 }
  0xc6   :  { %v753_v14 = vpop.f32.mrf.mxu2  ;;  %v607_v16 = vpop.f32.mrf.mxu0 }
  0xc7   :  { %v827_v15 = vpop.f32.mrf.mxu3  ;;  %v681_v17 = vpop.f32.mrf.mxu1  ;;  %v608_v20 = vadd.f32 %v1990_v8, %v607_v16  ;;  %v754_v22 = vadd.f32 %v753_v14, %v680_v13 }
  0xc9   :  { %v1610_v19 = vpop.eup %1609  ;;  %v682_v31 = vadd.f32 %v681_v17, %v608_v20  ;;  %v828_v32 = vadd.f32 %v827_v15, %v754_v22 }
  0xca   :  { %v1533_v21 = vpack.c.bf16 %v1610_v19, %v1608_v18 }
  0xcb   :  { %1611 = vtanh.f32 %v828_v32 }
  0xcc   :  { %1590 = vst [vmem:[#allocation2 + $0x8] sm:$0xff] %v1533_v21  }
  0xce   :  { %v755_v33 = vpop.f32.mrf.mxu2  ;;  %v610_v38 = vpop.f32.mrf.mxu0 }
  0xcf   :  { %v829_v34 = vpop.f32.mrf.mxu3  ;;  %v756_v37 = vadd.f32 %v755_v33, %v682_v31  ;;  %v684_v39 = vpop.f32.mrf.mxu1  ;;  %v611_v43 = vadd.f32 %v1990_v8, %v610_v38 }
  0xd1   :  { %v830_v42 = vadd.f32 %v829_v34, %v756_v37  ;;  %649 = vmatmul.bf16.gmra.mxu0 %v1284_v35  ;;  %v685_v45 = vadd.f32 %v684_v39, %v611_v43  ;;  %v1612_v50 = vpop.eup %1611 }
  0xd2   :  { %723 = vmatmul.bf16.gmra.mxu1 %v1288_v36 }
  0xd3   :  { %v982_v44 = vld [vmem:[#allocation2 + $0x8] sm:$0xff]   ;;  %1613 = vtanh.f32 %v830_v42  ;;  %797 = vmatmul.bf16.gmra.mxu2 %v1292_v40 }
  0xd4   :  { %871 = vmatmul.bf16.gmra.mxu3 %v1296_v41  ;;  %983 = vst [vmem:[%s2156_s3 + $0x8] sm:$0xff] %v982_v44  }
  0xd6   :  { %v758_v46 = vpop.f32.mrf.mxu2  ;;  %v612_v48 = vpop.f32.mrf.mxu0 }
  0xd7   :  { %v832_v47 = vpop.f32.mrf.mxu3  ;;  %v686_v49 = vpop.f32.mrf.mxu1  ;;  %v613_v52 = vadd.f32 %v1990_v8, %v612_v48  ;;  %v759_v54 = vadd.f32 %v758_v46, %v685_v45 }
  0xd9   :  { %v1614_v51 = vpop.eup %1613  ;;  %v687_v63 = vadd.f32 %v686_v49, %v613_v52  ;;  %v833_v0 = vadd.f32 %v832_v47, %v759_v54 }
  0xda   :  { %v1538_v53 = vpack.c.bf16 %v1614_v51, %v1612_v50 }
  0xdb   :  { %1615 = vtanh.f32 %v833_v0 }
  0xdc   :  { %1591 = vst [vmem:[#allocation2 + $0x10] sm:$0xff] %v1538_v53  }
  0xde   :  { %v760_v1 = vpop.f32.mrf.mxu2  ;;  %v615_v6 = vpop.f32.mrf.mxu0 }
  0xdf   :  { %v834_v2 = vpop.f32.mrf.mxu3  ;;  %v761_v5 = vadd.f32 %v760_v1, %v687_v63  ;;  %v689_v7 = vpop.f32.mrf.mxu1  ;;  %v616_v12 = vadd.f32 %v1990_v8, %v615_v6 }
  0xe1   :  { %v835_v11 = vadd.f32 %v834_v2, %v761_v5  ;;  %654 = vmatmul.bf16.gmra.mxu0 %v1300_v3  ;;  %v690_v14 = vadd.f32 %v689_v7, %v616_v12  ;;  %v1616_v19 = vpop.eup %1615 }
  0xe2   :  { %728 = vmatmul.bf16.gmra.mxu1 %v1304_v4 }
  0xe3   :  { %v986_v13 = vld [vmem:[#allocation2 + $0x10] sm:$0xff]   ;;  %1617 = vtanh.f32 %v835_v11  ;;  %802 = vmatmul.bf16.gmra.mxu2 %v1308_v9 }
  0xe4   :  { %876 = vmatmul.bf16.gmra.mxu3 %v1312_v10  ;;  %987 = vst [vmem:[%s2156_s3 + $0x10] sm:$0xff] %v986_v13  }
  0xe6   :  { %v763_v15 = vpop.f32.mrf.mxu2  ;;  %v617_v17 = vpop.f32.mrf.mxu0 }
  0xe7   :  { %v837_v16 = vpop.f32.mrf.mxu3  ;;  %v691_v18 = vpop.f32.mrf.mxu1  ;;  %v618_v21 = vadd.f32 %v1990_v8, %v617_v17  ;;  %v764_v23 = vadd.f32 %v763_v15, %v690_v14 }
  0xe9   :  { %v1618_v20 = vpop.eup %1617  ;;  %v692_v24 = vadd.f32 %v691_v18, %v618_v21  ;;  %v838_v25 = vadd.f32 %v837_v16, %v764_v23 }
  0xea   :  { %v1543_v22 = vpack.c.bf16 %v1618_v20, %v1616_v19 }
  0xeb   :  { %1619 = vtanh.f32 %v838_v25 }
  0xec   :  { %1592 = vst [vmem:[#allocation2 + $0x18] sm:$0xff] %v1543_v22  }
  0xee   :  { %v765_v26 = vpop.f32.mrf.mxu2  ;;  %v620_v29 = vpop.f32.mrf.mxu0 }
  0xef   :  { %v839_v27 = vpop.f32.mrf.mxu3  ;;  %v766_v28 = vadd.f32 %v765_v26, %v692_v24  ;;  %v694_v30 = vpop.f32.mrf.mxu1  ;;  %v621_v32 = vadd.f32 %v1990_v8, %v620_v29 }
  0xf1   :  { %v840_v31 = vadd.f32 %v839_v27, %v766_v28  ;;  %v695_v34 = vadd.f32 %v694_v30, %v621_v32  ;;  %v1620_v39 = vpop.eup %1619 }
  0xf3   :  { %v990_v33 = vld [vmem:[#allocation2 + $0x18] sm:$0xff]   ;;  %1621 = vtanh.f32 %v840_v31 }
  0xf4   :  { %991 = vst [vmem:[%s2156_s3 + $0x18] sm:$0xff] %v990_v33  }
  0xf6   :  { %v768_v35 = vpop.f32.mrf.mxu2  ;;  %v622_v37 = vpop.f32.mrf.mxu0 }
  0xf7   :  { %v842_v36 = vpop.f32.mrf.mxu3  ;;  %v696_v38 = vpop.f32.mrf.mxu1  ;;  %v623_v41 = vadd.f32 %v1990_v8, %v622_v37  ;;  %v769_v43 = vadd.f32 %v768_v35, %v695_v34 }
  0xf9   :  { %v1622_v40 = vpop.eup %1621  ;;  %v697_v44 = vadd.f32 %v696_v38, %v623_v41  ;;  %v843_v45 = vadd.f32 %v842_v36, %v769_v43 }
  0xfa   :  { %v1548_v42 = vpack.c.bf16 %v1622_v40, %v1620_v39 }
  0xfb   :  { %1623 = vtanh.f32 %v843_v45 }
  0xfc   :  { %1593 = vst [vmem:[#allocation2 + $0x20] sm:$0xff] %v1548_v42  }
  0xfe   :  { %v770_v46 = vpop.f32.mrf.mxu2  ;;  %v625_v49 = vpop.f32.mrf.mxu0 }
  0xff   :  { %v844_v47 = vpop.f32.mrf.mxu3  ;;  %v771_v48 = vadd.f32 %v770_v46, %v697_v44  ;;  %v699_v50 = vpop.f32.mrf.mxu1  ;;  %v626_v52 = vadd.f32 %v1990_v8, %v625_v49 }
 0x101   :  { %v845_v51 = vadd.f32 %v844_v47, %v771_v48  ;;  %v700_v54 = vadd.f32 %v699_v50, %v626_v52  ;;  %v1624_v59 = vpop.eup %1623 }
 0x103   :  { %v994_v53 = vld [vmem:[#allocation2 + $0x20] sm:$0xff]   ;;  %1625 = vtanh.f32 %v845_v51 }
 0x104   :  { %995 = vst [vmem:[%s2156_s3 + $0x20] sm:$0xff] %v994_v53  }
 0x106   :  { %v773_v55 = vpop.f32.mrf.mxu2  ;;  %v627_v57 = vpop.f32.mrf.mxu0 }
 0x107   :  { %v847_v56 = vpop.f32.mrf.mxu3  ;;  %v701_v58 = vpop.f32.mrf.mxu1  ;;  %v628_v61 = vadd.f32 %v1990_v8, %v627_v57  ;;  %v774_v63 = vadd.f32 %v773_v55, %v700_v54 }
 0x109   :  { %v1626_v60 = vpop.eup %1625  ;;  %v702_v0 = vadd.f32 %v701_v58, %v628_v61  ;;  %v848_v1 = vadd.f32 %v847_v56, %v774_v63 }
 0x10a   :  { %v1553_v62 = vpack.c.bf16 %v1626_v60, %v1624_v59 }
 0x10b   :  { %1627 = vtanh.f32 %v848_v1 }
 0x10c   :  { %1594 = vst [vmem:[#allocation2 + $0x28] sm:$0xff] %v1553_v62  }
 0x10e   :  { %v775_v2 = vpop.f32.mrf.mxu2  ;;  %v630_v5 = vpop.f32.mrf.mxu0 }
 0x10f   :  { %v849_v3 = vpop.f32.mrf.mxu3  ;;  %v776_v4 = vadd.f32 %v775_v2, %v702_v0  ;;  %v704_v6 = vpop.f32.mrf.mxu1  ;;  %v631_v9 = vadd.f32 %v1990_v8, %v630_v5 }
 0x111   :  { %v850_v7 = vadd.f32 %v849_v3, %v776_v4  ;;  %v705_v11 = vadd.f32 %v704_v6, %v631_v9  ;;  %v1628_v16 = vpop.eup %1627 }
 0x113   :  { %v998_v10 = vld [vmem:[#allocation2 + $0x28] sm:$0xff]   ;;  %1629 = vtanh.f32 %v850_v7 }
 0x114   :  { %999 = vst [vmem:[%s2156_s3 + $0x28] sm:$0xff] %v998_v10  }
 0x116   :  { %v778_v12 = vpop.f32.mrf.mxu2  ;;  %v632_v14 = vpop.f32.mrf.mxu0 }
 0x117   :  { %v852_v13 = vpop.f32.mrf.mxu3  ;;  %v706_v15 = vpop.f32.mrf.mxu1  ;;  %v633_v18 = vadd.f32 %v1990_v8, %v632_v14  ;;  %v779_v20 = vadd.f32 %v778_v12, %v705_v11 }
 0x119   :  { %v1630_v17 = vpop.eup %1629  ;;  %v707_v21 = vadd.f32 %v706_v15, %v633_v18  ;;  %v853_v22 = vadd.f32 %v852_v13, %v779_v20 }
 0x11a   :  { %v1558_v19 = vpack.c.bf16 %v1630_v17, %v1628_v16 }
 0x11b   :  { %1631 = vtanh.f32 %v853_v22 }
 0x11c   :  { %1595 = vst [vmem:[#allocation2 + $0x30] sm:$0xff] %v1558_v19  }
 0x11e   :  { %v780_v23 = vpop.f32.mrf.mxu2  ;;  %v635_v26 = vpop.f32.mrf.mxu0 }
 0x11f   :  { %v854_v24 = vpop.f32.mrf.mxu3  ;;  %v781_v25 = vadd.f32 %v780_v23, %v707_v21  ;;  %v709_v27 = vpop.f32.mrf.mxu1  ;;  %v636_v29 = vadd.f32 %v1990_v8, %v635_v26 }
 0x121   :  { %v855_v28 = vadd.f32 %v854_v24, %v781_v25  ;;  %v710_v31 = vadd.f32 %v709_v27, %v636_v29  ;;  %v1632_v36 = vpop.eup %1631 }
 0x123   :  { %v1002_v30 = vld [vmem:[#allocation2 + $0x30] sm:$0xff]   ;;  %1633 = vtanh.f32 %v855_v28 }
 0x124   :  { %1003 = vst [vmem:[%s2156_s3 + $0x30] sm:$0xff] %v1002_v30  }
 0x126   :  { %v783_v32 = vpop.f32.mrf.mxu2  ;;  %v637_v34 = vpop.f32.mrf.mxu0 }
 0x127   :  { %v857_v33 = vpop.f32.mrf.mxu3  ;;  %v711_v35 = vpop.f32.mrf.mxu1  ;;  %v638_v38 = vadd.f32 %v1990_v8, %v637_v34  ;;  %v784_v40 = vadd.f32 %v783_v32, %v710_v31 }
 0x129   :  { %v1634_v37 = vpop.eup %1633  ;;  %v712_v41 = vadd.f32 %v711_v35, %v638_v38  ;;  %v858_v42 = vadd.f32 %v857_v33, %v784_v40 }
 0x12a   :  { %v1563_v39 = vpack.c.bf16 %v1634_v37, %v1632_v36 }
 0x12b   :  { %1635 = vtanh.f32 %v858_v42 }
 0x12c   :  { %1596 = vst [vmem:[#allocation2 + $0x38] sm:$0xff] %v1563_v39  }
 0x12e   :  { %v785_v43 = vpop.f32.mrf.mxu2  ;;  %v640_v46 = vpop.f32.mrf.mxu0 }
 0x12f   :  { %v859_v44 = vpop.f32.mrf.mxu3  ;;  %v786_v45 = vadd.f32 %v785_v43, %v712_v41  ;;  %v714_v47 = vpop.f32.mrf.mxu1  ;;  %v641_v49 = vadd.f32 %v1990_v8, %v640_v46 }
 0x131   :  { %v860_v48 = vadd.f32 %v859_v44, %v786_v45  ;;  %v715_v51 = vadd.f32 %v714_v47, %v641_v49  ;;  %v1636_v56 = vpop.eup %1635 }
 0x133   :  { %v1006_v50 = vld [vmem:[#allocation2 + $0x38] sm:$0xff]   ;;  %1637 = vtanh.f32 %v860_v48 }
 0x134   :  { %1007 = vst [vmem:[%s2156_s3 + $0x38] sm:$0xff] %v1006_v50  }
 0x136   :  { %v788_v52 = vpop.f32.mrf.mxu2  ;;  %v642_v54 = vpop.f32.mrf.mxu0 }
 0x137   :  { %v862_v53 = vpop.f32.mrf.mxu3  ;;  %v716_v55 = vpop.f32.mrf.mxu1  ;;  %v643_v58 = vadd.f32 %v1990_v8, %v642_v54  ;;  %v789_v60 = vadd.f32 %v788_v52, %v715_v51 }
 0x139   :  { %v1638_v57 = vpop.eup %1637  ;;  %v717_v61 = vadd.f32 %v716_v55, %v643_v58  ;;  %v863_v62 = vadd.f32 %v862_v53, %v789_v60 }
 0x13a   :  { %v1568_v59 = vpack.c.bf16 %v1638_v57, %v1636_v56 }
 0x13b   :  { %1639 = vtanh.f32 %v863_v62 }
 0x13c   :  { %1597 = vst [vmem:[#allocation2 + $0x40] sm:$0xff] %v1568_v59  }
 0x13e   :  { %v790_v63 = vpop.f32.mrf.mxu2  ;;  %v645_v2 = vpop.f32.mrf.mxu0 }
 0x13f   :  { %v864_v0 = vpop.f32.mrf.mxu3  ;;  %v791_v1 = vadd.f32 %v790_v63, %v717_v61  ;;  %v719_v3 = vpop.f32.mrf.mxu1  ;;  %v646_v5 = vadd.f32 %v1990_v8, %v645_v2 }
 0x141   :  { %v865_v4 = vadd.f32 %v864_v0, %v791_v1  ;;  %v720_v7 = vadd.f32 %v719_v3, %v646_v5  ;;  %v1640_v13 = vpop.eup %1639 }
 0x143   :  { %v1010_v6 = vld [vmem:[#allocation2 + $0x40] sm:$0xff]   ;;  %1641 = vtanh.f32 %v865_v4 }
 0x144   :  { %1011 = vst [vmem:[%s2156_s3 + $0x40] sm:$0xff] %v1010_v6  }
 0x146   :  { %v793_v9 = vpop.f32.mrf.mxu2  ;;  %v647_v11 = vpop.f32.mrf.mxu0 }
 0x147   :  { %v867_v10 = vpop.f32.mrf.mxu3  ;;  %v721_v12 = vpop.f32.mrf.mxu1  ;;  %v648_v15 = vadd.f32 %v1990_v8, %v647_v11  ;;  %v794_v17 = vadd.f32 %v793_v9, %v720_v7 }
 0x149   :  { %v1642_v14 = vpop.eup %1641  ;;  %v722_v18 = vadd.f32 %v721_v12, %v648_v15  ;;  %v868_v19 = vadd.f32 %v867_v10, %v794_v17 }
 0x14a   :  { %v1573_v16 = vpack.c.bf16 %v1642_v14, %v1640_v13 }
 0x14b   :  { %1643 = vtanh.f32 %v868_v19 }
 0x14c   :  { %1598 = vst [vmem:[#allocation2 + $0x48] sm:$0xff] %v1573_v16  }
 0x14e   :  { %v795_v20 = vpop.f32.mrf.mxu2  ;;  %v650_v23 = vpop.f32.mrf.mxu0 }
 0x14f   :  { %v869_v21 = vpop.f32.mrf.mxu3  ;;  %v796_v22 = vadd.f32 %v795_v20, %v722_v18  ;;  %v724_v24 = vpop.f32.mrf.mxu1  ;;  %v651_v26 = vadd.f32 %v1990_v8, %v650_v23 }
 0x151   :  { %v870_v25 = vadd.f32 %v869_v21, %v796_v22  ;;  %v725_v28 = vadd.f32 %v724_v24, %v651_v26  ;;  %v1644_v32 = vpop.eup %1643 }
 0x153   :  { %v1014_v27 = vld [vmem:[#allocation2 + $0x48] sm:$0xff]   ;;  %1645 = vtanh.f32 %v870_v25 }
 0x154   :  { %1015 = vst [vmem:[%s2156_s3 + $0x48] sm:$0xff] %v1014_v27  }
 0x156   :  { %v798_v29 = vpop.f32.mrf.mxu2  ;;  %v652_v31 = vpop.f32.mrf.mxu0 }
 0x157   :  { %v872_v30 = vpop.f32.mrf.mxu3  ;;  %v726_v33 = vpop.f32.mrf.mxu1  ;;  %v653_v35 = vadd.f32 %v1990_v8, %v652_v31  ;;  %v799_v37 = vadd.f32 %v798_v29, %v725_v28 }
 0x159   :  { %v1646_v34 = vpop.eup %1645  ;;  %v727_v38 = vadd.f32 %v726_v33, %v653_v35  ;;  %v873_v39 = vadd.f32 %v872_v30, %v799_v37 }
 0x15a   :  { %v1578_v36 = vpack.c.bf16 %v1646_v34, %v1644_v32 }
 0x15b   :  { %1647 = vtanh.f32 %v873_v39 }
 0x15c   :  { %1599 = vst [vmem:[#allocation2 + $0x50] sm:$0xff] %v1578_v36  }
 0x15e   :  { %v800_v40 = vpop.f32.mrf.mxu2  ;;  %v655_v43 = vpop.f32.mrf.mxu0 }
 0x15f   :  { %v874_v41 = vpop.f32.mrf.mxu3  ;;  %v801_v42 = vadd.f32 %v800_v40, %v727_v38  ;;  %v656_v45 = vadd.f32 %v1990_v8, %v655_v43  ;;  %v729_v46 = vpop.f32.mrf.mxu1 }
 0x161   :  { %v875_v44 = vadd.f32 %v874_v41, %v801_v42  ;;  %v730_v48 = vadd.f32 %v729_v46, %v656_v45  ;;  %v1648_v52 = vpop.eup %1647 }
 0x163   :  { %v1018_v47 = vld [vmem:[#allocation2 + $0x50] sm:$0xff]   ;;  %1649 = vtanh.f32 %v875_v44 }
 0x164   :  { %1019 = vst [vmem:[%s2156_s3 + $0x50] sm:$0xff] %v1018_v47  }
 0x166   :  { %v803_v49 = vpop.f32.mrf.mxu2  ;;  %v657_v51 = vpop.f32.mrf.mxu0 }
 0x167   :  { %v877_v50 = vpop.f32.mrf.mxu3  ;;  %v658_v54 = vadd.f32 %v1990_v8, %v657_v51  ;;  %v804_v56 = vadd.f32 %v803_v49, %v730_v48  ;;  %v731_v57 = vpop.f32.mrf.mxu1 }
 0x169   :  { %v1650_v53 = vpop.eup %1649  ;;  %v732_v58 = vadd.f32 %v731_v57, %v658_v54  ;;  %v878_v59 = vadd.f32 %v877_v50, %v804_v56 }
 0x16a   :  { %v1583_v55 = vpack.c.bf16 %v1650_v53, %v1648_v52 }
 0x16b   :  { %1651 = vtanh.f32 %v878_v59 }
 0x16c   :  { %1600 = vst [vmem:[#allocation2 + $0x58] sm:$0xff] %v1583_v55  }
 0x16e   :  { %v805_v60 = vpop.f32.mrf.mxu2 }
 0x16f   :  { %v806_v61 = vadd.f32 %v805_v60, %v732_v58  ;;  %v879_v62 = vpop.f32.mrf.mxu3 }
 0x171   :  { %v880_v63 = vadd.f32 %v879_v62, %v806_v61  ;;  %v1652_v1 = vpop.eup %1651 }
 0x173   :  { %v1022_v0 = vld [vmem:[#allocation2 + $0x58] sm:$0xff]   ;;  %1653 = vtanh.f32 %v880_v63 }
 0x174   :  { %1023 = vst [vmem:[%s2156_s3 + $0x58] sm:$0xff] %v1022_v0  }
 0x179   :  { %v1654_v2 = vpop.eup %1653 }
 0x17a   :  { %v1588_v8 = vpack.c.bf16 %v1654_v2, %v1652_v1 }
 0x17c   :  { %1601 = vst [vmem:[#allocation2 + $0x60] sm:$0xff] %v1588_v8  }
 0x183   :  { %v1026_v3 = vld [vmem:[#allocation2 + $0x60] sm:$0xf] }
 0x184   :  { %1027 = vst [vmem:[%s2156_s3 + $0x60] sm:$0xf] %v1026_v3 }

// kernel: conv_forward.7
= control target key start
LH: loop header
LB: loop body
LE: loop exit
PB: predicated region body
PF: predicated region fallthrough
CT: control target
= control target key end

     0   :  { %s1531_s1 = inlined_call_operand.vmem [shape: bf16[1024,128], index: 1, kind: input, shape index: {}]   ;;  %s1532_s0 = inlined_call_operand.vmem [shape: bf16[32,1024], index: 0, kind: input, shape index: {}]   ;;  %s1533_s2 = inlined_call_operand.vmem [shape: f32[1,128], index: 2, kind: input, shape index: {}]   ;;  %s1534_s3 = inlined_call_operand.vmem [shape: bf16[32,128], index: 3, kind: output, shape index: {}]  }
   0x1   :  { %v1137_v0 = vld [vmem:[%s1531_s1 + $0x38] sm:$0xff]  ;;  %v1136_v4 = vld [vmem:[%s1531_s1 + $0x30] sm:$0xff]  ;;  %v1135_v8 = vld [vmem:[%s1531_s1 + $0x28] sm:$0xff] }
   0x2   :  { %v1145_v1 = vld [vmem:[%s1531_s1 + $0x78] sm:$0xff]  ;;  %626 = vmatpush.bf16.msra.mxu0 %v1137_v0  ;;  %v1144_v5 = vld [vmem:[%s1531_s1 + $0x70] sm:$0xff]  ;;  %v1143_v9 = vld [vmem:[%s1531_s1 + $0x68] sm:$0xff] }
   0x3   :  { %v1153_v2 = vld [vmem:[%s1531_s1 + $0xb8] sm:$0xff]  ;;  %645 = vmatpush.bf16.msra.mxu1 %v1145_v1  ;;  %v1152_v6 = vld [vmem:[%s1531_s1 + $0xb0] sm:$0xff]  ;;  %v1151_v10 = vld [vmem:[%s1531_s1 + $0xa8] sm:$0xff] }
   0x4   :  { %v1161_v3 = vld [vmem:[%s1531_s1 + $0xf8] sm:$0xff]  ;;  %664 = vmatpush.bf16.msra.mxu2 %v1153_v2  ;;  %v1160_v7 = vld [vmem:[%s1531_s1 + $0xf0] sm:$0xff]  ;;  %v1159_v11 = vld [vmem:[%s1531_s1 + $0xe8] sm:$0xff] }
   0x5   :  { %683 = vmatpush.bf16.msra.mxu3 %v1161_v3  ;;  %v1134_v12 = vld [vmem:[%s1531_s1 + $0x20] sm:$0xff]  ;;  %v1133_v16 = vld [vmem:[%s1531_s1 + $0x18] sm:$0xff]  ;;  %v1132_v20 = vld [vmem:[%s1531_s1 + $0x10] sm:$0xff] }
   0x6   :  { %627 = vmatpush.bf16.msra.mxu0 %v1136_v4  ;;  %v1142_v13 = vld [vmem:[%s1531_s1 + $0x60] sm:$0xff]  ;;  %v1141_v17 = vld [vmem:[%s1531_s1 + $0x58] sm:$0xff]  ;;  %v1140_v21 = vld [vmem:[%s1531_s1 + $0x50] sm:$0xff] }
   0x7   :  { %646 = vmatpush.bf16.msra.mxu1 %v1144_v5  ;;  %v1150_v14 = vld [vmem:[%s1531_s1 + $0xa0] sm:$0xff]  ;;  %v1149_v18 = vld [vmem:[%s1531_s1 + $0x98] sm:$0xff]  ;;  %v1148_v22 = vld [vmem:[%s1531_s1 + $0x90] sm:$0xff] }
   0x8   :  { %665 = vmatpush.bf16.msra.mxu2 %v1152_v6  ;;  %v1158_v15 = vld [vmem:[%s1531_s1 + $0xe0] sm:$0xff]  ;;  %v1157_v19 = vld [vmem:[%s1531_s1 + $0xd8] sm:$0xff]  ;;  %v1156_v23 = vld [vmem:[%s1531_s1 + $0xd0] sm:$0xff] }
   0x9   :  { %684 = vmatpush.bf16.msra.mxu3 %v1160_v7  ;;  %v1131_v24 = vld [vmem:[%s1531_s1 + $0x8] sm:$0xff]  ;;  %v1130_v28 = vld [vmem:[%s1531_s1] sm:$0xff]  ;;  %v1185_v40 = vld [vmem:[%s1531_s1 + $0x1b8] sm:$0xff] }
   0xa   :  { %628 = vmatpush.bf16.msra.mxu0 %v1135_v8  ;;  %v1139_v25 = vld [vmem:[%s1531_s1 + $0x48] sm:$0xff]  ;;  %v1138_v29 = vld [vmem:[%s1531_s1 + $0x40] sm:$0xff]  ;;  %v1169_v41 = vld [vmem:[%s1531_s1 + $0x138] sm:$0xff] }
   0xb   :  { %647 = vmatpush.bf16.msra.mxu1 %v1143_v9  ;;  %v1147_v26 = vld [vmem:[%s1531_s1 + $0x88] sm:$0xff]  ;;  %v1146_v30 = vld [vmem:[%s1531_s1 + $0x80] sm:$0xff]  ;;  %v1177_v46 = vld [vmem:[%s1531_s1 + $0x178] sm:$0xff] }
   0xc   :  { %666 = vmatpush.bf16.msra.mxu2 %v1151_v10  ;;  %v1155_v27 = vld [vmem:[%s1531_s1 + $0xc8] sm:$0xff]  ;;  %v1154_v31 = vld [vmem:[%s1531_s1 + $0xc0] sm:$0xff]  ;;  %v1193_v47 = vld [vmem:[%s1531_s1 + $0x1f8] sm:$0xff] }
   0xd   :  { %685 = vmatpush.bf16.msra.mxu3 %v1159_v11  ;;  %v796_v32 = vld [vmem:[%s1532_s0] sm:$0xf]  ;;  %v1114_v34 = vld [vmem:[%s1532_s0 + $0x4] sm:$0xf]  ;;  %v804_v36 = vld [vmem:[%s1532_s0 + $0x8] sm:$0xf] }
   0xe   :  { %629 = vmatpush.bf16.msra.mxu0 %v1134_v12  ;;  %v1118_v33 = vld [vmem:[%s1532_s0 + $0x1c] sm:$0xf0]  ;;  %v798_v35 = vld [vmem:[%s1532_s0 + $0x20] sm:$0xf0]  ;;  %v1119_v37 = vld [vmem:[%s1532_s0 + $0x24] sm:$0xf0] }
   0xf   :  { %648 = vmatpush.bf16.msra.mxu1 %v1142_v13  ;;  %v1115_v38 = vld [vmem:[%s1532_s0 + $0xc] sm:$0xf]  ;;  %v797_v42 = vor.u32 %v1118_v33, %v796_v32  ;;  %v801_v43 = vor.u32 %v1114_v34, %v798_v35  ;;  %v805_v44 = vor.u32 %v1119_v37, %v804_v36  ;;  %v1184_v48 = vld [vmem:[%s1531_s1 + $0x1b0] sm:$0xff]  ;;  %v1182_v56 = vld [vmem:[%s1531_s1 + $0x1a0] sm:$0xff] }
  0x10   :  { %667 = vmatpush.bf16.msra.mxu2 %v1150_v14  ;;  %v806_v39 = vld [vmem:[%s1532_s0 + $0x28] sm:$0xf0]  ;;  %v1168_v49 = vld [vmem:[%s1531_s1 + $0x130] sm:$0xff]  ;;  %v1166_v57 = vld [vmem:[%s1531_s1 + $0x120] sm:$0xff] }
  0x11   :  { %686 = vmatpush.bf16.msra.mxu3 %v1158_v15  ;;  %v809_v45 = vor.u32 %v1115_v38, %v806_v39  ;;  %v1176_v50 = vld [vmem:[%s1531_s1 + $0x170] sm:$0xff]  ;;  %v1183_v52 = vld [vmem:[%s1531_s1 + $0x1a8] sm:$0xff]  ;;  %v1174_v58 = vld [vmem:[%s1531_s1 + $0x160] sm:$0xff] }
  0x12   :  { %630 = vmatpush.bf16.msra.mxu0 %v1133_v16  ;;  %v1192_v51 = vld [vmem:[%s1531_s1 + $0x1f0] sm:$0xff]  ;;  %v1167_v53 = vld [vmem:[%s1531_s1 + $0x128] sm:$0xff]  ;;  %v1190_v59 = vld [vmem:[%s1531_s1 + $0x1e0] sm:$0xff] }
  0x13   :  { %649 = vmatpush.bf16.msra.mxu1 %v1141_v17  ;;  %v1175_v54 = vld [vmem:[%s1531_s1 + $0x168] sm:$0xff]  ;;  %v828_v60 = vld [vmem:[%s1532_s0 + $0x40] sm:$0xf]  ;;  %v1122_v62 = vld [vmem:[%s1532_s0 + $0x44] sm:$0xf] }
  0x14   :  { %668 = vmatpush.bf16.msra.mxu2 %v1149_v18  ;;  %v1191_v55 = vld [vmem:[%s1531_s1 + $0x1e8] sm:$0xff]  ;;  %v1126_v61 = vld [vmem:[%s1532_s0 + $0x5c] sm:$0xf0]  ;;  %v830_v63 = vld [vmem:[%s1532_s0 + $0x60] sm:$0xf0] }
  0x15   :  { %687 = vmatpush.bf16.msra.mxu3 %v1157_v19  ;;  %v836_v0 = vld [vmem:[%s1532_s0 + $0x48] sm:$0xf]  ;;  %v1123_v2 = vld [vmem:[%s1532_s0 + $0x4c] sm:$0xf]  ;;  %v1181_v4 = vld [vmem:[%s1531_s1 + $0x198] sm:$0xff]  ;;  %v829_v6 = vor.u32 %v1126_v61, %v828_v60  ;;  %v833_v7 = vor.u32 %v1122_v62, %v830_v63 }
  0x16   :  { %631 = vmatpush.bf16.msra.mxu0 %v1132_v20  ;;  %v1127_v1 = vld [vmem:[%s1532_s0 + $0x64] sm:$0xf0]  ;;  %v838_v3 = vld [vmem:[%s1532_s0 + $0x68] sm:$0xf0]  ;;  %v1165_v5 = vld [vmem:[%s1531_s1 + $0x118] sm:$0xff] }
  0x17   :  { %650 = vmatpush.bf16.msra.mxu1 %v1140_v21  ;;  %v837_v8 = vor.u32 %v1127_v1, %v836_v0  ;;  %v841_v9 = vor.u32 %v1123_v2, %v838_v3  ;;  %v1173_v10 = vld [vmem:[%s1531_s1 + $0x158] sm:$0xff]  ;;  %v1180_v12 = vld [vmem:[%s1531_s1 + $0x190] sm:$0xff]  ;;  %v1179_v16 = vld [vmem:[%s1531_s1 + $0x188] sm:$0xff] }
  0x18   :  { %669 = vmatpush.bf16.msra.mxu2 %v1148_v22  ;;  %v1189_v11 = vld [vmem:[%s1531_s1 + $0x1d8] sm:$0xff]  ;;  %v1164_v13 = vld [vmem:[%s1531_s1 + $0x110] sm:$0xff]  ;;  %v1163_v17 = vld [vmem:[%s1531_s1 + $0x108] sm:$0xff] }
  0x19   :  { %688 = vmatpush.bf16.msra.mxu3 %v1156_v23  ;;  %v1172_v14 = vld [vmem:[%s1531_s1 + $0x150] sm:$0xff]  ;;  %v1171_v18 = vld [vmem:[%s1531_s1 + $0x148] sm:$0xff]  ;;  %v1178_v20 = vld [vmem:[%s1531_s1 + $0x180] sm:$0xff] }
  0x1a   :  { %632 = vmatpush.bf16.msra.mxu0 %v1131_v24  ;;  %v1188_v15 = vld [vmem:[%s1531_s1 + $0x1d0] sm:$0xff]  ;;  %v1187_v19 = vld [vmem:[%s1531_s1 + $0x1c8] sm:$0xff]  ;;  %v1162_v21 = vld [vmem:[%s1531_s1 + $0x100] sm:$0xff] }
  0x1b   :  { %651 = vmatpush.bf16.msra.mxu1 %v1139_v25  ;;  %v1170_v22 = vld [vmem:[%s1531_s1 + $0x140] sm:$0xff]  ;;  %v812_v24 = vld [vmem:[%s1532_s0 + $0x10] sm:$0xf]  ;;  %v1124_v38 = vld [vmem:[%s1532_s0 + $0x54] sm:$0xf] }
  0x1c   :  { %670 = vmatpush.bf16.msra.mxu2 %v1147_v26  ;;  %v1186_v23 = vld [vmem:[%s1531_s1 + $0x1c0] sm:$0xff]  ;;  %v1120_v25 = vld [vmem:[%s1532_s0 + $0x2c] sm:$0xf0]  ;;  %v1116_v26 = vld [vmem:[%s1532_s0 + $0x14] sm:$0xf] }
  0x1d   :  { %689 = vmatpush.bf16.msra.mxu3 %v1155_v27  ;;  %v814_v27 = vld [vmem:[%s1532_s0 + $0x30] sm:$0xf0]  ;;  %v813_v32 = vor.u32 %v1120_v25, %v812_v24  ;;  %v844_v36 = vld [vmem:[%s1532_s0 + $0x50] sm:$0xf] }
  0x1e   :  { %633 = vmatpush.bf16.msra.mxu0 %v1130_v28  ;;  %v820_v28 = vld [vmem:[%s1532_s0 + $0x18] sm:$0xf]  ;;  %v817_v33 = vor.u32 %v1116_v26, %v814_v27  ;;  %v1128_v37 = vld [vmem:[%s1532_s0 + $0x6c] sm:$0xf0]  ;;  %v846_v39 = vld [vmem:[%s1532_s0 + $0x70] sm:$0xf0] }
  0x1f   :  { %652 = vmatpush.bf16.msra.mxu1 %v1138_v29  ;;  %v1121_v29 = vld [vmem:[%s1532_s0 + $0x34] sm:$0xf0] }
  0x20   :  { %671 = vmatpush.bf16.msra.mxu2 %v1146_v30  ;;  %v1117_v30 = vld [vmem:[%s1532_s0 + $0x1c] sm:$0xf]  ;;  %v821_v34 = vor.u32 %v1121_v29, %v820_v28 }
  0x21   :  { %690 = vmatpush.bf16.msra.mxu3 %v1154_v31  ;;  %634 = vmatmul.bf16.vlgmr.msra.gmra.mxu0 %v797_v42  ;;  %v822_v31 = vld [vmem:[%s1532_s0 + $0x38] sm:$0xf0] }
  0x22   :  { %702 = vmatpush.bf16.msrb.mxu0 %v1169_v41  ;;  %653 = vmatmul.bf16.vlgmr.msra.gmra.mxu1 %v801_v43  ;;  %v825_v35 = vor.u32 %v1117_v30, %v822_v31  ;;  %v1129_v41 = vld [vmem:[%s1532_s0 + $0x74] sm:$0xf0]  ;;  %v1125_v42 = vld [vmem:[%s1532_s0 + $0x5c] sm:$0xf] }
  0x23   :  { %672 = vmatmul.bf16.vlgmr.msra.gmra.mxu2 %v805_v44  ;;  %721 = vmatpush.bf16.msrb.mxu1 %v1177_v46  ;;  %v854_v43 = vld [vmem:[%s1532_s0 + $0x78] sm:$0xf0]  ;;  %v845_v44 = vor.u32 %v1128_v37, %v844_v36 }
  0x24   :  { %740 = vmatpush.bf16.msrb.mxu2 %v1185_v40  ;;  %691 = vmatmul.bf16.vlgmr.msra.gmra.mxu3 %v809_v45  ;;  %v852_v40 = vld [vmem:[%s1532_s0 + $0x58] sm:$0xf]  ;;  %v849_v45 = vor.u32 %v1124_v38, %v846_v39 }
  0x25   :  { %759 = vmatpush.bf16.msrb.mxu3 %v1193_v47  ;;  %v853_v46 = vor.u32 %v1129_v41, %v852_v40  ;;  %v857_v47 = vor.u32 %v1125_v42, %v854_v43 }
  0x26   :  { %703 = vmatpush.bf16.msrb.mxu0 %v1168_v49 }
  0x27   :  { %722 = vmatpush.bf16.msrb.mxu1 %v1176_v50 }
  0x28   :  { %741 = vmatpush.bf16.msrb.mxu2 %v1184_v48 }
  0x29   :  { %760 = vmatpush.bf16.msrb.mxu3 %v1192_v51 }
  0x2a   :  { %704 = vmatpush.bf16.msrb.mxu0 %v1167_v53 }
  0x2b   :  { %723 = vmatpush.bf16.msrb.mxu1 %v1175_v54 }
  0x2c   :  { %742 = vmatpush.bf16.msrb.mxu2 %v1183_v52 }
  0x2d   :  { %761 = vmatpush.bf16.msrb.mxu3 %v1191_v55 }
  0x2e   :  { %705 = vmatpush.bf16.msrb.mxu0 %v1166_v57 }
  0x2f   :  { %724 = vmatpush.bf16.msrb.mxu1 %v1174_v58  ;;  %v1205_v58 = vld [vmem:[%s1533_s2] ss:$0 sm:$0xff] }
  0x30   :  { %743 = vmatpush.bf16.msrb.mxu2 %v1182_v56 }
  0x31   :  { %762 = vmatpush.bf16.msrb.mxu3 %v1190_v59  ;;  %639 = vmatmul.bf16.gmra.mxu0 %v829_v6 }
  0x32   :  { %706 = vmatpush.bf16.msrb.mxu0 %v1165_v5  ;;  %658 = vmatmul.bf16.gmra.mxu1 %v833_v7 }
  0x33   :  { %677 = vmatmul.bf16.gmra.mxu2 %v837_v8  ;;  %725 = vmatpush.bf16.msrb.mxu1 %v1173_v10 }
  0x34   :  { %744 = vmatpush.bf16.msrb.mxu2 %v1181_v4  ;;  %696 = vmatmul.bf16.gmra.mxu3 %v841_v9 }
  0x35   :  { %763 = vmatpush.bf16.msrb.mxu3 %v1189_v11 }
  0x36   :  { %707 = vmatpush.bf16.msrb.mxu0 %v1164_v13 }
  0x37   :  { %726 = vmatpush.bf16.msrb.mxu1 %v1172_v14 }
  0x38   :  { %745 = vmatpush.bf16.msrb.mxu2 %v1180_v12 }
  0x39   :  { %764 = vmatpush.bf16.msrb.mxu3 %v1188_v15 }
  0x3a   :  { %708 = vmatpush.bf16.msrb.mxu0 %v1163_v17 }
  0x3b   :  { %727 = vmatpush.bf16.msrb.mxu1 %v1171_v18 }
  0x3c   :  { %746 = vmatpush.bf16.msrb.mxu2 %v1179_v16 }
  0x3d   :  { %765 = vmatpush.bf16.msrb.mxu3 %v1187_v19 }
  0x3e   :  { %709 = vmatpush.bf16.msrb.mxu0 %v1162_v21 }
  0x3f   :  { %728 = vmatpush.bf16.msrb.mxu1 %v1170_v22 }
  0x40   :  { %747 = vmatpush.bf16.msrb.mxu2 %v1178_v20 }
  0x41   :  { %766 = vmatpush.bf16.msrb.mxu3 %v1186_v23  ;;  %710 = vmatmul.bf16.vlgmr.msrb.gmra.mxu0 %v813_v32 }
  0x42   :  { %729 = vmatmul.bf16.vlgmr.msrb.gmra.mxu1 %v817_v33 }
  0x43   :  { %748 = vmatmul.bf16.vlgmr.msrb.gmra.mxu2 %v821_v34 }
  0x44   :  { %767 = vmatmul.bf16.vlgmr.msrb.gmra.mxu3 %v825_v35 }
  0x51   :  { %715 = vmatmul.bf16.gmra.mxu0 %v845_v44 }
  0x52   :  { %734 = vmatmul.bf16.gmra.mxu1 %v849_v45 }
  0x53   :  { %753 = vmatmul.bf16.gmra.mxu2 %v853_v46 }
  0x54   :  { %772 = vmatmul.bf16.gmra.mxu3 %v857_v47 }
  0x9e   :  { %v635_v48 = vpop.f32.mrf.mxu0 }
  0x9f   :  { %v654_v49 = vpop.f32.mrf.mxu1  ;;  %v636_v59 = vadd.f32 %v1205_v58, %v635_v48 }
  0xa1   :  { %v655_v0 = vadd.f32 %v654_v49, %v636_v59 }
  0xa6   :  { %v673_v50 = vpop.f32.mrf.mxu2  ;;  %v637_v52 = vpop.f32.mrf.mxu0 }
  0xa7   :  { %v692_v51 = vpop.f32.mrf.mxu3  ;;  %v656_v53 = vpop.f32.mrf.mxu1  ;;  %v638_v1 = vadd.f32 %v1205_v58, %v637_v52  ;;  %v674_v2 = vadd.f32 %v673_v50, %v655_v0 }
  0xa9   :  { %v657_v7 = vadd.f32 %v656_v53, %v638_v1  ;;  %v693_v8 = vadd.f32 %v692_v51, %v674_v2 }
  0xae   :  { %v675_v54 = vpop.f32.mrf.mxu2  ;;  %v640_v56 = vpop.f32.mrf.mxu0 }
  0xaf   :  { %v694_v55 = vpop.f32.mrf.mxu3  ;;  %v659_v57 = vpop.f32.mrf.mxu1  ;;  %v676_v9 = vadd.f32 %v675_v54, %v657_v7  ;;  %v641_v11 = vadd.f32 %v1205_v58, %v640_v56 }
  0xb1   :  { %v695_v13 = vadd.f32 %v694_v55, %v676_v9  ;;  %v660_v19 = vadd.f32 %v659_v57, %v641_v11 }
  0xb6   :  { %v678_v60 = vpop.f32.mrf.mxu2  ;;  %v642_v62 = vpop.f32.mrf.mxu0 }
  0xb7   :  { %v697_v61 = vpop.f32.mrf.mxu3  ;;  %v661_v63 = vpop.f32.mrf.mxu1  ;;  %v643_v21 = vadd.f32 %v1205_v58, %v642_v62  ;;  %v679_v23 = vadd.f32 %v678_v60, %v660_v19 }
  0xb9   :  { %v662_v29 = vadd.f32 %v661_v63, %v643_v21  ;;  %v698_v31 = vadd.f32 %v697_v61, %v679_v23 }
  0xbe   :  { %v680_v3 = vpop.f32.mrf.mxu2  ;;  %v711_v5 = vpop.f32.mrf.mxu0 }
  0xbf   :  { %v699_v4 = vpop.f32.mrf.mxu3  ;;  %v730_v6 = vpop.f32.mrf.mxu1  ;;  %v712_v10 = vadd.f32 %v711_v5, %v693_v8  ;;  %v681_v33 = vadd.f32 %v680_v3, %v662_v29 }
  0xc1   :  { %v731_v16 = vadd.f32 %v730_v6, %v712_v10  ;;  %v700_v36 = vadd.f32 %v699_v4, %v681_v33 }
  0xc6   :  { %v749_v12 = vpop.f32.mrf.mxu2  ;;  %v713_v15 = vpop.f32.mrf.mxu0 }
  0xc7   :  { %v768_v14 = vpop.f32.mrf.mxu3  ;;  %v732_v17 = vpop.f32.mrf.mxu1  ;;  %v714_v18 = vadd.f32 %v713_v15, %v695_v13  ;;  %v750_v20 = vadd.f32 %v749_v12, %v731_v16 }
  0xc9   :  { %v733_v22 = vadd.f32 %v732_v17, %v714_v18  ;;  %v769_v24 = vadd.f32 %v768_v14, %v750_v20 }
  0xcb   :  { %1206 = vtanh.f32 %v769_v24 }
  0xce   :  { %v751_v25 = vpop.f32.mrf.mxu2  ;;  %v716_v28 = vpop.f32.mrf.mxu0 }
  0xcf   :  { %v752_v26 = vadd.f32 %v751_v25, %v733_v22  ;;  %v770_v27 = vpop.f32.mrf.mxu3  ;;  %v735_v32 = vpop.f32.mrf.mxu1  ;;  %v717_v34 = vadd.f32 %v716_v28, %v698_v31 }
  0xd1   :  { %v771_v30 = vadd.f32 %v770_v27, %v752_v26  ;;  %v1207_v39 = vpop.eup %1206  ;;  %v736_v40 = vadd.f32 %v735_v32, %v717_v34 }
  0xd3   :  { %1208 = vtanh.f32 %v771_v30 }
  0xd6   :  { %v754_v35 = vpop.f32.mrf.mxu2  ;;  %v718_v38 = vpop.f32.mrf.mxu0 }
  0xd7   :  { %v773_v37 = vpop.f32.mrf.mxu3  ;;  %v719_v42 = vadd.f32 %v718_v38, %v700_v36  ;;  %v755_v44 = vadd.f32 %v754_v35, %v736_v40  ;;  %v737_v45 = vpop.f32.mrf.mxu1 }
  0xd9   :  { %v1209_v41 = vpop.eup %1208  ;;  %v738_v46 = vadd.f32 %v737_v45, %v719_v42  ;;  %v774_v47 = vadd.f32 %v773_v37, %v755_v44 }
  0xda   :  { %v1197_v43 = vpack.c.bf16 %v1209_v41, %v1207_v39 }
  0xdb   :  { %1210 = vtanh.f32 %v774_v47 }
  0xdc   :  { %1198 = vst [vmem:[%s1534_s3] sm:$0xff] %v1197_v43  }
  0xde   :  { %v756_v48 = vpop.f32.mrf.mxu2 }
  0xdf   :  { %v757_v49 = vadd.f32 %v756_v48, %v738_v46  ;;  %v775_v50 = vpop.f32.mrf.mxu3 }
  0xe1   :  { %v776_v51 = vadd.f32 %v775_v50, %v757_v49  ;;  %v1211_v52 = vpop.eup %1210 }
  0xe3   :  { %1212 = vtanh.f32 %v776_v51 }
  0xe9   :  { %v1213_v53 = vpop.eup %1212 }
  0xea   :  { %v1202_v54 = vpack.c.bf16 %v1213_v53, %v1211_v52 }
  0xec   :  { %1204 = vst [vmem:[%s1534_s3 + $0x8] sm:$0xff] %v1202_v54  }

// kernel: conv_forward.9
= control target key start
LH: loop header
LB: loop body
LE: loop exit
PB: predicated region body
PF: predicated region fallthrough
CT: control target
= control target key end

     0   :  { %8 = vsyncpa [#allocation3], 0  ;;  %s447_s0 = inlined_call_operand.vmem [shape: bf16[2,256], index: 0, kind: input, shape index: {}]   ;;  %s448_s1 = inlined_call_operand.vmem [shape: bf16[256,128], index: 1, kind: input, shape index: {}]   ;;  %s449_s2 = inlined_call_operand.vmem [shape: f32[1,128], index: 2, kind: input, shape index: {}]   ;;  %s450_s3 = inlined_call_operand.hbm [shape: f32[2,128], index: 3, kind: output, shape index: {}]  }
   0x1   :  { %v303_v0 = vld [vmem:[%s448_s1 + $0x38] sm:$0xff]  ;;  %v302_v2 = vld [vmem:[%s448_s1 + $0x30] sm:$0xff]  ;;  %v15_v4 = vld [vmem:[%s447_s0] sm:$0x3] }
   0x2   :  { %v311_v1 = vld [vmem:[%s448_s1 + $0x78] sm:$0xff]  ;;  %182 = vmatpush.bf16.msra.mxu0 %v303_v0  ;;  %v310_v3 = vld [vmem:[%s448_s1 + $0x70] sm:$0xff]  ;;  %v301_v5 = vld [vmem:[%s448_s1 + $0x28] sm:$0xff]  ;;  %60 = vst [vmem:[#allocation1] ss:$9 sm:$0xff] %v15_v4 }
   0x3   :  { %196 = vmatpush.bf16.msra.mxu1 %v311_v1  ;;  %v309_v6 = vld [vmem:[%s448_s1 + $0x68] sm:$0xff]  ;;  %v16_v7 = vld [vmem:[%s447_s0 + $0x2] sm:$0x3]  ;;  %v17_v8 = vld [vmem:[%s447_s0 + $0x4] sm:$0x3] }
   0x4   :  { %v18_v9 = vld [vmem:[%s447_s0 + $0x6] sm:$0x3]  ;;  %v19_v10 = vld [vmem:[%s447_s0 + $0x8] sm:$0x3]  ;;  %63 = vst [vmem:[#allocation1 + $0x1] ss:$9 sm:$0xff] %v16_v7 }
   0x5   :  { %v300_v11 = vld [vmem:[%s448_s1 + $0x20] sm:$0xff]  ;;  %v20_v13 = vld [vmem:[%s447_s0 + $0xa] sm:$0x3]  ;;  %66 = vst [vmem:[#allocation1 + $0x2] ss:$9 sm:$0xff] %v17_v8  ;;  %v299_v16 = vld [vmem:[%s448_s1 + $0x18] sm:$0xff] }
   0x6   :  { %183 = vmatpush.bf16.msra.mxu0 %v302_v2  ;;  %v308_v12 = vld [vmem:[%s448_s1 + $0x60] sm:$0xff]  ;;  %v21_v14 = vld [vmem:[%s447_s0 + $0xc] sm:$0x3]  ;;  %69 = vst [vmem:[#allocation1 + $0x3] ss:$9 sm:$0xff] %v18_v9  ;;  %v307_v17 = vld [vmem:[%s448_s1 + $0x58] sm:$0xff] }
   0x7   :  { %197 = vmatpush.bf16.msra.mxu1 %v310_v3  ;;  %v22_v15 = vld [vmem:[%s447_s0 + $0xe] sm:$0x3]  ;;  %72 = vst [vmem:[#allocation1 + $0x4] ss:$9 sm:$0xff] %v19_v10  ;;  %v298_v18 = vld [vmem:[%s448_s1 + $0x10] sm:$0xff]  ;;  %v296_v22 = vld [vmem:[%s448_s1] sm:$0xff] }
   0x8   :  { %75 = vst [vmem:[#allocation1 + $0x5] ss:$9 sm:$0xff] %v20_v13  ;;  %v306_v19 = vld [vmem:[%s448_s1 + $0x50] sm:$0xff]  ;;  %v297_v20 = vld [vmem:[%s448_s1 + $0x8] sm:$0xff]  ;;  %v304_v23 = vld [vmem:[%s448_s1 + $0x40] sm:$0xff] }
   0x9   :  { %78 = vst [vmem:[#allocation1 + $0x6] ss:$9 sm:$0xff] %v21_v14  ;;  %v305_v21 = vld [vmem:[%s448_s1 + $0x48] sm:$0xff]  ;;  %v315_v26 = vld [vmem:[%s449_s2] ss:$0 sm:$0xff] }
   0xa   :  { %184 = vmatpush.bf16.msra.mxu0 %v301_v5  ;;  %81 = vst [vmem:[#allocation1 + $0x7] ss:$9 sm:$0xff] %v22_v15 }
   0xb   :  { %198 = vmatpush.bf16.msra.mxu1 %v309_v6 }
   0xe   :  { %185 = vmatpush.bf16.msra.mxu0 %v300_v11 }
   0xf   :  { %199 = vmatpush.bf16.msra.mxu1 %v308_v12 }
  0x11   :  { %v82_v24 = vld [vmem:[#allocation1] sm:$0xff]  ;;  %v83_v25 = vld [vmem:[#allocation1 + $0x9] sm:$0xff] }
  0x12   :  { %186 = vmatpush.bf16.msra.mxu0 %v299_v16 }
  0x13   :  { %200 = vmatpush.bf16.msra.mxu1 %v307_v17 }
  0x16   :  { %187 = vmatpush.bf16.msra.mxu0 %v298_v18 }
  0x17   :  { %201 = vmatpush.bf16.msra.mxu1 %v306_v19 }
  0x1a   :  { %188 = vmatpush.bf16.msra.mxu0 %v297_v20 }
  0x1b   :  { %202 = vmatpush.bf16.msra.mxu1 %v305_v21 }
  0x1e   :  { %189 = vmatpush.bf16.msra.mxu0 %v296_v22 }
  0x1f   :  { %203 = vmatpush.bf16.msra.mxu1 %v304_v23 }
  0x21   :  { %190 = vmatmul.bf16.vlgmr.msra.gmra.mxu0 %v82_v24 }
  0x22   :  { %204 = vmatmul.bf16.vlgmr.msra.gmra.mxu1 %v83_v25 }
  0x9e   :  { %v191_v27 = vpop.f32.mrf.mxu0 }
  0x9f   :  { %v205_v28 = vpop.f32.mrf.mxu1  ;;  %v192_v29 = vadd.f32 %v315_v26, %v191_v27 }
  0xa1   :  { %v206_v30 = vadd.f32 %v205_v28, %v192_v29 }
  0xa3   :  { %316 = vtanh.f32 %v206_v30 }
  0xa6   :  { %v193_v31 = vpop.f32.mrf.mxu0 }
  0xa7   :  { %v194_v32 = vadd.f32 %v315_v26, %v193_v31  ;;  %v207_v33 = vpop.f32.mrf.mxu1 }
  0xa9   :  { %v317_v34 = vpop.eup %316  ;;  %v208_v35 = vadd.f32 %v207_v33, %v194_v32 }
  0xaa   :  { %212 = vst [vmem:[#allocation2] sm:$0xff] %v317_v34 }
  0xab   :  { %318 = vtanh.f32 %v208_v35 }
  0xb1   :  { %v319_v36 = vpop.eup %318 }
  0xb2   :  { %213 = vst [vmem:[#allocation2 + $0x8] sm:$0xff] %v319_v36 }
  0xb3   :  { %217 = vsyncadd [#allocation3], 224  ;;  %s220_s8 = sshll.u32 %s450_s3, 4  ;;  %s346_s2 = smov [#allocation2]   ;;  %s221_s8 = int_to_ptr.hbm [resolvable:$true] %s220_s8 }
  0xb4   :  { %s218_s9 = sshll.u32 %s346_s2, 4  ;;  %s347_s10 = smov 32   ;;  %s219_s9 = int_to_ptr.vmem [resolvable:$true] %s218_s9 }
  0xb5   :  { %s348_s11 = smov 2  }
  0xb6   :  { %226 = dma.vmem_to_hbm [thread:$0]  %s219_s9, 32, %s221_s8, [#allocation3], %s347_s10, %s347_s10, %s348_s11  }
  0xb7   :  { %344 = dma.done.wait [#allocation3], 256  }
  0xb8   :  { %345 = vsyncadd [#allocation3], 4294967040 }
  0xb9   :  { %231 = vsyncpa [#allocation3], 1 }

// kernel: conv_forward.8
= control target key start
LH: loop header
LB: loop body
LE: loop exit
PB: predicated region body
PF: predicated region fallthrough
CT: control target
= control target key end

     0   :  { %vm2101_vm0 = vcmask 1040384   ;;  %s5140_s0 = inlined_call_operand.vmem [shape: bf16[2,2048], index: 0, kind: input, shape index: {}]   ;;  %s5141_s1 = inlined_call_operand.vmem [shape: bf16[2048,256], index: 1, kind: input, shape index: {}]   ;;  %s5142_s2 = inlined_call_operand.vmem [shape: f32[1,256], index: 2, kind: input, shape index: {}]   ;;  %s5143_s3 = inlined_call_operand.vmem [shape: bf16[2,256], index: 3, kind: output, shape index: {}]  }
   0x1   :  { %v2244_v0 = vld [vmem:[%s5141_s1 + $0x70] sm:$0xf]  ;;  %v3225_v1 = vld [vmem:[%s5141_s1 + $0x74] sm:$0xf0]  ;;  %v2236_v11 = vld [vmem:[%s5141_s1 + $0x60] sm:$0xf] }
   0x2   :  { %v2308_v2 = vld [vmem:[%s5141_s1 + $0xf0] sm:$0xf]  ;;  %v2245_v3 = vor.u32 %v3225_v1, %v2244_v0  ;;  %v3241_v4 = vld [vmem:[%s5141_s1 + $0xf4] sm:$0xf0]  ;;  %v3223_v13 = vld [vmem:[%s5141_s1 + $0x64] sm:$0xf0] }
   0x3   :  { %v2372_v5 = vld [vmem:[%s5141_s1 + $0x170] sm:$0xf]  ;;  %v3257_v6 = vld [vmem:[%s5141_s1 + $0x174] sm:$0xf0]  ;;  %v2309_v7 = vor.u32 %v3241_v4, %v2308_v2  ;;  %v2300_v14 = vld [vmem:[%s5141_s1 + $0xe0] sm:$0xf]  ;;  %v2237_v16 = vor.u32 %v3223_v13, %v2236_v11 }
   0x4   :  { %v2373_v8 = vor.u32 %v3257_v6, %v2372_v5  ;;  %v2436_v9 = vld [vmem:[%s5141_s1 + $0x1f0] sm:$0xf]  ;;  %v3273_v10 = vld [vmem:[%s5141_s1 + $0x1f4] sm:$0xf0]  ;;  %1643 = vmatpush.bf16.msra.mxu0 %v2245_v3  ;;  %v3239_v15 = vld [vmem:[%s5141_s1 + $0xe4] sm:$0xf0] }
   0x5   :  { %v2437_v12 = vor.u32 %v3273_v10, %v2436_v9  ;;  %1657 = vmatpush.bf16.msra.mxu1 %v2309_v7  ;;  %v2301_v17 = vor.u32 %v3239_v15, %v2300_v14  ;;  %v2364_v18 = vld [vmem:[%s5141_s1 + $0x160] sm:$0xf]  ;;  %v3255_v19 = vld [vmem:[%s5141_s1 + $0x164] sm:$0xf0]  ;;  %v2228_v23 = vld [vmem:[%s5141_s1 + $0x50] sm:$0xf] }
   0x6   :  { %1671 = vmatpush.bf16.msra.mxu2 %v2373_v8  ;;  %v2428_v20 = vld [vmem:[%s5141_s1 + $0x1e0] sm:$0xf]  ;;  %v2365_v21 = vor.u32 %v3255_v19, %v2364_v18  ;;  %v3271_v22 = vld [vmem:[%s5141_s1 + $0x1e4] sm:$0xf0]  ;;  %v3221_v24 = vld [vmem:[%s5141_s1 + $0x54] sm:$0xf0] }
   0x7   :  { %1685 = vmatpush.bf16.msra.mxu3 %v2437_v12  ;;  %v2429_v25 = vor.u32 %v3271_v22, %v2428_v20  ;;  %v2292_v26 = vld [vmem:[%s5141_s1 + $0xd0] sm:$0xf]  ;;  %v3237_v27 = vld [vmem:[%s5141_s1 + $0xd4] sm:$0xf0]  ;;  %v2229_v29 = vor.u32 %v3221_v24, %v2228_v23  ;;  %v2220_v35 = vld [vmem:[%s5141_s1 + $0x40] sm:$0xf] }
   0x8   :  { %v2356_v28 = vld [vmem:[%s5141_s1 + $0x150] sm:$0xf]  ;;  %1644 = vmatpush.bf16.msra.mxu0 %v2237_v16  ;;  %v3253_v30 = vld [vmem:[%s5141_s1 + $0x154] sm:$0xf0]  ;;  %v2293_v33 = vor.u32 %v3237_v27, %v2292_v26  ;;  %v3219_v36 = vld [vmem:[%s5141_s1 + $0x44] sm:$0xf0] }
   0x9   :  { %v2420_v31 = vld [vmem:[%s5141_s1 + $0x1d0] sm:$0xf]  ;;  %v3269_v32 = vld [vmem:[%s5141_s1 + $0x1d4] sm:$0xf0]  ;;  %1658 = vmatpush.bf16.msra.mxu1 %v2301_v17  ;;  %v2357_v34 = vor.u32 %v3253_v30, %v2356_v28  ;;  %v2284_v37 = vld [vmem:[%s5141_s1 + $0xc0] sm:$0xf]  ;;  %v2221_v44 = vor.u32 %v3219_v36, %v2220_v35 }
   0xa   :  { %1672 = vmatpush.bf16.msra.mxu2 %v2365_v21  ;;  %v2421_v38 = vor.u32 %v3269_v32, %v2420_v31  ;;  %v3235_v39 = vld [vmem:[%s5141_s1 + $0xc4] sm:$0xf0]  ;;  %v2348_v40 = vld [vmem:[%s5141_s1 + $0x140] sm:$0xf]  ;;  %v2212_v47 = vld [vmem:[%s5141_s1 + $0x30] sm:$0xf] }
   0xb   :  { %1686 = vmatpush.bf16.msra.mxu3 %v2429_v25  ;;  %v3251_v41 = vld [vmem:[%s5141_s1 + $0x144] sm:$0xf0]  ;;  %v2412_v42 = vld [vmem:[%s5141_s1 + $0x1c0] sm:$0xf]  ;;  %v2285_v45 = vor.u32 %v3235_v39, %v2284_v37  ;;  %v3217_v48 = vld [vmem:[%s5141_s1 + $0x34] sm:$0xf0] }
   0xc   :  { %v3267_v43 = vld [vmem:[%s5141_s1 + $0x1c4] sm:$0xf0]  ;;  %1645 = vmatpush.bf16.msra.mxu0 %v2229_v29  ;;  %v2349_v46 = vor.u32 %v3251_v41, %v2348_v40  ;;  %v2276_v49 = vld [vmem:[%s5141_s1 + $0xb0] sm:$0xf]  ;;  %v3233_v51 = vld [vmem:[%s5141_s1 + $0xb4] sm:$0xf0]  ;;  %v2213_v56 = vor.u32 %v3217_v48, %v2212_v47 }
   0xd   :  { %1659 = vmatpush.bf16.msra.mxu1 %v2293_v33  ;;  %v2413_v50 = vor.u32 %v3267_v43, %v2412_v42  ;;  %v2340_v52 = vld [vmem:[%s5141_s1 + $0x130] sm:$0xf]  ;;  %v3249_v53 = vld [vmem:[%s5141_s1 + $0x134] sm:$0xf0]  ;;  %v2277_v57 = vor.u32 %v3233_v51, %v2276_v49  ;;  %v2204_v59 = vld [vmem:[%s5141_s1 + $0x20] sm:$0xf] }
   0xe   :  { %1673 = vmatpush.bf16.msra.mxu2 %v2357_v34  ;;  %v2404_v54 = vld [vmem:[%s5141_s1 + $0x1b0] sm:$0xf]  ;;  %v3265_v55 = vld [vmem:[%s5141_s1 + $0x1b4] sm:$0xf0]  ;;  %v2341_v58 = vor.u32 %v3249_v53, %v2340_v52  ;;  %v3215_v60 = vld [vmem:[%s5141_s1 + $0x24] sm:$0xf0] }
   0xf   :  { %1687 = vmatpush.bf16.msra.mxu3 %v2421_v38  ;;  %v2268_v61 = vld [vmem:[%s5141_s1 + $0xa0] sm:$0xf]  ;;  %v2405_v62 = vor.u32 %v3265_v55, %v2404_v54  ;;  %v3231_v63 = vld [vmem:[%s5141_s1 + $0xa4] sm:$0xf0]  ;;  %v2205_v4 = vor.u32 %v3215_v60, %v2204_v59  ;;  %v2196_v7 = vld [vmem:[%s5141_s1 + $0x10] sm:$0xf] }
  0x10   :  { %1646 = vmatpush.bf16.msra.mxu0 %v2221_v44  ;;  %v2332_v0 = vld [vmem:[%s5141_s1 + $0x120] sm:$0xf]  ;;  %v3247_v1 = vld [vmem:[%s5141_s1 + $0x124] sm:$0xf0]  ;;  %v2269_v5 = vor.u32 %v3231_v63, %v2268_v61  ;;  %v3213_v8 = vld [vmem:[%s5141_s1 + $0x14] sm:$0xf0] }
  0x11   :  { %1660 = vmatpush.bf16.msra.mxu1 %v2285_v45  ;;  %v2396_v2 = vld [vmem:[%s5141_s1 + $0x1a0] sm:$0xf]  ;;  %v3263_v3 = vld [vmem:[%s5141_s1 + $0x1a4] sm:$0xf0]  ;;  %v2333_v6 = vor.u32 %v3247_v1, %v2332_v0  ;;  %v2260_v9 = vld [vmem:[%s5141_s1 + $0x90] sm:$0xf]  ;;  %v2197_v16 = vor.u32 %v3213_v8, %v2196_v7 }
  0x12   :  { %1674 = vmatpush.bf16.msra.mxu2 %v2349_v46  ;;  %v2397_v10 = vor.u32 %v3263_v3, %v2396_v2  ;;  %v3229_v11 = vld [vmem:[%s5141_s1 + $0x94] sm:$0xf0]  ;;  %v2324_v12 = vld [vmem:[%s5141_s1 + $0x110] sm:$0xf]  ;;  %v2188_v17 = vld [vmem:[%s5141_s1] sm:$0xf] }
  0x13   :  { %1688 = vmatpush.bf16.msra.mxu3 %v2413_v50  ;;  %v3245_v13 = vld [vmem:[%s5141_s1 + $0x114] sm:$0xf0]  ;;  %v2388_v14 = vld [vmem:[%s5141_s1 + $0x190] sm:$0xf]  ;;  %v3211_v18 = vld [vmem:[%s5141_s1 + $0x4] sm:$0xf0]  ;;  %v2261_v19 = vor.u32 %v3229_v11, %v2260_v9 }
  0x14   :  { %1647 = vmatpush.bf16.msra.mxu0 %v2213_v56  ;;  %v3261_v15 = vld [vmem:[%s5141_s1 + $0x194] sm:$0xf0]  ;;  %v2325_v20 = vor.u32 %v3245_v13, %v2324_v12  ;;  %v2252_v21 = vld [vmem:[%s5141_s1 + $0x80] sm:$0xf]  ;;  %v3227_v22 = vld [vmem:[%s5141_s1 + $0x84] sm:$0xf0]  ;;  %v2189_v31 = vor.u32 %v3211_v18, %v2188_v17 }
  0x15   :  { %1661 = vmatpush.bf16.msra.mxu1 %v2277_v57  ;;  %v2316_v23 = vld [vmem:[%s5141_s1 + $0x100] sm:$0xf]  ;;  %v2389_v24 = vor.u32 %v3261_v15, %v2388_v14  ;;  %v3243_v25 = vld [vmem:[%s5141_s1 + $0x104] sm:$0xf0]  ;;  %v2500_v28 = vld [vmem:[%s5141_s1 + $0x270] sm:$0xf]  ;;  %v2253_v35 = vor.u32 %v3227_v22, %v2252_v21 }
  0x16   :  { %1675 = vmatpush.bf16.msra.mxu2 %v2341_v58  ;;  %v2380_v26 = vld [vmem:[%s5141_s1 + $0x180] sm:$0xf]  ;;  %v3259_v27 = vld [vmem:[%s5141_s1 + $0x184] sm:$0xf0]  ;;  %v3289_v29 = vld [vmem:[%s5141_s1 + $0x274] sm:$0xf0]  ;;  %v2317_v36 = vor.u32 %v3243_v25, %v2316_v23 }
  0x17   :  { %1689 = vmatpush.bf16.msra.mxu3 %v2405_v62  ;;  %v2564_v30 = vld [vmem:[%s5141_s1 + $0x2f0] sm:$0xf]  ;;  %v3305_v32 = vld [vmem:[%s5141_s1 + $0x2f4] sm:$0xf0]  ;;  %v2381_v39 = vor.u32 %v3259_v27, %v2380_v26  ;;  %v2501_v40 = vor.u32 %v3289_v29, %v2500_v28  ;;  %v2492_v41 = vld [vmem:[%s5141_s1 + $0x260] sm:$0xf] }
  0x18   :  { %1648 = vmatpush.bf16.msra.mxu0 %v2205_v4  ;;  %v2628_v33 = vld [vmem:[%s5141_s1 + $0x370] sm:$0xf]  ;;  %v3321_v34 = vld [vmem:[%s5141_s1 + $0x374] sm:$0xf0]  ;;  %v3287_v42 = vld [vmem:[%s5141_s1 + $0x264] sm:$0xf0]  ;;  %v2565_v43 = vor.u32 %v3305_v32, %v2564_v30 }
  0x19   :  { %1662 = vmatpush.bf16.msra.mxu1 %v2269_v5  ;;  %v2692_v37 = vld [vmem:[%s5141_s1 + $0x3f0] sm:$0xf]  ;;  %v3337_v38 = vld [vmem:[%s5141_s1 + $0x3f4] sm:$0xf0]  ;;  %v2629_v44 = vor.u32 %v3321_v34, %v2628_v33  ;;  %v2556_v45 = vld [vmem:[%s5141_s1 + $0x2e0] sm:$0xf]  ;;  %v2493_v57 = vor.u32 %v3287_v42, %v2492_v41 }
  0x1a   :  { %1676 = vmatpush.bf16.msra.mxu2 %v2333_v6  ;;  %v3303_v46 = vld [vmem:[%s5141_s1 + $0x2e4] sm:$0xf0]  ;;  %v2620_v47 = vld [vmem:[%s5141_s1 + $0x360] sm:$0xf]  ;;  %v2693_v48 = vor.u32 %v3337_v38, %v2692_v37  ;;  %v2484_v52 = vld [vmem:[%s5141_s1 + $0x250] sm:$0xf] }
  0x1b   :  { %1690 = vmatpush.bf16.msra.mxu3 %v2397_v10  ;;  %v3319_v49 = vld [vmem:[%s5141_s1 + $0x364] sm:$0xf0]  ;;  %v2684_v50 = vld [vmem:[%s5141_s1 + $0x3e0] sm:$0xf]  ;;  %v3285_v53 = vld [vmem:[%s5141_s1 + $0x254] sm:$0xf0]  ;;  %v2557_v63 = vor.u32 %v3303_v46, %v2556_v45 }
  0x1c   :  { %1649 = vmatpush.bf16.msra.mxu0 %v2197_v16  ;;  %v3335_v51 = vld [vmem:[%s5141_s1 + $0x3e4] sm:$0xf0]  ;;  %v14_v54 = vld [vmem:[%s5140_s0] sm:$0xff]  ;;  %v16_v55 = vld [vmem:[%s5140_s0 + $0x10] sm:$0xff]  ;;  %v2621_v0 = vor.u32 %v3319_v49, %v2620_v47  ;;  %v2485_v8 = vor.u32 %v3285_v53, %v2484_v52 }
  0x1d   :  { %1663 = vmatpush.bf16.msra.mxu1 %v2261_v19  ;;  %v18_v56 = vld [vmem:[%s5140_s0 + $0x20] sm:$0xff]  ;;  %v2548_v58 = vld [vmem:[%s5141_s1 + $0x2d0] sm:$0xf]  ;;  %v3301_v59 = vld [vmem:[%s5141_s1 + $0x2d4] sm:$0xf0]  ;;  %v2685_v3 = vor.u32 %v3335_v51, %v2684_v50 }
  0x1e   :  { %1677 = vmatpush.bf16.msra.mxu2 %v2325_v20  ;;  %v2612_v60 = vld [vmem:[%s5141_s1 + $0x350] sm:$0xf]  ;;  %v3317_v61 = vld [vmem:[%s5141_s1 + $0x354] sm:$0xf0]  ;;  %293 = vst [vmem:[#allocation1] ss:$9 sm:$0xff] %v14_v54  ;;  %v2549_v11 = vor.u32 %v3301_v59, %v2548_v58 }
  0x1f   :  { %1691 = vmatpush.bf16.msra.mxu3 %v2389_v24  ;;  %v20_v62 = vld [vmem:[%s5140_s0 + $0x30] sm:$0xff]  ;;  %v22_v2 = vld [vmem:[%s5140_s0 + $0x40] sm:$0xff]  ;;  %296 = vst [vmem:[#allocation1 + $0x1] ss:$9 sm:$0xff] %v16_v55  ;;  %v3333_v4 = vld [vmem:[%s5141_s1 + $0x3d4] sm:$0xf0]  ;;  %v2613_v12 = vor.u32 %v3317_v61, %v2612_v60 }
  0x20   :  { %1650 = vmatpush.bf16.msra.mxu0 %v2189_v31  ;;  %v2676_v1 = vld [vmem:[%s5141_s1 + $0x3d0] sm:$0xf]  ;;  %299 = vst [vmem:[#allocation1 + $0x2] ss:$9 sm:$0xff] %v18_v56  ;;  %v2476_v6 = vld [vmem:[%s5141_s1 + $0x240] sm:$0xf] }
  0x21   :  { %1664 = vmatpush.bf16.msra.mxu1 %v2253_v35  ;;  %v24_v5 = vld [vmem:[%s5140_s0 + $0x50] sm:$0xff]  ;;  %v26_v7 = vld [vmem:[%s5140_s0 + $0x60] sm:$0xff]  ;;  %302 = vst [vmem:[#allocation1 + $0x3] ss:$9 sm:$0xff] %v20_v62  ;;  %v3283_v9 = vld [vmem:[%s5141_s1 + $0x244] sm:$0xf0]  ;;  %v2677_v15 = vor.u32 %v3333_v4, %v2676_v1 }
  0x22   :  { %1678 = vmatpush.bf16.msra.mxu2 %v2317_v36  ;;  %v28_v10 = vld [vmem:[%s5140_s0 + $0x70] sm:$0xff]  ;;  %305 = vst [vmem:[#allocation1 + $0x4] ss:$9 sm:$0xff] %v22_v2  ;;  %v2540_v13 = vld [vmem:[%s5141_s1 + $0x2c0] sm:$0xf]  ;;  %v2477_v20 = vor.u32 %v3283_v9, %v2476_v6 }
  0x23   :  { %1692 = vmatpush.bf16.msra.mxu3 %v2381_v39  ;;  %v3299_v14 = vld [vmem:[%s5141_s1 + $0x2c4] sm:$0xf0]  ;;  %308 = vst [vmem:[#allocation1 + $0x5] ss:$9 sm:$0xff] %v24_v5  ;;  %v2604_v16 = vld [vmem:[%s5141_s1 + $0x340] sm:$0xf] }
  0x24   :  { %1699 = vmatpush.bf16.msrb.mxu0 %v2501_v40  ;;  %v3315_v17 = vld [vmem:[%s5141_s1 + $0x344] sm:$0xf0]  ;;  %311 = vst [vmem:[#allocation1 + $0x6] ss:$9 sm:$0xff] %v26_v7  ;;  %v2668_v18 = vld [vmem:[%s5141_s1 + $0x3c0] sm:$0xf]  ;;  %v2541_v21 = vor.u32 %v3299_v14, %v2540_v13 }
  0x25   :  { %1713 = vmatpush.bf16.msrb.mxu1 %v2565_v43  ;;  %v3331_v19 = vld [vmem:[%s5141_s1 + $0x3c4] sm:$0xf0]  ;;  %314 = vst [vmem:[#allocation1 + $0x7] ss:$9 sm:$0xff] %v28_v10  ;;  %v2605_v22 = vor.u32 %v3315_v17, %v2604_v16  ;;  %v2468_v23 = vld [vmem:[%s5141_s1 + $0x230] sm:$0xf] }
  0x26   :  { %1727 = vmatpush.bf16.msrb.mxu2 %v2629_v44  ;;  %v3281_v24 = vld [vmem:[%s5141_s1 + $0x234] sm:$0xf0]  ;;  %v2532_v25 = vld [vmem:[%s5141_s1 + $0x2b0] sm:$0xf]  ;;  %v2669_v26 = vor.u32 %v3331_v19, %v2668_v18  ;;  %v2460_v33 = vld [vmem:[%s5141_s1 + $0x220] sm:$0xf] }
  0x27   :  { %1741 = vmatpush.bf16.msrb.mxu3 %v2693_v48  ;;  %v3297_v27 = vld [vmem:[%s5141_s1 + $0x2b4] sm:$0xf0]  ;;  %v2596_v28 = vld [vmem:[%s5141_s1 + $0x330] sm:$0xf]  ;;  %v2469_v32 = vor.u32 %v3281_v24, %v2468_v23  ;;  %v3279_v34 = vld [vmem:[%s5141_s1 + $0x224] sm:$0xf0] }
  0x28   :  { %1700 = vmatpush.bf16.msrb.mxu0 %v2493_v57  ;;  %v3313_v29 = vld [vmem:[%s5141_s1 + $0x334] sm:$0xf0]  ;;  %v2660_v30 = vld [vmem:[%s5141_s1 + $0x3b0] sm:$0xf]  ;;  %v2524_v35 = vld [vmem:[%s5141_s1 + $0x2a0] sm:$0xf]  ;;  %v2533_v36 = vor.u32 %v3297_v27, %v2532_v25  ;;  %v2461_v48 = vor.u32 %v3279_v34, %v2460_v33 }
  0x29   :  { %1714 = vmatpush.bf16.msrb.mxu1 %v2557_v63  ;;  %v3329_v31 = vld [vmem:[%s5141_s1 + $0x3b4] sm:$0xf0]  ;;  %v2597_v37 = vor.u32 %v3313_v29, %v2596_v28  ;;  %v3295_v38 = vld [vmem:[%s5141_s1 + $0x2a4] sm:$0xf0]  ;;  %v2588_v39 = vld [vmem:[%s5141_s1 + $0x320] sm:$0xf] }
  0x2a   :  { %1728 = vmatpush.bf16.msrb.mxu2 %v2621_v0  ;;  %v3311_v40 = vld [vmem:[%s5141_s1 + $0x324] sm:$0xf0]  ;;  %v2661_v43 = vor.u32 %v3329_v31, %v2660_v30  ;;  %v2652_v45 = vld [vmem:[%s5141_s1 + $0x3a0] sm:$0xf]  ;;  %v2525_v49 = vor.u32 %v3295_v38, %v2524_v35  ;;  %v2452_v51 = vld [vmem:[%s5141_s1 + $0x210] sm:$0xf] }
  0x2b   :  { %1742 = vmatpush.bf16.msrb.mxu3 %v2685_v3  ;;  %v3327_v46 = vld [vmem:[%s5141_s1 + $0x3a4] sm:$0xf0]  ;;  %v2589_v50 = vor.u32 %v3311_v40, %v2588_v39  ;;  %v3277_v52 = vld [vmem:[%s5141_s1 + $0x214] sm:$0xf0]  ;;  %v2516_v53 = vld [vmem:[%s5141_s1 + $0x290] sm:$0xf] }
  0x2c   :  { %1701 = vmatpush.bf16.msrb.mxu0 %v2485_v8  ;;  %v3856_v41 = vld [vmem:[#allocation1] sm:$0xff]  ;;  %v3858_v42 = vld [vmem:[#allocation1 + $0x12] sm:$0xff]  ;;  %v3860_v44 = vld [vmem:[#allocation1 + $0x9] sm:$0xff]  ;;  %v2653_v54 = vor.u32 %v3327_v46, %v2652_v45  ;;  %v2453_v60 = vor.u32 %v3277_v52, %v2452_v51 }
  0x2d   :  { %1715 = vmatpush.bf16.msrb.mxu1 %v2549_v11  ;;  %1651 = vmatmul.bf16.vlgmr.msra.gmra.mxu0 %v3856_v41  ;;  %v3871_v47 = vld [vmem:[#allocation1 + $0x1b] sm:$0xff]  ;;  %v2580_v56 = vld [vmem:[%s5141_s1 + $0x310] sm:$0xf]  ;;  %v3275_v62 = vld [vmem:[%s5141_s1 + $0x204] sm:$0xf0] }
  0x2e   :  { %1729 = vmatpush.bf16.msrb.mxu2 %v2613_v12  ;;  %1665 = vmatmul.bf16.vlgmr.msra.gmra.mxu1 %v3860_v44  ;;  %v3293_v55 = vld [vmem:[%s5141_s1 + $0x294] sm:$0xf0]  ;;  %v2644_v58 = vld [vmem:[%s5141_s1 + $0x390] sm:$0xf]  ;;  %v2444_v61 = vld [vmem:[%s5141_s1 + $0x200] sm:$0xf] }
  0x2f   :  { %1743 = vmatpush.bf16.msrb.mxu3 %v2677_v15  ;;  %1679 = vmatmul.bf16.vlgmr.msra.gmra.mxu2 %v3858_v42  ;;  %v3309_v57 = vld [vmem:[%s5141_s1 + $0x314] sm:$0xf0]  ;;  %v2517_v63 = vor.u32 %v3293_v55, %v2516_v53  ;;  %v2508_v1 = vld [vmem:[%s5141_s1 + $0x280] sm:$0xf]  ;;  %v3291_v2 = vld [vmem:[%s5141_s1 + $0x284] sm:$0xf0]  ;;  %v2445_v11 = vor.u32 %v3275_v62, %v2444_v61 }
  0x30   :  { %1702 = vmatpush.bf16.msrb.mxu0 %v2477_v20  ;;  %1693 = vmatmul.bf16.vlgmr.msra.gmra.mxu3 %v3871_v47  ;;  %v3325_v59 = vld [vmem:[%s5141_s1 + $0x394] sm:$0xf0]  ;;  %v2581_v0 = vor.u32 %v3309_v57, %v2580_v56  ;;  %v2572_v3 = vld [vmem:[%s5141_s1 + $0x300] sm:$0xf]  ;;  %v3307_v5 = vld [vmem:[%s5141_s1 + $0x304] sm:$0xf0]  ;;  %v2509_v15 = vor.u32 %v3291_v2, %v2508_v1 }
  0x31   :  { %1716 = vmatpush.bf16.msrb.mxu1 %v2541_v21  ;;  %v2645_v4 = vor.u32 %v3325_v59, %v2644_v58  ;;  %v2636_v6 = vld [vmem:[%s5141_s1 + $0x380] sm:$0xf]  ;;  %v3323_v7 = vld [vmem:[%s5141_s1 + $0x384] sm:$0xf0]  ;;  %v2756_v8 = vld [vmem:[%s5141_s1 + $0x470] sm:$0xf]  ;;  %v2573_v16 = vor.u32 %v3307_v5, %v2572_v3 }
  0x32   :  { %1730 = vmatpush.bf16.msrb.mxu2 %v2605_v22  ;;  %v3353_v9 = vld [vmem:[%s5141_s1 + $0x474] sm:$0xf0]  ;;  %v2820_v10 = vld [vmem:[%s5141_s1 + $0x4f0] sm:$0xf]  ;;  %v2637_v19 = vor.u32 %v3323_v7, %v2636_v6  ;;  %v3946_v23 = vld [vmem:[#allocation1 + $0x24] sm:$0xff] }
  0x33   :  { %1744 = vmatpush.bf16.msrb.mxu3 %v2669_v26  ;;  %v3369_v12 = vld [vmem:[%s5141_s1 + $0x4f4] sm:$0xf0]  ;;  %v2884_v13 = vld [vmem:[%s5141_s1 + $0x570] sm:$0xf]  ;;  %v2757_v20 = vor.u32 %v3353_v9, %v2756_v8  ;;  %v2748_v24 = vld [vmem:[%s5141_s1 + $0x460] sm:$0xf] }
  0x34   :  { %1703 = vmatpush.bf16.msrb.mxu0 %v2469_v32  ;;  %v3385_v14 = vld [vmem:[%s5141_s1 + $0x574] sm:$0xf0]  ;;  %v2948_v17 = vld [vmem:[%s5141_s1 + $0x5f0] sm:$0xf]  ;;  %v2821_v21 = vor.u32 %v3369_v12, %v2820_v10  ;;  %v3351_v25 = vld [vmem:[%s5141_s1 + $0x464] sm:$0xf0] }
  0x35   :  { %1717 = vmatpush.bf16.msrb.mxu1 %v2533_v36  ;;  %v3401_v18 = vld [vmem:[%s5141_s1 + $0x5f4] sm:$0xf0]  ;;  %v2885_v22 = vor.u32 %v3385_v14, %v2884_v13  ;;  %v2812_v27 = vld [vmem:[%s5141_s1 + $0x4e0] sm:$0xf]  ;;  %v3367_v28 = vld [vmem:[%s5141_s1 + $0x4e4] sm:$0xf0]  ;;  %v2749_v35 = vor.u32 %v3351_v25, %v2748_v24 }
  0x36   :  { %1731 = vmatpush.bf16.msrb.mxu2 %v2597_v37  ;;  %v2949_v26 = vor.u32 %v3401_v18, %v2948_v17  ;;  %v2876_v29 = vld [vmem:[%s5141_s1 + $0x560] sm:$0xf]  ;;  %v3383_v30 = vld [vmem:[%s5141_s1 + $0x564] sm:$0xf0]  ;;  %v3972_v33 = vld [vmem:[#allocation1 + $0x36] sm:$0xff]  ;;  %v2813_v37 = vor.u32 %v3367_v28, %v2812_v27 }
  0x37   :  { %1745 = vmatpush.bf16.msrb.mxu3 %v2661_v43  ;;  %v2940_v31 = vld [vmem:[%s5141_s1 + $0x5e0] sm:$0xf]  ;;  %v3399_v32 = vld [vmem:[%s5141_s1 + $0x5e4] sm:$0xf0]  ;;  %v3974_v34 = vld [vmem:[#allocation1 + $0x2d] sm:$0xff]  ;;  %v2877_v40 = vor.u32 %v3383_v30, %v2876_v29 }
  0x38   :  { %1704 = vmatpush.bf16.msrb.mxu0 %v2461_v48  ;;  %v3976_v36 = vld [vmem:[#allocation1 + $0x3f] sm:$0xff]  ;;  %v2740_v38 = vld [vmem:[%s5141_s1 + $0x450] sm:$0xf]  ;;  %v3349_v39 = vld [vmem:[%s5141_s1 + $0x454] sm:$0xf0]  ;;  %v2941_v43 = vor.u32 %v3399_v32, %v2940_v31 }
  0x39   :  { %1718 = vmatpush.bf16.msrb.mxu1 %v2525_v49  ;;  %v2804_v45 = vld [vmem:[%s5141_s1 + $0x4d0] sm:$0xf]  ;;  %v3365_v46 = vld [vmem:[%s5141_s1 + $0x4d4] sm:$0xf0]  ;;  %v2741_v52 = vor.u32 %v3349_v39, %v2740_v38  ;;  %v3347_v55 = vld [vmem:[%s5141_s1 + $0x444] sm:$0xf0] }
  0x3a   :  { %1732 = vmatpush.bf16.msrb.mxu2 %v2589_v50  ;;  %v2868_v48 = vld [vmem:[%s5141_s1 + $0x550] sm:$0xf]  ;;  %v3381_v49 = vld [vmem:[%s5141_s1 + $0x554] sm:$0xf0]  ;;  %v2805_v53 = vor.u32 %v3365_v46, %v2804_v45  ;;  %v2796_v58 = vld [vmem:[%s5141_s1 + $0x4c0] sm:$0xf] }
  0x3b   :  { %1746 = vmatpush.bf16.msrb.mxu3 %v2653_v54  ;;  %v2932_v50 = vld [vmem:[%s5141_s1 + $0x5d0] sm:$0xf]  ;;  %v3397_v51 = vld [vmem:[%s5141_s1 + $0x5d4] sm:$0xf0]  ;;  %v2732_v54 = vld [vmem:[%s5141_s1 + $0x440] sm:$0xf]  ;;  %v2869_v56 = vor.u32 %v3381_v49, %v2868_v48 }
  0x3c   :  { %1705 = vmatpush.bf16.msrb.mxu0 %v2453_v60  ;;  %v2933_v57 = vor.u32 %v3397_v51, %v2932_v50  ;;  %v3363_v59 = vld [vmem:[%s5141_s1 + $0x4c4] sm:$0xf0]  ;;  %v2860_v60 = vld [vmem:[%s5141_s1 + $0x540] sm:$0xf]  ;;  %v2724_v1 = vld [vmem:[%s5141_s1 + $0x430] sm:$0xf] }
  0x3d   :  { %1719 = vmatpush.bf16.msrb.mxu1 %v2517_v63  ;;  %v3379_v61 = vld [vmem:[%s5141_s1 + $0x544] sm:$0xf0]  ;;  %v2924_v62 = vld [vmem:[%s5141_s1 + $0x5c0] sm:$0xf]  ;;  %v3345_v2 = vld [vmem:[%s5141_s1 + $0x434] sm:$0xf0]  ;;  %v2797_v3 = vor.u32 %v3363_v59, %v2796_v58 }
  0x3e   :  { %1733 = vmatpush.bf16.msrb.mxu2 %v2581_v0  ;;  %v3395_v63 = vld [vmem:[%s5141_s1 + $0x5c4] sm:$0xf0]  ;;  %v2733_v0 = vor.u32 %v3347_v55, %v2732_v54  ;;  %v3361_v5 = vld [vmem:[%s5141_s1 + $0x4b4] sm:$0xf0]  ;;  %v2852_v6 = vld [vmem:[%s5141_s1 + $0x530] sm:$0xf]  ;;  %v2861_v7 = vor.u32 %v3379_v61, %v2860_v60  ;;  %v2725_v17 = vor.u32 %v3345_v2, %v2724_v1 }
  0x3f   :  { %1747 = vmatpush.bf16.msrb.mxu3 %v2645_v4  ;;  %v2788_v4 = vld [vmem:[%s5141_s1 + $0x4b0] sm:$0xf]  ;;  %v2925_v8 = vor.u32 %v3395_v63, %v2924_v62  ;;  %v3377_v9 = vld [vmem:[%s5141_s1 + $0x534] sm:$0xf0]  ;;  %v2716_v12 = vld [vmem:[%s5141_s1 + $0x420] sm:$0xf] }
  0x40   :  { %1706 = vmatpush.bf16.msrb.mxu0 %v2445_v11  ;;  %v2916_v10 = vld [vmem:[%s5141_s1 + $0x5b0] sm:$0xf]  ;;  %v3393_v11 = vld [vmem:[%s5141_s1 + $0x5b4] sm:$0xf0]  ;;  %v3343_v13 = vld [vmem:[%s5141_s1 + $0x424] sm:$0xf0]  ;;  %v2853_v27 = vor.u32 %v3377_v9, %v2852_v6 }
  0x41   :  { %1720 = vmatpush.bf16.msrb.mxu1 %v2509_v15  ;;  %v15_v14 = vld [vmem:[%s5140_s0 + $0x8] sm:$0xff]  ;;  %v17_v15 = vld [vmem:[%s5140_s0 + $0x18] sm:$0xff]  ;;  %v2780_v18 = vld [vmem:[%s5141_s1 + $0x4a0] sm:$0xf]  ;;  %v2917_v28 = vor.u32 %v3393_v11, %v2916_v10 }
  0x42   :  { %1734 = vmatpush.bf16.msrb.mxu2 %v2573_v16  ;;  %v19_v16 = vld [vmem:[%s5140_s0 + $0x28] sm:$0xff]  ;;  %324 = vst [vmem:[#allocation1] ss:$9 sm:$0xff] %v15_v14  ;;  %v2908_v25 = vld [vmem:[%s5141_s1 + $0x5a0] sm:$0xf]  ;;  %v25_v30 = vld [vmem:[%s5140_s0 + $0x58] sm:$0xff] }
  0x43   :  { %1748 = vmatpush.bf16.msrb.mxu3 %v2637_v19  ;;  %1707 = vmatmul.bf16.vlgmr.msrb.gmra.mxu0 %v3946_v23  ;;  %v3359_v19 = vld [vmem:[%s5141_s1 + $0x4a4] sm:$0xf0]  ;;  %326 = vst [vmem:[#allocation1 + $0x1] ss:$9 sm:$0xff] %v17_v15  ;;  %v2708_v31 = vld [vmem:[%s5141_s1 + $0x410] sm:$0xf] }
  0x44   :  { %1755 = vmatpush.bf16.msra.mxu0 %v2757_v20  ;;  %1721 = vmatmul.bf16.vlgmr.msrb.gmra.mxu1 %v3974_v34  ;;  %v21_v20 = vld [vmem:[%s5140_s0 + $0x38] sm:$0xff]  ;;  %v3375_v24 = vld [vmem:[%s5141_s1 + $0x524] sm:$0xf0]  ;;  %328 = vst [vmem:[#allocation1 + $0x2] ss:$9 sm:$0xff] %v19_v16  ;;  %v2781_v39 = vor.u32 %v3359_v19, %v2780_v18 }
  0x45   :  { %1769 = vmatpush.bf16.msra.mxu1 %v2821_v21  ;;  %1735 = vmatmul.bf16.vlgmr.msrb.gmra.mxu2 %v3972_v33  ;;  %v2789_v21 = vor.u32 %v3361_v5, %v2788_v4  ;;  %v3391_v29 = vld [vmem:[%s5141_s1 + $0x5a4] sm:$0xf0]  ;;  %330 = vst [vmem:[#allocation1 + $0x3] ss:$9 sm:$0xff] %v21_v20  ;;  %v29_v38 = vld [vmem:[%s5140_s0 + $0x78] sm:$0xff] }
  0x46   :  { %1783 = vmatpush.bf16.msra.mxu2 %v2885_v22  ;;  %1749 = vmatmul.bf16.vlgmr.msrb.gmra.mxu3 %v3976_v36  ;;  %v2844_v22 = vld [vmem:[%s5141_s1 + $0x520] sm:$0xf]  ;;  %v27_v32 = vld [vmem:[%s5140_s0 + $0x68] sm:$0xff]  ;;  %334 = vst [vmem:[#allocation1 + $0x5] ss:$9 sm:$0xff] %v25_v30  ;;  %v2909_v46 = vor.u32 %v3391_v29, %v2908_v25 }
  0x47   :  { %1797 = vmatpush.bf16.msra.mxu3 %v2949_v26  ;;  %v23_v26 = vld [vmem:[%s5140_s0 + $0x48] sm:$0xff]  ;;  %v2845_v45 = vor.u32 %v3375_v24, %v2844_v22  ;;  %v2836_v48 = vld [vmem:[%s5141_s1 + $0x510] sm:$0xf]  ;;  %v3373_v49 = vld [vmem:[%s5141_s1 + $0x514] sm:$0xf0] }
  0x48   :  { %1756 = vmatpush.bf16.msra.mxu0 %v2749_v35  ;;  %v2717_v35 = vor.u32 %v3343_v13, %v2716_v12  ;;  %332 = vst [vmem:[#allocation1 + $0x4] ss:$9 sm:$0xff] %v23_v26  ;;  %v2900_v50 = vld [vmem:[%s5141_s1 + $0x590] sm:$0xf]  ;;  %v3389_v51 = vld [vmem:[%s5141_s1 + $0x594] sm:$0xf0]  ;;  %v2837_v59 = vor.u32 %v3373_v49, %v2836_v48 }
  0x49   :  { %1770 = vmatpush.bf16.msra.mxu1 %v2813_v37  ;;  %v3341_v37 = vld [vmem:[%s5141_s1 + $0x414] sm:$0xf0]  ;;  %336 = vst [vmem:[#allocation1 + $0x6] ss:$9 sm:$0xff] %v27_v32  ;;  %v3339_v54 = vld [vmem:[%s5141_s1 + $0x404] sm:$0xf0]  ;;  %v2901_v60 = vor.u32 %v3389_v51, %v2900_v50 }
  0x4a   :  { %1784 = vmatpush.bf16.msra.mxu2 %v2877_v40  ;;  %v2772_v40 = vld [vmem:[%s5141_s1 + $0x490] sm:$0xf]  ;;  %338 = vst [vmem:[#allocation1 + $0x7] ss:$9 sm:$0xff] %v29_v38  ;;  %v2828_v58 = vld [vmem:[%s5141_s1 + $0x500] sm:$0xf] }
  0x4b   :  { %1798 = vmatpush.bf16.msra.mxu3 %v2941_v43  ;;  %v3357_v43 = vld [vmem:[%s5141_s1 + $0x494] sm:$0xf0]  ;;  %v3371_v61 = vld [vmem:[%s5141_s1 + $0x504] sm:$0xf0]  ;;  %v3012_v62 = vld [vmem:[%s5141_s1 + $0x670] sm:$0xf] }
  0x4c   :  { %1757 = vmatpush.bf16.msra.mxu0 %v2741_v52  ;;  %v2709_v52 = vor.u32 %v3341_v37, %v2708_v31  ;;  %v2773_v55 = vor.u32 %v3357_v43, %v2772_v40  ;;  %v3417_v63 = vld [vmem:[%s5141_s1 + $0x674] sm:$0xf0]  ;;  %v3387_v1 = vld [vmem:[%s5141_s1 + $0x584] sm:$0xf0]  ;;  %v3076_v2 = vld [vmem:[%s5141_s1 + $0x6f0] sm:$0xf]  ;;  %v2829_v11 = vor.u32 %v3371_v61, %v2828_v58 }
  0x4d   :  { %1771 = vmatpush.bf16.msra.mxu1 %v2805_v53  ;;  %v2700_v53 = vld [vmem:[%s5141_s1 + $0x400] sm:$0xf]  ;;  %v3433_v4 = vld [vmem:[%s5141_s1 + $0x6f4] sm:$0xf0]  ;;  %v3140_v5 = vld [vmem:[%s5141_s1 + $0x770] sm:$0xf] }
  0x4e   :  { %1785 = vmatpush.bf16.msra.mxu2 %v2869_v56  ;;  %v2764_v56 = vld [vmem:[%s5141_s1 + $0x480] sm:$0xf]  ;;  %v3449_v6 = vld [vmem:[%s5141_s1 + $0x774] sm:$0xf0]  ;;  %v3204_v9 = vld [vmem:[%s5141_s1 + $0x7f0] sm:$0xf]  ;;  %v3077_v13 = vor.u32 %v3433_v4, %v3076_v2 }
  0x4f   :  { %1799 = vmatpush.bf16.msra.mxu3 %v2933_v57  ;;  %v3355_v57 = vld [vmem:[%s5141_s1 + $0x484] sm:$0xf0]  ;;  %v3465_v10 = vld [vmem:[%s5141_s1 + $0x7f4] sm:$0xf0]  ;;  %v3141_v14 = vor.u32 %v3449_v6, %v3140_v5  ;;  %v3004_v15 = vld [vmem:[%s5141_s1 + $0x660] sm:$0xf] }
  0x50   :  { %1758 = vmatpush.bf16.msra.mxu0 %v2733_v0  ;;  %v2892_v0 = vld [vmem:[%s5141_s1 + $0x580] sm:$0xf]  ;;  %v3415_v16 = vld [vmem:[%s5141_s1 + $0x664] sm:$0xf0]  ;;  %v3205_v18 = vor.u32 %v3465_v10, %v3204_v9  ;;  %v2996_v29 = vld [vmem:[%s5141_s1 + $0x650] sm:$0xf] }
  0x51   :  { %1772 = vmatpush.bf16.msra.mxu1 %v2797_v3  ;;  %v2701_v3 = vor.u32 %v3339_v54, %v2700_v53  ;;  %v2893_v12 = vor.u32 %v3387_v1, %v2892_v0  ;;  %v3431_v19 = vld [vmem:[%s5141_s1 + $0x6e4] sm:$0xf0]  ;;  %v3132_v20 = vld [vmem:[%s5141_s1 + $0x760] sm:$0xf]  ;;  %v341_v26 = vld [vmem:[#allocation1 + $0x12] sm:$0xff] }
  0x52   :  { %1786 = vmatpush.bf16.msra.mxu2 %v2861_v7  ;;  %v2765_v7 = vor.u32 %v3355_v57, %v2764_v56  ;;  %v339_v22 = vld [vmem:[#allocation1] sm:$0xff]  ;;  %v3463_v25 = vld [vmem:[%s5141_s1 + $0x7e4] sm:$0xf0]  ;;  %v3060_v37 = vld [vmem:[%s5141_s1 + $0x6d0] sm:$0xf] }
  0x53   :  { %1800 = vmatpush.bf16.msra.mxu3 %v2925_v8  ;;  %v3013_v8 = vor.u32 %v3417_v63, %v3012_v62  ;;  %v3196_v24 = vld [vmem:[%s5141_s1 + $0x7e0] sm:$0xf]  ;;  %v3124_v40 = vld [vmem:[%s5141_s1 + $0x750] sm:$0xf]  ;;  %v3445_v43 = vld [vmem:[%s5141_s1 + $0x754] sm:$0xf0] }
  0x54   :  { %1759 = vmatpush.bf16.msra.mxu0 %v2725_v17  ;;  %v3068_v17 = vld [vmem:[%s5141_s1 + $0x6e0] sm:$0xf]  ;;  %v3197_v38 = vor.u32 %v3463_v25, %v3196_v24  ;;  %v3125_v50 = vor.u32 %v3445_v43, %v3124_v40  ;;  %v3443_v57 = vld [vmem:[%s5141_s1 + $0x744] sm:$0xf0]  ;;  %v2980_v63 = vld [vmem:[%s5141_s1 + $0x630] sm:$0xf] }
  0x55   :  { %1773 = vmatpush.bf16.msra.mxu1 %v2789_v21  ;;  %v3447_v21 = vld [vmem:[%s5141_s1 + $0x764] sm:$0xf0]  ;;  %v342_v30 = vld [vmem:[#allocation1 + $0x1b] sm:$0xff]  ;;  %v3069_v31 = vor.u32 %v3431_v19, %v3068_v17  ;;  %v3044_v1 = vld [vmem:[%s5141_s1 + $0x6b0] sm:$0xf] }
  0x56   :  { %1787 = vmatpush.bf16.msra.mxu2 %v2853_v27  ;;  %v340_v27 = vld [vmem:[#allocation1 + $0x9] sm:$0xff]  ;;  %v3133_v32 = vor.u32 %v3447_v21, %v3132_v20  ;;  %v2988_v51 = vld [vmem:[%s5141_s1 + $0x640] sm:$0xf]  ;;  %v3409_v0 = vld [vmem:[%s5141_s1 + $0x634] sm:$0xf0] }
  0x57   :  { %1801 = vmatpush.bf16.msra.mxu3 %v2917_v28  ;;  %v3005_v28 = vor.u32 %v3415_v16, %v3004_v15  ;;  %v3052_v53 = vld [vmem:[%s5141_s1 + $0x6c0] sm:$0xf]  ;;  %v3108_v4 = vld [vmem:[%s5141_s1 + $0x730] sm:$0xf]  ;;  %v3441_v5 = vld [vmem:[%s5141_s1 + $0x734] sm:$0xf0] }
  0x58   :  { %1760 = vmatpush.bf16.msra.mxu0 %v2717_v35  ;;  %v3413_v35 = vld [vmem:[%s5141_s1 + $0x654] sm:$0xf0]  ;;  %v3116_v56 = vld [vmem:[%s5141_s1 + $0x740] sm:$0xf]  ;;  %v3172_v6 = vld [vmem:[%s5141_s1 + $0x7b0] sm:$0xf]  ;;  %v3109_v10 = vor.u32 %v3441_v5, %v3108_v4 }
  0x59   :  { %1774 = vmatpush.bf16.msra.mxu1 %v2781_v39  ;;  %v3429_v39 = vld [vmem:[%s5141_s1 + $0x6d4] sm:$0xf0]  ;;  %v2997_v48 = vor.u32 %v3413_v35, %v2996_v29  ;;  %v3180_v58 = vld [vmem:[%s5141_s1 + $0x7c0] sm:$0xf]  ;;  %v3117_v62 = vor.u32 %v3443_v57, %v3116_v56  ;;  %v3423_v15 = vld [vmem:[%s5141_s1 + $0x6a4] sm:$0xf0] }
  0x5a   :  { %1788 = vmatpush.bf16.msra.mxu2 %v2845_v45  ;;  %v3188_v45 = vld [vmem:[%s5141_s1 + $0x7d0] sm:$0xf]  ;;  %v3061_v49 = vor.u32 %v3429_v39, %v3060_v37  ;;  %v3100_v16 = vld [vmem:[%s5141_s1 + $0x720] sm:$0xf]  ;;  %v3439_v17 = vld [vmem:[%s5141_s1 + $0x724] sm:$0xf0] }
  0x5b   :  { %1802 = vmatpush.bf16.msra.mxu3 %v2909_v46  ;;  %v3461_v46 = vld [vmem:[%s5141_s1 + $0x7d4] sm:$0xf0]  ;;  %v3455_v19 = vld [vmem:[%s5141_s1 + $0x7a4] sm:$0xf0]  ;;  %v2964_v24 = vld [vmem:[%s5141_s1 + $0x610] sm:$0xf] }
  0x5c   :  { %1761 = vmatpush.bf16.msra.mxu0 %v2709_v52  ;;  %v3411_v52 = vld [vmem:[%s5141_s1 + $0x644] sm:$0xf0]  ;;  %v3189_v54 = vor.u32 %v3461_v46, %v3188_v45  ;;  %v3405_v25 = vld [vmem:[%s5141_s1 + $0x614] sm:$0xf0]  ;;  %v3092_v29 = vld [vmem:[%s5141_s1 + $0x710] sm:$0xf] }
  0x5d   :  { %1775 = vmatpush.bf16.msra.mxu1 %v2773_v55  ;;  %v3427_v55 = vld [vmem:[%s5141_s1 + $0x6c4] sm:$0xf0]  ;;  %v2965_v35 = vor.u32 %v3405_v25, %v2964_v24  ;;  %v2956_v37 = vld [vmem:[%s5141_s1 + $0x600] sm:$0xf]  ;;  %v2310_v56 = vld [vmem:[%s5141_s1 + $0xf8] sm:$0xf0] }
  0x5e   :  { %1789 = vmatpush.bf16.msra.mxu2 %v2837_v59  ;;  %v3459_v59 = vld [vmem:[%s5141_s1 + $0x7c4] sm:$0xf0]  ;;  %v3053_v61 = vor.u32 %v3427_v55, %v3052_v53  ;;  %v3020_v43 = vld [vmem:[%s5141_s1 + $0x680] sm:$0xf]  ;;  %v2246_v53 = vld [vmem:[%s5141_s1 + $0x78] sm:$0xf0] }
  0x5f   :  { %1803 = vmatpush.bf16.msra.mxu3 %v2901_v60  ;;  %v2989_v60 = vor.u32 %v3411_v52, %v2988_v51  ;;  %v3181_v2 = vor.u32 %v3459_v59, %v3180_v58  ;;  %v3419_v45 = vld [vmem:[%s5141_s1 + $0x684] sm:$0xf0]  ;;  %v3084_v46 = vld [vmem:[%s5141_s1 + $0x700] sm:$0xf]  ;;  %v3224_v52 = vld [vmem:[%s5141_s1 + $0x74] sm:$0xf] }
  0x60   :  { %1762 = vmatpush.bf16.msra.mxu0 %v2701_v3  ;;  %v3425_v3 = vld [vmem:[%s5141_s1 + $0x6b4] sm:$0xf0]  ;;  %v3451_v51 = vld [vmem:[%s5141_s1 + $0x784] sm:$0xf0]  ;;  %v3256_v57 = vld [vmem:[%s5141_s1 + $0x174] sm:$0xf]  ;;  %v3021_v59 = vor.u32 %v3419_v45, %v3020_v43 }
  0x61   :  { %1776 = vmatpush.bf16.msra.mxu1 %v2765_v7  ;;  %v3457_v7 = vld [vmem:[%s5141_s1 + $0x7b4] sm:$0xf0]  ;;  %v3045_v9 = vor.u32 %v3425_v3, %v3044_v1  ;;  %v2374_v58 = vld [vmem:[%s5141_s1 + $0x178] sm:$0xf0]  ;;  %v3222_v3 = vld [vmem:[%s5141_s1 + $0x64] sm:$0xf] }
  0x62   :  { %1790 = vmatpush.bf16.msra.mxu2 %v2829_v11  ;;  %v2972_v11 = vld [vmem:[%s5141_s1 + $0x620] sm:$0xf]  ;;  %v2238_v4 = vld [vmem:[%s5141_s1 + $0x68] sm:$0xf0]  ;;  %v3238_v5 = vld [vmem:[%s5141_s1 + $0xe4] sm:$0xf] }
  0x63   :  { %1804 = vmatpush.bf16.msra.mxu3 %v2893_v12  ;;  %1763 = vmatmul.bf16.vlgmr.msra.gmra.mxu0 %v339_v22  ;;  %v3407_v12 = vld [vmem:[%s5141_s1 + $0x624] sm:$0xf0]  ;;  %v3101_v22 = vor.u32 %v3439_v17, %v3100_v16  ;;  %v2241_v16 = vor.u32 %v3222_v3, %v2238_v4  ;;  %v2294_v24 = vld [vmem:[%s5141_s1 + $0xd8] sm:$0xf0]  ;;  %v3252_v25 = vld [vmem:[%s5141_s1 + $0x154] sm:$0xf] }
  0x64   :  { %1811 = vmatpush.bf16.msrb.mxu0 %v3013_v8  ;;  %1777 = vmatmul.bf16.vlgmr.msra.gmra.mxu1 %v340_v27  ;;  %v2981_v8 = vor.u32 %v3409_v0, %v2980_v63  ;;  %v2973_v20 = vor.u32 %v3407_v12, %v2972_v11  ;;  %v2249_v0 = vor.u32 %v3224_v52, %v2246_v53  ;;  %v3270_v11 = vld [vmem:[%s5141_s1 + $0x1e4] sm:$0xf]  ;;  %v2430_v12 = vld [vmem:[%s5141_s1 + $0x1e8] sm:$0xf0]  ;;  %v2214_v52 = vld [vmem:[%s5141_s1 + $0x38] sm:$0xf0] }
  0x65   :  { %1825 = vmatpush.bf16.msrb.mxu1 %v3077_v13  ;;  %1791 = vmatmul.bf16.vlgmr.msra.gmra.mxu2 %v341_v26  ;;  %v3036_v13 = vld [vmem:[%s5141_s1 + $0x6a0] sm:$0xf]  ;;  %v3028_v26 = vld [vmem:[%s5141_s1 + $0x690] sm:$0xf]  ;;  %v2350_v43 = vld [vmem:[%s5141_s1 + $0x148] sm:$0xf0] }
  0x66   :  { %1839 = vmatpush.bf16.msrb.mxu2 %v3141_v14  ;;  %1805 = vmatmul.bf16.vlgmr.msra.gmra.mxu3 %v342_v30  ;;  %v3173_v14 = vor.u32 %v3457_v7, %v3172_v6  ;;  %v3037_v21 = vor.u32 %v3423_v15, %v3036_v13  ;;  %v3437_v30 = vld [vmem:[%s5141_s1 + $0x714] sm:$0xf0]  ;;  %v2302_v7 = vld [vmem:[%s5141_s1 + $0xe8] sm:$0xf0]  ;;  %v346_v15 = vld [vmem:[#allocation1 + $0x3f] sm:$0xff] }
  0x67   :  { %1853 = vmatpush.bf16.msrb.mxu3 %v3205_v18  ;;  %v3164_v18 = vld [vmem:[%s5141_s1 + $0x7a0] sm:$0xf]  ;;  %v3093_v40 = vor.u32 %v3437_v30, %v3092_v29  ;;  %v345_v13 = vld [vmem:[#allocation1 + $0x36] sm:$0xff]  ;;  %v2305_v17 = vor.u32 %v3238_v5, %v2302_v7  ;;  %v3266_v45 = vld [vmem:[%s5141_s1 + $0x1c4] sm:$0xf] }
  0x68   :  { %1812 = vmatpush.bf16.msrb.mxu0 %v3005_v28  ;;  %v3165_v27 = vor.u32 %v3455_v19, %v3164_v18  ;;  %v3421_v28 = vld [vmem:[%s5141_s1 + $0x694] sm:$0xf0]  ;;  %v3220_v19 = vld [vmem:[%s5141_s1 + $0x54] sm:$0xf]  ;;  %v2270_v3 = vld [vmem:[%s5141_s1 + $0xa8] sm:$0xf0] }
  0x69   :  { %1826 = vmatpush.bf16.msrb.mxu1 %v3069_v31  ;;  %v3156_v31 = vld [vmem:[%s5141_s1 + $0x790] sm:$0xf]  ;;  %v3029_v39 = vor.u32 %v3421_v28, %v3028_v26  ;;  %v2358_v26 = vld [vmem:[%s5141_s1 + $0x158] sm:$0xf0]  ;;  %v3232_v53 = vld [vmem:[%s5141_s1 + $0xb4] sm:$0xf] }
  0x6a   :  { %1840 = vmatpush.bf16.msrb.mxu2 %v3133_v32  ;;  %v3453_v32 = vld [vmem:[%s5141_s1 + $0x794] sm:$0xf0]  ;;  %v2422_v28 = vld [vmem:[%s5141_s1 + $0x1d8] sm:$0xf0]  ;;  %v3246_v4 = vld [vmem:[%s5141_s1 + $0x124] sm:$0xf] }
  0x6b   :  { %1854 = vmatpush.bf16.msrb.mxu3 %v3197_v38  ;;  %v3403_v38 = vld [vmem:[%s5141_s1 + $0x604] sm:$0xf0]  ;;  %v2334_v5 = vld [vmem:[%s5141_s1 + $0x128] sm:$0xf0] }
  0x6c   :  { %1813 = vmatpush.bf16.msrb.mxu0 %v2997_v48  ;;  %v3157_v48 = vor.u32 %v3453_v32, %v3156_v31  ;;  %v2957_v55 = vor.u32 %v3403_v38, %v2956_v37  ;;  %v2361_v31 = vor.u32 %v3252_v25, %v2358_v26  ;;  %v3218_v32 = vld [vmem:[%s5141_s1 + $0x44] sm:$0xf]  ;;  %v2398_v7 = vld [vmem:[%s5141_s1 + $0x1a8] sm:$0xf0] }
  0x6d   :  { %1827 = vmatpush.bf16.msrb.mxu1 %v3061_v49  ;;  %v3435_v49 = vld [vmem:[%s5141_s1 + $0x704] sm:$0xf0]  ;;  %v3234_v37 = vld [vmem:[%s5141_s1 + $0xc4] sm:$0xf] }
  0x6e   :  { %1841 = vmatpush.bf16.msrb.mxu2 %v3125_v50  ;;  %v3148_v50 = vld [vmem:[%s5141_s1 + $0x780] sm:$0xf]  ;;  %v3226_v26 = vld [vmem:[%s5141_s1 + $0x84] sm:$0xf] }
  0x6f   :  { %1855 = vmatpush.bf16.msrb.mxu3 %v3189_v54  ;;  %v3240_v54 = vld [vmem:[%s5141_s1 + $0xf4] sm:$0xf]  ;;  %v3149_v63 = vor.u32 %v3451_v51, %v3148_v50 }
  0x70   :  { %1814 = vmatpush.bf16.msrb.mxu0 %v2989_v60  ;;  %v3085_v60 = vor.u32 %v3435_v49, %v3084_v46  ;;  %v2313_v1 = vor.u32 %v3240_v54, %v2310_v56  ;;  %v2414_v46 = vld [vmem:[%s5141_s1 + $0x1c8] sm:$0xf0]  ;;  %v3216_v51 = vld [vmem:[%s5141_s1 + $0x34] sm:$0xf] }
  0x71   :  { %1828 = vmatpush.bf16.msrb.mxu1 %v3053_v61  ;;  %v3272_v61 = vld [vmem:[%s5141_s1 + $0x1f4] sm:$0xf]  ;;  %v2417_v54 = vor.u32 %v3266_v45, %v2414_v46  ;;  %v2630_v45 = vld [vmem:[%s5141_s1 + $0x378] sm:$0xf0] }
  0x72   :  { %1842 = vmatpush.bf16.msrb.mxu2 %v3117_v62  ;;  %v2438_v62 = vld [vmem:[%s5141_s1 + $0x1f8] sm:$0xf0]  ;;  %v3248_v56 = vld [vmem:[%s5141_s1 + $0x134] sm:$0xf] }
  0x73   :  { %1856 = vmatpush.bf16.msrb.mxu3 %v3181_v2  ;;  %v2377_v2 = vor.u32 %v3256_v57, %v2374_v58  ;;  %v2441_v6 = vor.u32 %v3272_v61, %v2438_v62  ;;  %v2342_v57 = vld [vmem:[%s5141_s1 + $0x138] sm:$0xf0]  ;;  %v3264_v58 = vld [vmem:[%s5141_s1 + $0x1b4] sm:$0xf] }
  0x74   :  { %1815 = vmatpush.bf16.msrb.mxu0 %v2981_v8  ;;  %v3254_v8 = vld [vmem:[%s5141_s1 + $0x164] sm:$0xf]  ;;  %v2345_v62 = vor.u32 %v3248_v56, %v2342_v57  ;;  %v2494_v56 = vld [vmem:[%s5141_s1 + $0x268] sm:$0xf0] }
  0x75   :  { %1829 = vmatpush.bf16.msrb.mxu1 %v3045_v9  ;;  %v2366_v9 = vld [vmem:[%s5141_s1 + $0x168] sm:$0xf0]  ;;  %v3302_v57 = vld [vmem:[%s5141_s1 + $0x2e4] sm:$0xf] }
  0x76   :  { %1843 = vmatpush.bf16.msrb.mxu2 %v3109_v10  ;;  %v343_v10 = vld [vmem:[#allocation1 + $0x24] sm:$0xff]  ;;  %v2369_v18 = vor.u32 %v3254_v8, %v2366_v9 }
  0x77   :  { %1857 = vmatpush.bf16.msrb.mxu3 %v3173_v14  ;;  %v344_v14 = vld [vmem:[#allocation1 + $0x2d] sm:$0xff] }
  0x78   :  { %1816 = vmatpush.bf16.msrb.mxu0 %v2973_v20  ;;  %v2230_v20 = vld [vmem:[%s5141_s1 + $0x58] sm:$0xf0] }
  0x79   :  { %1830 = vmatpush.bf16.msrb.mxu1 %v3037_v21  ;;  %v3236_v21 = vld [vmem:[%s5141_s1 + $0xd4] sm:$0xf]  ;;  %v2233_v29 = vor.u32 %v3220_v19, %v2230_v20  ;;  %v2390_v19 = vld [vmem:[%s5141_s1 + $0x198] sm:$0xf0] }
  0x7a   :  { %1844 = vmatpush.bf16.msrb.mxu2 %v3101_v22  ;;  %v2433_v22 = vor.u32 %v3270_v11, %v2430_v12  ;;  %v2297_v30 = vor.u32 %v3236_v21, %v2294_v24  ;;  %v3212_v11 = vld [vmem:[%s5141_s1 + $0x14] sm:$0xf]  ;;  %v2198_v12 = vld [vmem:[%s5141_s1 + $0x18] sm:$0xf0]  ;;  %v3210_v21 = vld [vmem:[%s5141_s1 + $0x4] sm:$0xf] }
  0x7b   :  { %1858 = vmatpush.bf16.msrb.mxu3 %v3165_v27  ;;  %v3268_v27 = vld [vmem:[%s5141_s1 + $0x1d4] sm:$0xf]  ;;  %v2201_v20 = vor.u32 %v3212_v11, %v2198_v12  ;;  %v2678_v11 = vld [vmem:[%s5141_s1 + $0x3d8] sm:$0xf0] }
  0x7c   :  { %1817 = vmatpush.bf16.msrb.mxu0 %v2965_v35  ;;  %v2222_v35 = vld [vmem:[%s5141_s1 + $0x48] sm:$0xf0]  ;;  %v2425_v38 = vor.u32 %v3268_v27, %v2422_v28  ;;  %v3242_v28 = vld [vmem:[%s5141_s1 + $0x104] sm:$0xf] }
  0x7d   :  { %1831 = vmatpush.bf16.msrb.mxu1 %v3029_v39  ;;  %v2286_v39 = vld [vmem:[%s5141_s1 + $0xc8] sm:$0xf0] }
  0x7e   :  { %1845 = vmatpush.bf16.msrb.mxu2 %v3093_v40  ;;  %v3250_v40 = vld [vmem:[%s5141_s1 + $0x144] sm:$0xf]  ;;  %v2289_v49 = vor.u32 %v3234_v37, %v2286_v39  ;;  %v2254_v27 = vld [vmem:[%s5141_s1 + $0x88] sm:$0xf0]  ;;  %v2502_v37 = vld [vmem:[%s5141_s1 + $0x278] sm:$0xf0] }
  0x7f   :  { %1859 = vmatpush.bf16.msrb.mxu3 %v3157_v48  ;;  %v2225_v48 = vor.u32 %v3218_v32, %v2222_v35  ;;  %v2353_v50 = vor.u32 %v3250_v40, %v2350_v43  ;;  %v2382_v32 = vld [vmem:[%s5141_s1 + $0x188] sm:$0xf0]  ;;  %v3288_v35 = vld [vmem:[%s5141_s1 + $0x274] sm:$0xf]  ;;  %v2566_v40 = vld [vmem:[%s5141_s1 + $0x2f8] sm:$0xf0]  ;;  %v2257_v46 = vor.u32 %v3226_v26, %v2254_v27 }
  0x80   :  { %1818 = vmatpush.bf16.msrb.mxu0 %v2957_v55  ;;  %v2278_v55 = vld [vmem:[%s5141_s1 + $0xb8] sm:$0xf0]  ;;  %v3320_v43 = vld [vmem:[%s5141_s1 + $0x374] sm:$0xf] }
  0x81   :  { %1832 = vmatpush.bf16.msrb.mxu1 %v3021_v59  ;;  %v2406_v59 = vld [vmem:[%s5141_s1 + $0x1b8] sm:$0xf0]  ;;  %v2281_v61 = vor.u32 %v3232_v53, %v2278_v55  ;;  %v3286_v55 = vld [vmem:[%s5141_s1 + $0x264] sm:$0xf]  ;;  %v3296_v26 = vld [vmem:[%s5141_s1 + $0x2b4] sm:$0xf] }
  0x82   :  { %1846 = vmatpush.bf16.msrb.mxu2 %v3085_v60  ;;  %v2217_v60 = vor.u32 %v3216_v51, %v2214_v52  ;;  %v2505_v52 = vor.u32 %v3288_v35, %v2502_v37  ;;  %v3278_v37 = vld [vmem:[%s5141_s1 + $0x224] sm:$0xf] }
  0x83   :  { %1860 = vmatpush.bf16.msrb.mxu3 %v3149_v63  ;;  %1819 = vmatmul.bf16.vlgmr.msrb.gmra.mxu0 %v343_v10  ;;  %v3214_v63 = vld [vmem:[%s5141_s1 + $0x24] sm:$0xf]  ;;  %v2337_v10 = vor.u32 %v3246_v4, %v2334_v5  ;;  %v2486_v4 = vld [vmem:[%s5141_s1 + $0x258] sm:$0xf0]  ;;  %v3300_v5 = vld [vmem:[%s5141_s1 + $0x2d4] sm:$0xf] }
  0x84   :  { %1867 = vmatpush.bf16.msra.mxu0 %v2249_v0  ;;  %1833 = vmatmul.bf16.vlgmr.msrb.gmra.mxu1 %v344_v14  ;;  %v2206_v0 = vld [vmem:[%s5141_s1 + $0x28] sm:$0xf0] }
  0x85   :  { %1881 = vmatpush.bf16.msra.mxu1 %v2313_v1  ;;  %1847 = vmatmul.bf16.vlgmr.msrb.gmra.mxu2 %v345_v13  ;;  %v3230_v1 = vld [vmem:[%s5141_s1 + $0xa4] sm:$0xf]  ;;  %v2209_v8 = vor.u32 %v3214_v63, %v2206_v0  ;;  %v3228_v13 = vld [vmem:[%s5141_s1 + $0x94] sm:$0xf]  ;;  %v2686_v63 = vld [vmem:[%s5141_s1 + $0x3e8] sm:$0xf0]  ;;  %v2497_v0 = vor.u32 %v3286_v55, %v2494_v56 }
  0x86   :  { %1895 = vmatpush.bf16.msra.mxu2 %v2377_v2  ;;  %1861 = vmatmul.bf16.vlgmr.msrb.gmra.mxu3 %v346_v15  ;;  %v2409_v2 = vor.u32 %v3264_v58, %v2406_v59  ;;  %v2273_v9 = vor.u32 %v3230_v1, %v2270_v3  ;;  %v2262_v15 = vld [vmem:[%s5141_s1 + $0x98] sm:$0xf0]  ;;  %v2558_v59 = vld [vmem:[%s5141_s1 + $0x2e8] sm:$0xf0]  ;;  %v3284_v3 = vld [vmem:[%s5141_s1 + $0x254] sm:$0xf] }
  0x87   :  { %1909 = vmatpush.bf16.msra.mxu3 %v2441_v6  ;;  %v3262_v6 = vld [vmem:[%s5141_s1 + $0x1a4] sm:$0xf]  ;;  %v2265_v24 = vor.u32 %v3228_v13, %v2262_v15  ;;  %v2561_v1 = vor.u32 %v3302_v57, %v2558_v59  ;;  %v2489_v12 = vor.u32 %v3284_v3, %v2486_v4  ;;  %v2478_v15 = vld [vmem:[%s5141_s1 + $0x248] sm:$0xf0]  ;;  %v3292_v59 = vld [vmem:[%s5141_s1 + $0x294] sm:$0xf] }
  0x88   :  { %1868 = vmatpush.bf16.msra.mxu0 %v2241_v16  ;;  %v2401_v14 = vor.u32 %v3262_v6, %v2398_v7  ;;  %v3244_v16 = vld [vmem:[%s5141_s1 + $0x114] sm:$0xf]  ;;  %v2550_v7 = vld [vmem:[%s5141_s1 + $0x2d8] sm:$0xf0]  ;;  %v3274_v4 = vld [vmem:[%s5141_s1 + $0x204] sm:$0xf] }
  0x89   :  { %1882 = vmatpush.bf16.msra.mxu1 %v2305_v17  ;;  %v2326_v17 = vld [vmem:[%s5141_s1 + $0x118] sm:$0xf0]  ;;  %v2553_v13 = vor.u32 %v3300_v5, %v2550_v7  ;;  %v2446_v5 = vld [vmem:[%s5141_s1 + $0x208] sm:$0xf0] }
  0x8a   :  { %1896 = vmatpush.bf16.msra.mxu2 %v2369_v18  ;;  %v3260_v18 = vld [vmem:[%s5141_s1 + $0x194] sm:$0xf]  ;;  %v2329_v25 = vor.u32 %v3244_v16, %v2326_v17  ;;  %v3314_v16 = vld [vmem:[%s5141_s1 + $0x344] sm:$0xf]  ;;  %v2606_v17 = vld [vmem:[%s5141_s1 + $0x348] sm:$0xf0] }
  0x8b   :  { %1910 = vmatpush.bf16.msra.mxu3 %v2433_v22  ;;  %v2190_v22 = vld [vmem:[%s5141_s1 + $0x8] sm:$0xf0] }
  0x8c   :  { %1869 = vmatpush.bf16.msra.mxu0 %v2233_v29  ;;  %v2393_v29 = vor.u32 %v3260_v18, %v2390_v19  ;;  %v2193_v39 = vor.u32 %v3210_v21, %v2190_v22  ;;  %v3330_v18 = vld [vmem:[%s5141_s1 + $0x3c4] sm:$0xf]  ;;  %v2670_v19 = vld [vmem:[%s5141_s1 + $0x3c8] sm:$0xf0]  ;;  %v2609_v22 = vor.u32 %v3314_v16, %v2606_v17  ;;  %v3368_v16 = vld [vmem:[%s5141_s1 + $0x4f4] sm:$0xf]  ;;  %v2449_v17 = vor.u32 %v3274_v4, %v2446_v5 }
  0x8d   :  { %1883 = vmatpush.bf16.msra.mxu1 %v2297_v30  ;;  %v2318_v30 = vld [vmem:[%s5141_s1 + $0x108] sm:$0xf0]  ;;  %v2673_v27 = vor.u32 %v3330_v18, %v2670_v19  ;;  %v2822_v18 = vld [vmem:[%s5141_s1 + $0x4f8] sm:$0xf0]  ;;  %v3384_v19 = vld [vmem:[%s5141_s1 + $0x574] sm:$0xf] }
  0x8e   :  { %1897 = vmatpush.bf16.msra.mxu2 %v2361_v31  ;;  %v3258_v31 = vld [vmem:[%s5141_s1 + $0x184] sm:$0xf] }
  0x8f   :  { %1911 = vmatpush.bf16.msra.mxu3 %v2425_v38  ;;  %v3304_v38 = vld [vmem:[%s5141_s1 + $0x2f4] sm:$0xf]  ;;  %v2385_v51 = vor.u32 %v3258_v31, %v2382_v32  ;;  %v2662_v32 = vld [vmem:[%s5141_s1 + $0x3b8] sm:$0xf0] }
  0x90   :  { %1870 = vmatpush.bf16.msra.mxu0 %v2225_v48  ;;  %v2321_v48 = vor.u32 %v3242_v28, %v2318_v30  ;;  %v2569_v53 = vor.u32 %v3304_v38, %v2566_v40  ;;  %v2534_v28 = vld [vmem:[%s5141_s1 + $0x2b8] sm:$0xf0]  ;;  %v3328_v31 = vld [vmem:[%s5141_s1 + $0x3b4] sm:$0xf]  ;;  %v2462_v40 = vld [vmem:[%s5141_s1 + $0x228] sm:$0xf0] }
  0x91   :  { %1884 = vmatpush.bf16.msra.mxu1 %v2289_v49  ;;  %v3336_v49 = vld [vmem:[%s5141_s1 + $0x3f4] sm:$0xf]  ;;  %v2598_v30 = vld [vmem:[%s5141_s1 + $0x338] sm:$0xf0]  ;;  %v2537_v38 = vor.u32 %v3296_v26, %v2534_v28 }
  0x92   :  { %1898 = vmatpush.bf16.msra.mxu2 %v2353_v50  ;;  %v2694_v50 = vld [vmem:[%s5141_s1 + $0x3f8] sm:$0xf0] }
  0x93   :  { %1912 = vmatpush.bf16.msra.mxu3 %v2417_v54  ;;  %v2633_v54 = vor.u32 %v3320_v43, %v2630_v45  ;;  %v2697_v58 = vor.u32 %v3336_v49, %v2694_v50  ;;  %v3294_v43 = vld [vmem:[%s5141_s1 + $0x2a4] sm:$0xf]  ;;  %v2526_v45 = vld [vmem:[%s5141_s1 + $0x2a8] sm:$0xf0]  ;;  %v4679_v50 = vld [vmem:[%s5142_s2] sm:$0x3] }
  0x94   :  { %1871 = vmatpush.bf16.msra.mxu0 %v2217_v60  ;;  %v3318_v60 = vld [vmem:[%s5141_s1 + $0x364] sm:$0xf]  ;;  %v2590_v49 = vld [vmem:[%s5141_s1 + $0x328] sm:$0xf0]  ;;  %v2529_v55 = vor.u32 %v3294_v43, %v2526_v45  ;;  %v288_v57 = vperm.slane %v4679_v50, 0 }
  0x95   :  { %1885 = vmatpush.bf16.msra.mxu1 %v2281_v61  ;;  %v2622_v61 = vld [vmem:[%s5141_s1 + $0x368] sm:$0xf0]  ;;  %v3382_v43 = vld [vmem:[%s5141_s1 + $0x564] sm:$0xf] }
  0x96   :  { %1899 = vmatpush.bf16.msra.mxu2 %v2345_v62  ;;  %v3334_v62 = vld [vmem:[%s5141_s1 + $0x3e4] sm:$0xf]  ;;  %v2878_v45 = vld [vmem:[%s5141_s1 + $0x568] sm:$0xf0] }
  0x97   :  { %1913 = vmatpush.bf16.msra.mxu3 %v2409_v2  ;;  %v2625_v2 = vor.u32 %v3318_v60, %v2622_v61  ;;  %v2689_v6 = vor.u32 %v3334_v62, %v2686_v63  ;;  %v2518_v61 = vld [vmem:[%s5141_s1 + $0x298] sm:$0xf0]  ;;  %v3308_v62 = vld [vmem:[%s5141_s1 + $0x314] sm:$0xf] }
  0x98   :  { %1872 = vmatpush.bf16.msra.mxu0 %v2209_v8  ;;  %v3316_v8 = vld [vmem:[%s5141_s1 + $0x354] sm:$0xf]  ;;  %v2582_v63 = vld [vmem:[%s5141_s1 + $0x318] sm:$0xf0]  ;;  %v2521_v7 = vor.u32 %v3292_v59, %v2518_v61 }
  0x99   :  { %1886 = vmatpush.bf16.msra.mxu1 %v2273_v9  ;;  %v2614_v9 = vld [vmem:[%s5141_s1 + $0x358] sm:$0xf0] }
  0x9a   :  { %1900 = vmatpush.bf16.msra.mxu2 %v2337_v10  ;;  %v3332_v10 = vld [vmem:[%s5141_s1 + $0x3d4] sm:$0xf]  ;;  %v2742_v59 = vld [vmem:[%s5141_s1 + $0x458] sm:$0xf0] }
  0x9b   :  { %1914 = vmatpush.bf16.msra.mxu3 %v2401_v14  ;;  %v3282_v14 = vld [vmem:[%s5141_s1 + $0x244] sm:$0xf] }
  0x9c   :  { %1873 = vmatpush.bf16.msra.mxu0 %v2201_v20  ;;  %v2481_v20 = vor.u32 %v3282_v14, %v2478_v15  ;;  %v3322_v14 = vld [vmem:[%s5141_s1 + $0x384] sm:$0xf]  ;;  %v2638_v15 = vld [vmem:[%s5141_s1 + $0x388] sm:$0xf0] }
  0x9d   :  { %1887 = vmatpush.bf16.msra.mxu1 %v2265_v24  ;;  %v3280_v24 = vld [vmem:[%s5141_s1 + $0x234] sm:$0xf]  ;;  %v2641_v26 = vor.u32 %v3322_v14, %v2638_v15 }
  0x9e   :  { %1901 = vmatpush.bf16.msra.mxu2 %v2329_v25  ;;  %v2470_v25 = vld [vmem:[%s5141_s1 + $0x238] sm:$0xf0] }
  0x9f   :  { %1915 = vmatpush.bf16.msra.mxu3 %v2393_v29  ;;  %v3312_v29 = vld [vmem:[%s5141_s1 + $0x334] sm:$0xf]  ;;  %v2473_v35 = vor.u32 %v3280_v24, %v2470_v25  ;;  %v2950_v25 = vld [vmem:[%s5141_s1 + $0x5f8] sm:$0xf0] }
  0xa0   :  { %1874 = vmatpush.bf16.msra.mxu0 %v2193_v39  ;;  %v2601_v39 = vor.u32 %v3312_v29, %v2598_v30  ;;  %v3400_v24 = vld [vmem:[%s5141_s1 + $0x5f4] sm:$0xf]  ;;  %v3350_v29 = vld [vmem:[%s5141_s1 + $0x464] sm:$0xf]  ;;  %v2825_v30 = vor.u32 %v3368_v16, %v2822_v18  ;;  %v2726_v18 = vld [vmem:[%s5141_s1 + $0x438] sm:$0xf0] }
  0xa1   :  { %1888 = vmatpush.bf16.msra.mxu1 %v2257_v46  ;;  %v2665_v46 = vor.u32 %v3328_v31, %v2662_v32 }
  0xa2   :  { %1902 = vmatpush.bf16.msra.mxu2 %v2321_v48  ;;  %v3310_v48 = vld [vmem:[%s5141_s1 + $0x324] sm:$0xf] }
  0xa3   :  { %1916 = vmatpush.bf16.msra.mxu3 %v2385_v51  ;;  %1875 = vmatmul.bf16.vlgmr.msra.gmra.mxu0 %v3856_v41  ;;  %v2617_v41 = vor.u32 %v3316_v8, %v2614_v9  ;;  %v3326_v51 = vld [vmem:[%s5141_s1 + $0x3a4] sm:$0xf]  ;;  %v2593_v56 = vor.u32 %v3310_v48, %v2590_v49  ;;  %v2585_v8 = vor.u32 %v3308_v62, %v2582_v63  ;;  %v2942_v49 = vld [vmem:[%s5141_s1 + $0x5e8] sm:$0xf0]  ;;  %v2806_v62 = vld [vmem:[%s5141_s1 + $0x4d8] sm:$0xf0] }
  0xa4   :  { %1923 = vmatpush.bf16.msrb.mxu0 %v2505_v52  ;;  %1889 = vmatmul.bf16.vlgmr.msra.gmra.mxu1 %v3860_v44  ;;  %v2681_v44 = vor.u32 %v3332_v10, %v2678_v11  ;;  %v2654_v52 = vld [vmem:[%s5141_s1 + $0x3a8] sm:$0xf0]  ;;  %v3290_v10 = vld [vmem:[%s5141_s1 + $0x284] sm:$0xf]  ;;  %v3380_v63 = vld [vmem:[%s5141_s1 + $0x554] sm:$0xf] }
  0xa5   :  { %1937 = vmatpush.bf16.msrb.mxu1 %v2569_v53  ;;  %1903 = vmatmul.bf16.vlgmr.msra.gmra.mxu2 %v3858_v42  ;;  %v3298_v42 = vld [vmem:[%s5141_s1 + $0x2c4] sm:$0xf]  ;;  %v2465_v53 = vor.u32 %v3278_v37, %v2462_v40  ;;  %v2657_v60 = vor.u32 %v3326_v51, %v2654_v52  ;;  %v2510_v11 = vld [vmem:[%s5141_s1 + $0x288] sm:$0xf0] }
  0xa6   :  { %1951 = vmatpush.bf16.msrb.mxu2 %v2633_v54  ;;  %1917 = vmatmul.bf16.vlgmr.msra.gmra.mxu3 %v3871_v47  ;;  %v2542_v47 = vld [vmem:[%s5141_s1 + $0x2c8] sm:$0xf0]  ;;  %v3276_v54 = vld [vmem:[%s5141_s1 + $0x214] sm:$0xf]  ;;  %v3366_v37 = vld [vmem:[%s5141_s1 + $0x4e4] sm:$0xf] }
  0xa7   :  { %1965 = vmatpush.bf16.msrb.mxu3 %v2697_v58  ;;  %v2545_v21 = vor.u32 %v3298_v42, %v2542_v47  ;;  %v2454_v58 = vld [vmem:[%s5141_s1 + $0x218] sm:$0xf0]  ;;  %v3398_v48 = vld [vmem:[%s5141_s1 + $0x5e4] sm:$0xf] }
  0xa8   :  { %1924 = vmatpush.bf16.msrb.mxu0 %v2497_v0  ;;  %v3324_v0 = vld [vmem:[%s5141_s1 + $0x394] sm:$0xf]  ;;  %v2457_v3 = vor.u32 %v3276_v54, %v2454_v58  ;;  %v2758_v47 = vld [vmem:[%s5141_s1 + $0x478] sm:$0xf0]  ;;  %v2945_v61 = vor.u32 %v3398_v48, %v2942_v49  ;;  %v3390_v48 = vld [vmem:[%s5141_s1 + $0x5a4] sm:$0xf] }
  0xa9   :  { %1938 = vmatpush.bf16.msrb.mxu1 %v2561_v1  ;;  %v2646_v1 = vld [vmem:[%s5141_s1 + $0x398] sm:$0xf0]  ;;  %v2910_v49 = vld [vmem:[%s5141_s1 + $0x5a8] sm:$0xf0] }
  0xaa   :  { %1952 = vmatpush.bf16.msrb.mxu2 %v2625_v2  ;;  %v1652_v2 = vpop.f32.mrf.mxu0 }
  0xab   :  { %1966 = vmatpush.bf16.msrb.mxu3 %v2689_v6  ;;  %v1653_v6 = vadd.f32 %v1652_v2, %v288_v57  ;;  %v1666_v9 = vpop.f32.mrf.mxu1 }
  0xac   :  { %1925 = vmatpush.bf16.msrb.mxu0 %v2489_v12  ;;  %v3306_v12 = vld [vmem:[%s5141_s1 + $0x304] sm:$0xf] }
  0xad   :  { %1939 = vmatpush.bf16.msrb.mxu1 %v2553_v13  ;;  %v2649_v13 = vor.u32 %v3324_v0, %v2646_v1  ;;  %v1667_v42 = vadd.f32 %v1666_v9, %v1653_v6  ;;  %v2870_v0 = vld [vmem:[%s5141_s1 + $0x558] sm:$0xf0]  ;;  %v2734_v6 = vld [vmem:[%s5141_s1 + $0x448] sm:$0xf0]  ;;  %v3378_v9 = vld [vmem:[%s5141_s1 + $0x544] sm:$0xf] }
  0xae   :  { %1953 = vmatpush.bf16.msrb.mxu2 %v2617_v41  ;;  %v2574_v41 = vld [vmem:[%s5141_s1 + $0x308] sm:$0xf0]  ;;  %v2934_v1 = vld [vmem:[%s5141_s1 + $0x5d8] sm:$0xf0]  ;;  %v2873_v5 = vor.u32 %v3380_v63, %v2870_v0  ;;  %v3372_v0 = vld [vmem:[%s5141_s1 + $0x514] sm:$0xf] }
  0xaf   :  { %1967 = vmatpush.bf16.msrb.mxu3 %v2681_v44  ;;  %v3352_v44 = vld [vmem:[%s5141_s1 + $0x474] sm:$0xf]  ;;  %v2774_v63 = vld [vmem:[%s5141_s1 + $0x498] sm:$0xf0] }
  0xb0   :  { %1926 = vmatpush.bf16.msrb.mxu0 %v2481_v20  ;;  %v2886_v20 = vld [vmem:[%s5141_s1 + $0x578] sm:$0xf0] }
  0xb1   :  { %1940 = vmatpush.bf16.msrb.mxu1 %v2545_v21  ;;  %v2513_v21 = vor.u32 %v3290_v10, %v2510_v11  ;;  %v2889_v31 = vor.u32 %v3384_v19, %v2886_v20  ;;  %v2862_v10 = vld [vmem:[%s5141_s1 + $0x548] sm:$0xf0]  ;;  %v3360_v19 = vld [vmem:[%s5141_s1 + $0x4b4] sm:$0xf] }
  0xb2   :  { %1954 = vmatpush.bf16.msrb.mxu2 %v2609_v22  ;;  %v2577_v22 = vor.u32 %v3306_v12, %v2574_v41  ;;  %v1680_v28 = vpop.f32.mrf.mxu2  ;;  %v1654_v40 = vpop.f32.mrf.mxu0  ;;  %v3394_v12 = vld [vmem:[%s5141_s1 + $0x5c4] sm:$0xf]  ;;  %v2865_v16 = vor.u32 %v3378_v9, %v2862_v10  ;;  %v2830_v10 = vld [vmem:[%s5141_s1 + $0x508] sm:$0xf0] }
  0xb3   :  { %1968 = vmatpush.bf16.msrb.mxu3 %v2673_v27  ;;  %v2761_v27 = vor.u32 %v3352_v44, %v2758_v47  ;;  %v1681_v32 = vadd.f32 %v1680_v28, %v1667_v42  ;;  %v1668_v51 = vpop.f32.mrf.mxu1  ;;  %v1694_v52 = vpop.f32.mrf.mxu3 }
  0xb4   :  { %1927 = vmatpush.bf16.msrb.mxu0 %v2473_v35  ;;  %v2750_v35 = vld [vmem:[%s5141_s1 + $0x468] sm:$0xf0] }
  0xb5   :  { %1941 = vmatpush.bf16.msrb.mxu1 %v2537_v38  ;;  %v2814_v38 = vld [vmem:[%s5141_s1 + $0x4e8] sm:$0xf0] }
  0xb6   :  { %1955 = vmatpush.bf16.msrb.mxu2 %v2601_v39  ;;  %v2953_v39 = vor.u32 %v3400_v24, %v2950_v25  ;;  %v2817_v54 = vor.u32 %v3366_v37, %v2814_v38  ;;  %v3376_v24 = vld [vmem:[%s5141_s1 + $0x534] sm:$0xf]  ;;  %v2854_v25 = vld [vmem:[%s5141_s1 + $0x538] sm:$0xf0] }
  0xb7   :  { %1969 = vmatpush.bf16.msrb.mxu3 %v2665_v46  ;;  %v1655_v46 = vadd.f32 %v1654_v40, %v288_v57  ;;  %v3348_v57 = vld [vmem:[%s5141_s1 + $0x454] sm:$0xf]  ;;  %v3374_v40 = vld [vmem:[%s5141_s1 + $0x524] sm:$0xf] }
  0xb8   :  { %1928 = vmatpush.bf16.msrb.mxu0 %v2465_v53  ;;  %v2753_v53 = vor.u32 %v3350_v29, %v2750_v35  ;;  %v2745_v2 = vor.u32 %v3348_v57, %v2742_v59  ;;  %v3358_v35 = vld [vmem:[%s5141_s1 + $0x4a4] sm:$0xf]  ;;  %v3340_v57 = vld [vmem:[%s5141_s1 + $0x414] sm:$0xf]  ;;  %v2710_v59 = vld [vmem:[%s5141_s1 + $0x418] sm:$0xf0] }
  0xb9   :  { %1942 = vmatpush.bf16.msrb.mxu1 %v2529_v55  ;;  %v1695_v55 = vadd.f32 %v1694_v52, %v1681_v32  ;;  %v1669_v58 = vadd.f32 %v1668_v51, %v1655_v46  ;;  %v2718_v32 = vld [vmem:[%s5141_s1 + $0x428] sm:$0xf0] }
  0xba   :  { %1956 = vmatpush.bf16.msrb.mxu2 %v2593_v56  ;;  %v2881_v56 = vor.u32 %v3382_v43, %v2878_v45  ;;  %v2846_v43 = vld [vmem:[%s5141_s1 + $0x528] sm:$0xf0] }
  0xbb   :  { %1970 = vmatpush.bf16.msrb.mxu3 %v2657_v60  ;;  %v3364_v60 = vld [vmem:[%s5141_s1 + $0x4d4] sm:$0xf]  ;;  %v1696_v41 = vpop.f32.mrf.mxu3 }
  0xbc   :  { %1929 = vmatpush.bf16.msrb.mxu0 %v2457_v3  ;;  %v1682_v3 = vpop.f32.mrf.mxu2  ;;  %v2809_v4 = vor.u32 %v3364_v60, %v2806_v62  ;;  %v3356_v60 = vld [vmem:[%s5141_s1 + $0x494] sm:$0xf] }
  0xbd   :  { %1943 = vmatpush.bf16.msrb.mxu1 %v2521_v7 }
  0xbe   :  { %1957 = vmatpush.bf16.msrb.mxu2 %v2585_v8  ;;  %v2798_v8 = vld [vmem:[%s5141_s1 + $0x4c8] sm:$0xf0] }
  0xbf   :  { %1971 = vmatpush.bf16.msrb.mxu3 %v2649_v13  ;;  %v2926_v13 = vld [vmem:[%s5141_s1 + $0x5c8] sm:$0xf0] }
  0xc0   :  { %1930 = vmatpush.bf16.msrb.mxu0 %v2449_v17  ;;  %v1708_v11 = vpop.f32.mrf.mxu0  ;;  %v3344_v17 = vld [vmem:[%s5141_s1 + $0x434] sm:$0xf]  ;;  %v2929_v20 = vor.u32 %v3394_v12, %v2926_v13  ;;  %v2894_v12 = vld [vmem:[%s5141_s1 + $0x588] sm:$0xf0] }
  0xc1   :  { %1944 = vmatpush.bf16.msrb.mxu1 %v2513_v21  ;;  %v1709_v14 = vadd.f32 %v1708_v11, %v1695_v55  ;;  %v1722_v42 = vpop.f32.mrf.mxu1  ;;  %v2729_v28 = vor.u32 %v3344_v17, %v2726_v18  ;;  %v3386_v11 = vld [vmem:[%s5141_s1 + $0x584] sm:$0xf]  ;;  %v3142_v17 = vld [vmem:[%s5141_s1 + $0x778] sm:$0xf0] }
  0xc2   :  { %1958 = vmatpush.bf16.msrb.mxu2 %v2577_v22  ;;  %v2790_v22 = vld [vmem:[%s5141_s1 + $0x4b8] sm:$0xf0] }
  0xc3   :  { %1972 = vmatpush.bf16.msrb.mxu3 %v2641_v26  ;;  %1931 = vmatmul.bf16.vlgmr.msrb.gmra.mxu0 %v3946_v23  ;;  %v3396_v23 = vld [vmem:[%s5141_s1 + $0x5d4] sm:$0xf]  ;;  %v1723_v21 = vadd.f32 %v1722_v42, %v1709_v14  ;;  %v2793_v29 = vor.u32 %v3360_v19, %v2790_v22  ;;  %v3014_v14 = vld [vmem:[%s5141_s1 + $0x678] sm:$0xf0] }
  0xc4   :  { %1979 = vmatpush.bf16.msra.mxu0 %v2761_v27  ;;  %1945 = vmatmul.bf16.vlgmr.msrb.gmra.mxu1 %v3974_v34  ;;  %v3346_v34 = vld [vmem:[%s5141_s1 + $0x444] sm:$0xf]  ;;  %v2937_v7 = vor.u32 %v3396_v23, %v2934_v1  ;;  %v3392_v26 = vld [vmem:[%s5141_s1 + $0x5b4] sm:$0xf]  ;;  %v2918_v27 = vld [vmem:[%s5141_s1 + $0x5b8] sm:$0xf0] }
  0xc5   :  { %1993 = vmatpush.bf16.msra.mxu1 %v2825_v30  ;;  %1959 = vmatmul.bf16.vlgmr.msrb.gmra.mxu2 %v3972_v33  ;;  %v1683_v33 = vadd.f32 %v1682_v3, %v1669_v58  ;;  %v2737_v15 = vor.u32 %v3346_v34, %v2734_v6  ;;  %v2857_v30 = vor.u32 %v3376_v24, %v2854_v25  ;;  %v2838_v23 = vld [vmem:[%s5141_s1 + $0x518] sm:$0xf0]  ;;  %v3388_v1 = vld [vmem:[%s5141_s1 + $0x594] sm:$0xf]  ;;  %v3354_v6 = vld [vmem:[%s5141_s1 + $0x484] sm:$0xf] }
  0xc6   :  { %2007 = vmatpush.bf16.msra.mxu2 %v2889_v31  ;;  %1973 = vmatmul.bf16.vlgmr.msrb.gmra.mxu3 %v3976_v36  ;;  %v3362_v36 = vld [vmem:[%s5141_s1 + $0x4c4] sm:$0xf]  ;;  %v2921_v37 = vor.u32 %v3392_v26, %v2918_v27  ;;  %v2849_v58 = vor.u32 %v3374_v40, %v2846_v43  ;;  %v2713_v3 = vor.u32 %v3340_v57, %v2710_v59  ;;  %v3206_v22 = vld [vmem:[%s5141_s1 + $0x7f8] sm:$0xf0]  ;;  %v3476_v57 = vld [vmem:[#allocation1 + $0x9] sm:$0xff] }
  0xc7   :  { %2021 = vmatpush.bf16.msra.mxu3 %v2953_v39  ;;  %v1697_v44 = vadd.f32 %v1696_v41, %v1683_v33  ;;  %v2801_v47 = vor.u32 %v3362_v36, %v2798_v8  ;;  %v3342_v31 = vld [vmem:[%s5141_s1 + $0x424] sm:$0xf]  ;;  %v2782_v39 = vld [vmem:[%s5141_s1 + $0x4a8] sm:$0xf0]  ;;  %v2777_v33 = vor.u32 %v3356_v60, %v2774_v63  ;;  %v2841_v34 = vor.u32 %v3372_v0, %v2838_v23  ;;  %v3416_v41 = vld [vmem:[%s5141_s1 + $0x674] sm:$0xf] }
  0xc8   :  { %1980 = vmatpush.bf16.msra.mxu0 %v2753_v53  ;;  %v1736_v38 = vpop.f32.mrf.mxu2  ;;  %v1710_v46 = vpop.f32.mrf.mxu0  ;;  %v2721_v53 = vor.u32 %v3342_v31, %v2718_v32  ;;  %v2766_v36 = vld [vmem:[%s5141_s1 + $0x488] sm:$0xf0]  ;;  %v2897_v24 = vor.u32 %v3386_v11, %v2894_v12  ;;  %v3017_v25 = vor.u32 %v3416_v41, %v3014_v14  ;;  %v3460_v59 = vld [vmem:[%s5141_s1 + $0x7d4] sm:$0xf]  ;;  %v3190_v60 = vld [vmem:[%s5141_s1 + $0x7d8] sm:$0xf0] }
  0xc9   :  { %1994 = vmatpush.bf16.msra.mxu1 %v2817_v54  ;;  %v1737_v45 = vadd.f32 %v1736_v38, %v1723_v21  ;;  %v1711_v51 = vadd.f32 %v1710_v46, %v1697_v44  ;;  %v1750_v52 = vpop.f32.mrf.mxu3  ;;  %v1724_v54 = vpop.f32.mrf.mxu1  ;;  %v2769_v19 = vor.u32 %v3354_v6, %v2766_v36  ;;  %v3464_v21 = vld [vmem:[%s5141_s1 + $0x7f4] sm:$0xf]  ;;  %v3070_v32 = vld [vmem:[%s5141_s1 + $0x6e8] sm:$0xf0]  ;;  %v3462_v38 = vld [vmem:[%s5141_s1 + $0x7e4] sm:$0xf] }
  0xca   :  { %2008 = vmatpush.bf16.msra.mxu2 %v2881_v56  ;;  %v2785_v56 = vor.u32 %v3358_v35, %v2782_v39  ;;  %v3209_v31 = vor.u32 %v3464_v21, %v3206_v22  ;;  %v3446_v35 = vld [vmem:[%s5141_s1 + $0x764] sm:$0xf]  ;;  %v3198_v39 = vld [vmem:[%s5141_s1 + $0x7e8] sm:$0xf0]  ;;  %v3412_v46 = vld [vmem:[%s5141_s1 + $0x654] sm:$0xf] }
  0xcb   :  { %2022 = vmatpush.bf16.msra.mxu3 %v2945_v61  ;;  %v4884_v55 = vadd.f32 %v1750_v52, %v1737_v45  ;;  %v2913_v61 = vor.u32 %v3390_v48, %v2910_v49  ;;  %v1725_v62 = vadd.f32 %v1724_v54, %v1711_v51  ;;  %v2998_v48 = vld [vmem:[%s5141_s1 + $0x658] sm:$0xf0]  ;;  %v3428_v49 = vld [vmem:[%s5141_s1 + $0x6d4] sm:$0xf]  ;;  %v3474_v51 = vld [vmem:[#allocation1] sm:$0xff]  ;;  %v3201_v52 = vor.u32 %v3462_v38, %v3198_v39 }
  0xcc   :  { %1981 = vmatpush.bf16.msra.mxu0 %v2745_v2  ;;  %v2902_v2 = vld [vmem:[%s5141_s1 + $0x598] sm:$0xf0]  ;;  %v3444_v54 = vld [vmem:[%s5141_s1 + $0x754] sm:$0xf]  ;;  %v3410_v23 = vld [vmem:[%s5141_s1 + $0x644] sm:$0xf] }
  0xcd   :  { %1995 = vmatpush.bf16.msra.mxu1 %v2809_v4  ;;  %v3338_v4 = vld [vmem:[%s5141_s1 + $0x404] sm:$0xf]  ;;  %v2905_v8 = vor.u32 %v3388_v1, %v2902_v2  ;;  %v2990_v1 = vld [vmem:[%s5141_s1 + $0x648] sm:$0xf0]  ;;  %v3408_v12 = vld [vmem:[%s5141_s1 + $0x634] sm:$0xf] }
  0xce   :  { %2009 = vmatpush.bf16.msra.mxu2 %v2873_v5  ;;  %v2702_v5 = vld [vmem:[%s5141_s1 + $0x408] sm:$0xf0]  ;;  %v3426_v2 = vld [vmem:[%s5141_s1 + $0x6c4] sm:$0xf]  ;;  %v3424_v41 = vld [vmem:[%s5141_s1 + $0x6b4] sm:$0xf] }
  0xcf   :  { %2023 = vmatpush.bf16.msra.mxu3 %v2937_v7  ;;  %v3370_v7 = vld [vmem:[%s5141_s1 + $0x504] sm:$0xf]  ;;  %v2705_v44 = vor.u32 %v3338_v4, %v2702_v5  ;;  %v3054_v4 = vld [vmem:[%s5141_s1 + $0x6c8] sm:$0xf0] }
  0xd0   :  { %1982 = vmatpush.bf16.msra.mxu0 %v2737_v15  ;;  %v1738_v9 = vpop.f32.mrf.mxu2  ;;  %v3432_v15 = vld [vmem:[%s5141_s1 + $0x6f4] sm:$0xf]  ;;  %v3442_v5 = vld [vmem:[%s5141_s1 + $0x744] sm:$0xf]  ;;  %v3182_v36 = vld [vmem:[%s5141_s1 + $0x7c8] sm:$0xf0] }
  0xd1   :  { %1996 = vmatpush.bf16.msra.mxu1 %v2801_v47  ;;  %v1739_v13 = vadd.f32 %v1738_v9, %v1725_v62  ;;  %v1752_v42 = vpop.f32.mrf.mxu3  ;;  %v3078_v47 = vld [vmem:[%s5141_s1 + $0x6f8] sm:$0xf0]  ;;  %v3001_v62 = vor.u32 %v3412_v46, %v2998_v48  ;;  %v3458_v6 = vld [vmem:[%s5141_s1 + $0x7c4] sm:$0xf]  ;;  %v2974_v22 = vld [vmem:[%s5141_s1 + $0x628] sm:$0xf0] }
  0xd2   :  { %2010 = vmatpush.bf16.msra.mxu2 %v2865_v16  ;;  %v3448_v16 = vld [vmem:[%s5141_s1 + $0x774] sm:$0xf]  ;;  %v3081_v26 = vor.u32 %v3432_v15, %v3078_v47  ;;  %v3046_v15 = vld [vmem:[%s5141_s1 + $0x6b8] sm:$0xf0]  ;;  %v3406_v21 = vld [vmem:[%s5141_s1 + $0x624] sm:$0xf] }
  0xd3   :  { %2024 = vmatpush.bf16.msra.mxu3 %v2929_v20  ;;  %v4952_v18 = vadd.f32 %v1752_v42, %v1739_v13  ;;  %v2833_v20 = vor.u32 %v3370_v7, %v2830_v10  ;;  %v3145_v27 = vor.u32 %v3448_v16, %v3142_v17  ;;  %v3057_v10 = vor.u32 %v3426_v2, %v3054_v4  ;;  %v2982_v13 = vld [vmem:[%s5141_s1 + $0x638] sm:$0xf0]  ;;  %v3440_v42 = vld [vmem:[%s5141_s1 + $0x734] sm:$0xf]  ;;  %v3022_v2 = vld [vmem:[%s5141_s1 + $0x688] sm:$0xf0] }
  0xd4   :  { %1983 = vmatpush.bf16.msra.mxu0 %v2729_v28  ;;  %v3414_v28 = vld [vmem:[%s5141_s1 + $0x664] sm:$0xf]  ;;  %v3456_v47 = vld [vmem:[%s5141_s1 + $0x7b4] sm:$0xf]  ;;  %v3174_v16 = vld [vmem:[%s5141_s1 + $0x7b8] sm:$0xf0]  ;;  %v2985_v17 = vor.u32 %v3408_v12, %v2982_v13  ;;  %v2977_v39 = vor.u32 %v3406_v21, %v2974_v22 }
  0xd5   :  { %1997 = vmatpush.bf16.msra.mxu1 %v2793_v29  ;;  %v3006_v29 = vld [vmem:[%s5141_s1 + $0x668] sm:$0xf0]  ;;  %v3404_v48 = vld [vmem:[%s5141_s1 + $0x614] sm:$0xf] }
  0xd6   :  { %2011 = vmatpush.bf16.msra.mxu2 %v2857_v30  ;;  %v3430_v30 = vld [vmem:[%s5141_s1 + $0x6e4] sm:$0xf]  ;;  %v3009_v40 = vor.u32 %v3414_v28, %v3006_v29  ;;  %v3102_v29 = vld [vmem:[%s5141_s1 + $0x728] sm:$0xf0]  ;;  %v3480_v13 = vld [vmem:[#allocation1 + $0x36] sm:$0xff] }
  0xd7   :  { %2025 = vmatpush.bf16.msra.mxu3 %v2921_v37  ;;  %v3134_v37 = vld [vmem:[%s5141_s1 + $0x768] sm:$0xf0]  ;;  %v3073_v43 = vor.u32 %v3430_v30, %v3070_v32  ;;  %v3438_v28 = vld [vmem:[%s5141_s1 + $0x724] sm:$0xf] }
  0xd8   :  { %1984 = vmatpush.bf16.msra.mxu0 %v2721_v53  ;;  %v3137_v45 = vor.u32 %v3446_v35, %v3134_v37  ;;  %v3062_v53 = vld [vmem:[%s5141_s1 + $0x6d8] sm:$0xf0]  ;;  %v3454_v35 = vld [vmem:[%s5141_s1 + $0x7a4] sm:$0xf]  ;;  %v3166_v37 = vld [vmem:[%s5141_s1 + $0x7a8] sm:$0xf0]  ;;  %v3105_v46 = vor.u32 %v3438_v28, %v3102_v29 }
  0xd9   :  { %1998 = vmatpush.bf16.msra.mxu1 %v2785_v56  ;;  %v3126_v56 = vld [vmem:[%s5141_s1 + $0x758] sm:$0xf0]  ;;  %v3065_v63 = vor.u32 %v3428_v49, %v3062_v53  ;;  %v3086_v4 = vld [vmem:[%s5141_s1 + $0x708] sm:$0xf0] }
  0xda   :  { %2012 = vmatpush.bf16.msra.mxu2 %v2849_v58  ;;  %v3475_v58 = vld [vmem:[#allocation1 + $0x12] sm:$0xff]  ;;  %v3129_v0 = vor.u32 %v3444_v54, %v3126_v56  ;;  %v2966_v49 = vld [vmem:[%s5141_s1 + $0x618] sm:$0xf0] }
  0xdb   :  { %2026 = vmatpush.bf16.msra.mxu3 %v2913_v61  ;;  %v3477_v61 = vld [vmem:[#allocation1 + $0x1b] sm:$0xff]  ;;  %v3436_v54 = vld [vmem:[%s5141_s1 + $0x714] sm:$0xf] }
  0xdc   :  { %1985 = vmatpush.bf16.msra.mxu0 %v2713_v3  ;;  %v3193_v3 = vor.u32 %v3460_v59, %v3190_v60  ;;  %v3030_v53 = vld [vmem:[%s5141_s1 + $0x698] sm:$0xf0]  ;;  %v2969_v59 = vor.u32 %v3404_v48, %v2966_v49  ;;  %v3479_v12 = vld [vmem:[#allocation1 + $0x2d] sm:$0xff] }
  0xdd   :  { %1999 = vmatpush.bf16.msra.mxu1 %v2777_v33  ;;  %v3118_v33 = vld [vmem:[%s5141_s1 + $0x748] sm:$0xf0]  ;;  %v3094_v56 = vld [vmem:[%s5141_s1 + $0x718] sm:$0xf0] }
  0xde   :  { %2013 = vmatpush.bf16.msra.mxu2 %v2841_v34  ;;  %v3121_v11 = vor.u32 %v3442_v5, %v3118_v33 }
  0xdf   :  { %2027 = vmatpush.bf16.msra.mxu3 %v2905_v8  ;;  %v2993_v8 = vor.u32 %v3410_v23, %v2990_v1 }
  0xe0   :  { %1986 = vmatpush.bf16.msra.mxu0 %v2705_v44  ;;  %v1764_v34 = vpop.f32.mrf.mxu0  ;;  %v3110_v44 = vld [vmem:[%s5141_s1 + $0x738] sm:$0xf0] }
  0xe1   :  { %2000 = vmatpush.bf16.msra.mxu1 %v2769_v19  ;;  %v1765_v7 = vadd.f32 %v1764_v34, %v4884_v55  ;;  %v1778_v9 = vpop.f32.mrf.mxu1  ;;  %v3185_v55 = vor.u32 %v3458_v6, %v3182_v36  ;;  %v3049_v19 = vor.u32 %v3424_v41, %v3046_v15  ;;  %v3450_v34 = vld [vmem:[%s5141_s1 + $0x784] sm:$0xf]  ;;  %v3150_v6 = vld [vmem:[%s5141_s1 + $0x788] sm:$0xf0] }
  0xe2   :  { %2014 = vmatpush.bf16.msra.mxu2 %v2833_v20  ;;  %v3113_v20 = vor.u32 %v3440_v42, %v3110_v44  ;;  %v3481_v41 = vld [vmem:[#allocation1 + $0x3f] sm:$0xff] }
  0xe3   :  { %2028 = vmatpush.bf16.msra.mxu3 %v2897_v24  ;;  %1987 = vmatmul.bf16.vlgmr.msra.gmra.mxu0 %v3474_v51  ;;  %v1779_v14 = vadd.f32 %v1778_v9, %v1765_v7  ;;  %v3422_v24 = vld [vmem:[%s5141_s1 + $0x6a4] sm:$0xf]  ;;  %v3420_v51 = vld [vmem:[%s5141_s1 + $0x694] sm:$0xf] }
  0xe4   :  { %2035 = vmatpush.bf16.msrb.mxu0 %v3017_v25  ;;  %2001 = vmatmul.bf16.vlgmr.msra.gmra.mxu1 %v3476_v57  ;;  %v3177_v25 = vor.u32 %v3456_v47, %v3174_v16  ;;  %v3158_v57 = vld [vmem:[%s5141_s1 + $0x798] sm:$0xf0]  ;;  %v3033_v60 = vor.u32 %v3420_v51, %v3030_v53 }
  0xe5   :  { %2049 = vmatpush.bf16.msrb.mxu1 %v3081_v26  ;;  %2015 = vmatmul.bf16.vlgmr.msra.gmra.mxu2 %v3475_v58  ;;  %v3452_v58 = vld [vmem:[%s5141_s1 + $0x794] sm:$0xf] }
  0xe6   :  { %2063 = vmatpush.bf16.msrb.mxu2 %v3145_v27  ;;  %2029 = vmatmul.bf16.vlgmr.msra.gmra.mxu3 %v3477_v61  ;;  %v3038_v27 = vld [vmem:[%s5141_s1 + $0x6a8] sm:$0xf0]  ;;  %v3097_v61 = vor.u32 %v3436_v54, %v3094_v56  ;;  %v3161_v23 = vor.u32 %v3452_v58, %v3158_v57 }
  0xe7   :  { %2077 = vmatpush.bf16.msrb.mxu3 %v3209_v31 }
  0xe8   :  { %2036 = vmatpush.bf16.msrb.mxu0 %v3009_v40  ;;  %v1792_v26 = vpop.f32.mrf.mxu2  ;;  %v1766_v31 = vpop.f32.mrf.mxu0 }
  0xe9   :  { %2050 = vmatpush.bf16.msrb.mxu1 %v3073_v43  ;;  %v1793_v30 = vadd.f32 %v1792_v26, %v1779_v14  ;;  %v1806_v32 = vpop.f32.mrf.mxu3  ;;  %v1767_v38 = vadd.f32 %v1766_v31, %v4952_v18  ;;  %v1780_v40 = vpop.f32.mrf.mxu1  ;;  %v3169_v18 = vor.u32 %v3454_v35, %v3166_v37  ;;  %v289_v35 = vperm.slane %v4679_v50, 1 }
  0xea   :  { %2064 = vmatpush.bf16.msrb.mxu2 %v3137_v45  ;;  %v3041_v45 = vor.u32 %v3422_v24, %v3038_v27 }
  0xeb   :  { %2078 = vmatpush.bf16.msrb.mxu3 %v3201_v52  ;;  %v1807_v43 = vadd.f32 %v1806_v32, %v1793_v30  ;;  %v1781_v52 = vadd.f32 %v1780_v40, %v1767_v38 }
  0xec   :  { %2037 = vmatpush.bf16.msrb.mxu0 %v3001_v62  ;;  %v3402_v62 = vld [vmem:[%s5141_s1 + $0x604] sm:$0xf] }
  0xed   :  { %2051 = vmatpush.bf16.msrb.mxu1 %v3065_v63  ;;  %v2958_v63 = vld [vmem:[%s5141_s1 + $0x608] sm:$0xf0] }
  0xee   :  { %2065 = vmatpush.bf16.msrb.mxu2 %v3129_v0  ;;  %v3418_v0 = vld [vmem:[%s5141_s1 + $0x684] sm:$0xf]  ;;  %v2961_v36 = vor.u32 %v3402_v62, %v2958_v63 }
  0xef   :  { %2079 = vmatpush.bf16.msrb.mxu3 %v3193_v3  ;;  %v3434_v3 = vld [vmem:[%s5141_s1 + $0x704] sm:$0xf] }
  0xf0   :  { %2038 = vmatpush.bf16.msrb.mxu0 %v2993_v8  ;;  %v1794_v1 = vpop.f32.mrf.mxu2  ;;  %v3025_v8 = vor.u32 %v3418_v0, %v3022_v2  ;;  %v3089_v9 = vor.u32 %v3434_v3, %v3086_v4 }
  0xf1   :  { %2052 = vmatpush.bf16.msrb.mxu1 %v3057_v10  ;;  %v1795_v5 = vadd.f32 %v1794_v1, %v1781_v52  ;;  %v1808_v33 = vpop.f32.mrf.mxu3  ;;  %v3153_v10 = vor.u32 %v3450_v34, %v3150_v6 }
  0xf2   :  { %2066 = vmatpush.bf16.msrb.mxu2 %v3121_v11  ;;  %v3478_v11 = vld [vmem:[#allocation1 + $0x24] sm:$0xff] }
  0xf3   :  { %2080 = vmatpush.bf16.msrb.mxu3 %v3185_v55  ;;  %v1809_v7 = vadd.f32 %v1808_v33, %v1795_v5 }
  0xf4   :  { %2039 = vmatpush.bf16.msrb.mxu0 %v2985_v17 }
  0xf5   :  { %2053 = vmatpush.bf16.msrb.mxu1 %v3049_v19 }
  0xf6   :  { %2067 = vmatpush.bf16.msrb.mxu2 %v3113_v20 }
  0xf7   :  { %2081 = vmatpush.bf16.msrb.mxu3 %v3177_v25 }
  0xf8   :  { %2040 = vmatpush.bf16.msrb.mxu0 %v2977_v39 }
  0xf9   :  { %2054 = vmatpush.bf16.msrb.mxu1 %v3041_v45 }
  0xfa   :  { %2068 = vmatpush.bf16.msrb.mxu2 %v3105_v46 }
  0xfb   :  { %2082 = vmatpush.bf16.msrb.mxu3 %v3169_v18 }
  0xfc   :  { %2041 = vmatpush.bf16.msrb.mxu0 %v2969_v59 }
  0xfd   :  { %2055 = vmatpush.bf16.msrb.mxu1 %v3033_v60 }
  0xfe   :  { %2069 = vmatpush.bf16.msrb.mxu2 %v3097_v61 }
  0xff   :  { %2083 = vmatpush.bf16.msrb.mxu3 %v3161_v23 }
 0x100   :  { %2042 = vmatpush.bf16.msrb.mxu0 %v2961_v36  ;;  %v1820_v55 = vpop.f32.mrf.mxu0 }
 0x101   :  { %2056 = vmatpush.bf16.msrb.mxu1 %v3025_v8  ;;  %v1821_v14 = vadd.f32 %v1820_v55, %v1807_v43  ;;  %v1834_v15 = vpop.f32.mrf.mxu1 }
 0x102   :  { %2070 = vmatpush.bf16.msrb.mxu2 %v3089_v9 }
 0x103   :  { %2084 = vmatpush.bf16.msrb.mxu3 %v3153_v10  ;;  %2043 = vmatmul.bf16.vlgmr.msrb.gmra.mxu0 %v3478_v11  ;;  %v1835_v42 = vadd.f32 %v1834_v15, %v1821_v14 }
 0x104   :  { %2057 = vmatmul.bf16.vlgmr.msrb.gmra.mxu1 %v3479_v12 }
 0x105   :  { %2071 = vmatmul.bf16.vlgmr.msrb.gmra.mxu2 %v3480_v13 }
 0x106   :  { %2085 = vmatmul.bf16.vlgmr.msrb.gmra.mxu3 %v3481_v41 }
 0x108   :  { %v1848_v44 = vpop.f32.mrf.mxu2  ;;  %v1822_v16 = vpop.f32.mrf.mxu0 }
 0x109   :  { %v1849_v47 = vadd.f32 %v1848_v44, %v1835_v42  ;;  %v1862_v17 = vpop.f32.mrf.mxu3  ;;  %v1823_v19 = vadd.f32 %v1822_v16, %v1809_v7  ;;  %v1836_v20 = vpop.f32.mrf.mxu1 }
 0x10b   :  { %v5130_v21 = vadd.f32 %v1862_v17, %v1849_v47  ;;  %v1837_v22 = vadd.f32 %v1836_v20, %v1823_v19 }
 0x10d   :  { %3466 = vtanh.f32 %v5130_v21 }
 0x110   :  { %v1850_v24 = vpop.f32.mrf.mxu2 }
 0x111   :  { %v1851_v25 = vadd.f32 %v1850_v24, %v1837_v22  ;;  %v1864_v26 = vpop.f32.mrf.mxu3 }
 0x113   :  { %v5132_v27 = vadd.f32 %v1864_v26, %v1851_v25 }
 0x120   :  { %v1876_v28 = vpop.f32.mrf.mxu0 }
 0x121   :  { %v1890_v29 = vpop.f32.mrf.mxu1  ;;  %v1877_v38 = vadd.f32 %v1876_v28, %v289_v35 }
 0x123   :  { %v1891_v43 = vadd.f32 %v1890_v29, %v1877_v38  ;;  %v3467_v29 = vpop.eup %3466 }
 0x128   :  { %v1904_v30 = vpop.f32.mrf.mxu2  ;;  %v1878_v32 = vpop.f32.mrf.mxu0 }
 0x129   :  { %v1918_v31 = vpop.f32.mrf.mxu3  ;;  %v1892_v37 = vpop.f32.mrf.mxu1  ;;  %v1905_v48 = vadd.f32 %v1904_v30, %v1891_v43  ;;  %v1879_v49 = vadd.f32 %v1878_v32, %v289_v35 }
 0x12b   :  { %v1919_v18 = vadd.f32 %v1918_v31, %v1905_v48  ;;  %v1893_v53 = vadd.f32 %v1892_v37, %v1879_v49 }
 0x130   :  { %v1906_v39 = vpop.f32.mrf.mxu2 }
 0x131   :  { %v1920_v40 = vpop.f32.mrf.mxu3  ;;  %v1907_v57 = vadd.f32 %v1906_v39, %v1893_v53 }
 0x133   :  { %v1921_v50 = vadd.f32 %v1920_v40, %v1907_v57 }
 0x140   :  { %v1932_v45 = vpop.f32.mrf.mxu0 }
 0x141   :  { %v1946_v46 = vpop.f32.mrf.mxu1  ;;  %v1933_v56 = vadd.f32 %v1932_v45, %v1919_v18 }
 0x143   :  { %v1947_v59 = vadd.f32 %v1946_v46, %v1933_v56 }
 0x148   :  { %v1960_v51 = vpop.f32.mrf.mxu2  ;;  %v1934_v54 = vpop.f32.mrf.mxu0 }
 0x149   :  { %v1974_v52 = vpop.f32.mrf.mxu3  ;;  %v1948_v58 = vpop.f32.mrf.mxu1  ;;  %v1961_v63 = vadd.f32 %v1960_v51, %v1947_v59  ;;  %v1935_v23 = vadd.f32 %v1934_v54, %v1921_v50 }
 0x14b   :  { %v1975_v1 = vadd.f32 %v1974_v52, %v1961_v63  ;;  %v1949_v3 = vadd.f32 %v1948_v58, %v1935_v23 }
 0x150   :  { %v1962_v60 = vpop.f32.mrf.mxu2 }
 0x151   :  { %v1976_v61 = vpop.f32.mrf.mxu3  ;;  %v1963_v33 = vadd.f32 %v1962_v60, %v1949_v3 }
 0x153   :  { %v1977_v7 = vadd.f32 %v1976_v61, %v1963_v33 }
 0x160   :  { %v1988_v62 = vpop.f32.mrf.mxu0 }
 0x161   :  { %v2002_v0 = vpop.f32.mrf.mxu1  ;;  %v1989_v4 = vadd.f32 %v1988_v62, %v1975_v1 }
 0x163   :  { %v2003_v6 = vadd.f32 %v2002_v0, %v1989_v4 }
 0x168   :  { %v2016_v2 = vpop.f32.mrf.mxu2  ;;  %v1990_v34 = vpop.f32.mrf.mxu0 }
 0x169   :  { %v2030_v5 = vpop.f32.mrf.mxu3  ;;  %v2004_v36 = vpop.f32.mrf.mxu1  ;;  %v2017_v8 = vadd.f32 %v2016_v2, %v2003_v6  ;;  %v1991_v9 = vadd.f32 %v1990_v34, %v1977_v7 }
 0x16b   :  { %v2031_v11 = vadd.f32 %v2030_v5, %v2017_v8  ;;  %v2005_v41 = vadd.f32 %v2004_v36, %v1991_v9 }
 0x170   :  { %v2018_v10 = vpop.f32.mrf.mxu2 }
 0x171   :  { %v2032_v12 = vpop.f32.mrf.mxu3  ;;  %v2019_v15 = vadd.f32 %v2018_v10, %v2005_v41 }
 0x173   :  { %v2033_v47 = vadd.f32 %v2032_v12, %v2019_v15 }
 0x180   :  { %v2044_v13 = vpop.f32.mrf.mxu0 }
 0x181   :  { %v2045_v55 = vadd.f32 %v2044_v13, %v2031_v11  ;;  %v2058_v14 = vpop.f32.mrf.mxu1 }
 0x183   :  { %v2059_v42 = vadd.f32 %v2058_v14, %v2045_v55 }
 0x188   :  { %v2072_v44 = vpop.f32.mrf.mxu2  ;;  %v2046_v19 = vpop.f32.mrf.mxu0 }
 0x189   :  { %v2073_v16 = vadd.f32 %v2072_v44, %v2059_v42  ;;  %v2086_v17 = vpop.f32.mrf.mxu3  ;;  %v2047_v22 = vadd.f32 %v2046_v19, %v2033_v47  ;;  %v2060_v24 = vpop.f32.mrf.mxu1 }
 0x18b   :  { %v2087_v20 = vadd.f32 %v2086_v17, %v2073_v16  ;;  %v2061_v25 = vadd.f32 %v2060_v24, %v2047_v22 }
 0x18d   :  { %3468 = vtanh.f32 %v2087_v20 }
 0x18e   :  { %3470 = vtanh.f32 %v5132_v27 }
 0x190   :  { %v2074_v26 = vpop.f32.mrf.mxu2 }
 0x191   :  { %v2075_v28 = vadd.f32 %v2074_v26, %v2061_v25  ;;  %v2088_v30 = vpop.f32.mrf.mxu3 }
 0x193   :  { %v3469_v31 = vpop.eup %3468  ;;  %v2089_v32 = vadd.f32 %v2088_v30, %v2075_v28 }
 0x194   :  { %v2095_v35 = vpack.c.bf16 %v3469_v31, %v3467_v29  ;;  %v3471_v39 = vpop.eup %3470 }
 0x195   :  { %3472 = vtanh.f32 %v2089_v32 }
 0x196   :  { %v2099_v37 = vrot.slane %v2095_v35, 3 }
 0x198   :  { %v2104_v38 = vsel %vm2101_vm0, %v2095_v35, %v2099_v37 }
 0x199   :  { %2137 = vst [vmem:[#allocation2] sm:$0x3] %v2104_v38 }
 0x19b   :  { %v3473_v40 = vpop.eup %3472 }
 0x1a0   :  { %v2163_v21 = vld [vmem:[#allocation2] sm:$0x3] }
 0x1a1   :  { %2164 = vst [vmem:[%s5143_s3] sm:$0x3] %v2163_v21 }

</bundles_post_ra>
